<compile_context>
chip_gen: v7x
topology: tpu7x:2x2x1
jax: 0.10.0
libtpu: 0.0.40
codegen_flags: <defaults>
</compile_context>

<pallas_src>
import functools

import jax
import jax.numpy as jnp
from jax.experimental import pallas as pl
from jax.experimental.pallas import tpu as pltpu


def _dissected_conv_kernel(*refs, kh, kw, sh, sw, h, w, ph, pw,
                           hout, wout, cin, cout, bt, has_bias, tap_loop):
    """One batch tile (bt samples) per grid step, channel-major, weight-stationary.

    refs (in order):
      x_ref    : (bt, cin, h, w)       un-padded input block (input dtype)
      w_ref    : (cout, kh*kw*cin)     bf16 weight matrix, one row per out chan
      b_ref    : (cout, 1)             f32 bias            (only if has_bias)
      o_ref    : (bt, cout, hout*wout)
      xpad_ref : (bt, cin, hp, wp)     bf16 padded-image scratch (VMEM)
      slab_ref : (kh*kw*cin, bt*hw)    bf16 im2col scratch (VMEM, only if not tap_loop)
    """
    it = iter(refs)
    x_ref = next(it)
    w_ref = next(it)
    b_ref = next(it) if has_bias else None
    o_ref = next(it)
    xpad_ref = next(it)
    slab_ref = None if tap_loop else next(it)

    hw = hout * wout

    # ---- in-kernel zero padding: no HBM jnp.pad round trip; the bf16 cast
    #      happens here so every downstream im2col copy is half width. --------
    if ph or pw:
        xpad_ref[...] = jnp.zeros_like(xpad_ref)
    xpad_ref[:, :, ph:ph + h, pw:pw + w] = x_ref[...].astype(jnp.bfloat16)

    taps = [(r, s) for r in range(kh) for s in range(kw)]

    def patch2d(xb, r, s):
        # TODO(synk): for stride > 1 the lane-strided slice is XLU-heavy; move
        # the W-subsampling into the copy-in (strided pl.ds) instead.
        p = xb[:, r:r + (hout - 1) * sh + 1:sh, s:s + (wout - 1) * sw + 1:sw]
        return p.reshape(cin, hw)                            # (cin, hw) bf16

    if tap_loop:
        # Large-Cin path (v7x VMEM budget): unroll the KH*KW taps and accumulate
        # per-tap matmuls -- same number of MXU pushes (K=Cin is already a full
        # contraction tile), but the KH*KW-times-larger slab never lives in VMEM.
        for b in range(bt):
            xb = xpad_ref[b]                                 # (cin, hp, wp)
            acc = jnp.zeros((cout, hw), jnp.float32)
            for t, (r, s) in enumerate(taps):
                acc = acc + jnp.dot(w_ref[:, t * cin:(t + 1) * cin],
                                    patch2d(xb, r, s),
                                    preferred_element_type=jnp.float32)
            if has_bias:
                acc = acc + b_ref[...]
            o_ref[b] = acc.astype(o_ref.dtype)
    else:
        # Default path: write bf16 patches straight into the slab scratch (no
        # f32 concatenate materialization), then one fused MXU contraction.
        # This single matmul IS the per-(i,j) "preadd" convs plus the
        # permute_add_featuremaps sum over input channels.
        for b in range(bt):
            xb = xpad_ref[b]                                 # (cin, hp, wp)
            for t, (r, s) in enumerate(taps):
                slab_ref[t * cin:(t + 1) * cin, b * hw:(b + 1) * hw] = \
                    patch2d(xb, r, s)
        acc = jnp.dot(w_ref[...], slab_ref[...],
                      preferred_element_type=jnp.float32)    # (cout, bt*hw) f32
        if has_bias:
            acc = acc + b_ref[...]                           # (cout, 1) broadcast
        for b in range(bt):
            o_ref[b] = acc[:, b * hw:(b + 1) * hw].astype(o_ref.dtype)


def _pick_batch_tile(n, hw, kk):
    """Batch-tile size: amortize per-grid-step overhead, keep slab small and
    (when n allows) keep a few grid steps alive for pipelining / megacore."""
    bt = 1
    while n % (2 * bt) == 0:
        nxt = 2 * bt
        if kk * nxt * hw * 2 > 8 * 1024 * 1024:   # bf16 slab budget per step
            break
        if bt * hw >= 512 and n // nxt < 4:       # already lane-rich; keep grid
            break
        bt = nxt
    return bt


def dissected_conv2d(x_nchw, weight_oihw, bias, *, stride=(1, 1), padding=(1, 1)):
    """Forward pass of dissected_Conv2d. Returns NCHW output, like the module."""
    n, cin, h, w = x_nchw.shape
    cout, cin_w, kh, kw = weight_oihw.shape
    assert cin == cin_w
    sh, sw = stride
    ph, pw = padding
    hout = (h + 2 * ph - kh) // sh + 1
    wout = (w + 2 * pw - kw) // sw + 1
    hp, wp = h + 2 * ph, w + 2 * pw
    hw = hout * wout
    kk = kh * kw * cin

    bt = _pick_batch_tile(n, hw, kk)
    tap_loop = cin >= 128          # skip the im2col slab for large Cin (v7x VMEM)

    # Weight rows = output channels; columns ordered (r, s, in-channel) to match
    # the kernel's im2col row order.  bf16 for the native MXU path.
    w2d = jnp.transpose(weight_oihw, (0, 2, 3, 1)).reshape(cout, kk)
    w2d = w2d.astype(jnp.bfloat16)

    has_bias = bias is not None
    inputs = [x_nchw, w2d]
    in_specs = [
        pl.BlockSpec((bt, cin, h, w), lambda b: (b, 0, 0, 0)),   # un-padded input
        pl.BlockSpec((cout, kk), lambda b: (0, 0)),              # VMEM-resident weight
    ]
    if has_bias:
        inputs.append(bias.reshape(cout, 1).astype(jnp.float32))
        in_specs.append(pl.BlockSpec((cout, 1), lambda b: (0, 0)))

    scratch_shapes = [pltpu.VMEM((bt, cin, hp, wp), jnp.bfloat16)]   # padded image
    if not tap_loop:
        scratch_shapes.append(pltpu.VMEM((kk, bt * hw), jnp.bfloat16))  # im2col slab

    kernel = functools.partial(
        _dissected_conv_kernel,
        kh=kh, kw=kw, sh=sh, sw=sw, h=h, w=w, ph=ph, pw=pw,
        hout=hout, wout=wout, cin=cin, cout=cout, bt=bt,
        has_bias=has_bias, tap_loop=tap_loop)

    out = pl.pallas_call(
        kernel,
        out_shape=jax.ShapeDtypeStruct((n, cout, hw), x_nchw.dtype),
        grid_spec=pltpu.PrefetchScalarGridSpec(
            num_scalar_prefetch=0,
            grid=(n // bt,),
            in_specs=in_specs,
            out_specs=pl.BlockSpec((bt, cout, hw), lambda b: (b, 0, 0)),
            scratch_shapes=scratch_shapes,
        ),
        compiler_params=pltpu.CompilerParams(
            dimension_semantics=("parallel",),
            vmem_limit_bytes=64 * 1024 * 1024,
        ),
    )(*inputs)

    # Free reshape (row-major contiguity preserved) back to NCHW — no transpose.
    return out.reshape(n, cout, hout, wout)


if __name__ == "__main__":
    # from_conv ~ nn.Conv2d(4, 8, kernel_size=3, padding=1, stride=1, bias=True)
    N, Cin, H, W = 4, 4, 16, 16
    Cout, KH, KW = 8, 3, 3

    key = jax.random.PRNGKey(0)
    kx, kw_, kb = jax.random.split(key, 3)
    x = jax.random.normal(kx, (N, Cin, H, W), jnp.float32)
    weight = 0.1 * jax.random.normal(kw_, (Cout, Cin, KH, KW), jnp.float32)
    bias = jax.random.normal(kb, (Cout,), jnp.float32)

    out = dissected_conv2d(x, weight, bias, stride=(1, 1), padding=(1, 1))
    out = jax.block_until_ready(out)

    # Reference: the dissected decomposition (per in/out-channel convs summed over
    # input channels, + bias) equals an ordinary conv + bias.  The kernel multiplies
    # in bf16 with f32 accumulation, so compare against the conv of the same
    # bf16-rounded operands computed at full f32 precision.
    x_r = x.astype(jnp.bfloat16).astype(jnp.float32)
    w_r = weight.astype(jnp.bfloat16).astype(jnp.float32)
    ref = jax.lax.conv_general_dilated(
        x_r, w_r, window_strides=(1, 1), padding=((1, 1), (1, 1)),
        dimension_numbers=("NCHW", "OIHW", "NCHW"),
        precision=jax.lax.Precision.HIGHEST,
    ) + bias[None, :, None, None]

    assert out.shape == (N, Cout, H, W), out.shape
    err = float(jnp.max(jnp.abs(out - ref)))
    assert jnp.allclose(out, ref, atol=1e-3, rtol=1e-3), err
    print("KERNEL_OK")
</pallas_src>

<mosaic_0001>
module attributes {stable_mosaic.version = 11 : i64} {
  func.func @_dissected_conv_kernel(%arg0: i32, %arg1: memref<2x4x16x16xf32, #tpu.memory_space<vmem>>, %arg2: memref<8x36xbf16, #tpu.memory_space<vmem>>, %arg3: memref<8x1xf32, #tpu.memory_space<vmem>>, %arg4: memref<2x8x256xf32, #tpu.memory_space<vmem>>, %arg5: memref<2x4x18x18xbf16, #tpu.memory_space<vmem>>, %arg6: memref<36x512xbf16, #tpu.memory_space<vmem>>) attributes {dimension_semantics = [#tpu.dimension_semantics<parallel>], iteration_bounds = array<i64: 2>, scalar_prefetch = 0 : i64, scratch_operands = 2 : i64, tpu.core_type = #tpu.core_type<tc>, window_params = [{transform_indices = @transform_0, window_bounds = array<i64: 2, 4, 16, 16>}, {pipeline_mode = #tpu.pipeline_mode<synchronous>, transform_indices = @transform_1, window_bounds = array<i64: 8, 36>}, {pipeline_mode = #tpu.pipeline_mode<synchronous>, transform_indices = @transform_2, window_bounds = array<i64: 8, 1>}, {transform_indices = @transform_3, window_bounds = array<i64: 2, 8, 256>}]} {
    %cst = arith.constant 0.000000e+00 : bf16
    %0 = vector.broadcast %cst : bf16 to vector<2x4x18x18xbf16>
    %c0 = arith.constant 0 : index
    %c0_0 = arith.constant 0 : index
    %c0_1 = arith.constant 0 : index
    %c0_2 = arith.constant 0 : index
    %1 = vector.load %arg5[%c0, %c0_0, %c0_1, %c0_2] : memref<2x4x18x18xbf16, #tpu.memory_space<vmem>>, vector<2x4x18x18xbf16>
    tpu.vector_store %arg5[%c0, %c0_0, %c0_1, %c0_2], %0 {strides = array<i32>} : memref<2x4x18x18xbf16, #tpu.memory_space<vmem>>, vector<2x4x18x18xbf16>,
    %c0_3 = arith.constant 0 : index
    %c0_4 = arith.constant 0 : index
    %c0_5 = arith.constant 0 : index
    %c0_6 = arith.constant 0 : index
    %2 = vector.load %arg1[%c0_3, %c0_4, %c0_5, %c0_6] : memref<2x4x16x16xf32, #tpu.memory_space<vmem>>, vector<2x4x16x16xf32>
    %3 = arith.truncf %2 : vector<2x4x16x16xf32> to vector<2x4x16x16xbf16>
    %c0_7 = arith.constant 0 : index
    %c0_8 = arith.constant 0 : index
    %c1 = arith.constant 1 : index
    %c1_9 = arith.constant 1 : index
    %4 = vector.load %arg5[%c0_7, %c0_8, %c1, %c1_9] : memref<2x4x18x18xbf16, #tpu.memory_space<vmem>>, vector<2x4x16x16xbf16>
    tpu.vector_store %arg5[%c0_7, %c0_8, %c1, %c1_9], %3 {strides = array<i32>} : memref<2x4x18x18xbf16, #tpu.memory_space<vmem>>, vector<2x4x16x16xbf16>,
    %c0_10 = arith.constant 0 : index
    %c0_11 = arith.constant 0 : index
    %c0_12 = arith.constant 0 : index
    %c0_13 = arith.constant 0 : index
    %5 = vector.load %arg5[%c0_10, %c0_11, %c0_12, %c0_13] : memref<2x4x18x18xbf16, #tpu.memory_space<vmem>>, vector<1x4x18x18xbf16>
    %6 = vector.shape_cast %5 : vector<1x4x18x18xbf16> to vector<4x18x18xbf16>
    %7 = vector.extract_strided_slice %6 {offsets = [0, 0, 0], sizes = [4, 16, 16], strides = [1, 1, 1]} : vector<4x18x18xbf16> to vector<4x16x16xbf16>
    %8 = vector.shape_cast %7 : vector<4x16x16xbf16> to vector<4x256xbf16>
    %c0_14 = arith.constant 0 : index
    %c0_15 = arith.constant 0 : index
    %9 = vector.load %arg6[%c0_14, %c0_15] : memref<36x512xbf16, #tpu.memory_space<vmem>>, vector<4x256xbf16>
    tpu.vector_store %arg6[%c0_14, %c0_15], %8 {strides = array<i32>} : memref<36x512xbf16, #tpu.memory_space<vmem>>, vector<4x256xbf16>,
    %10 = vector.extract_strided_slice %6 {offsets = [0, 0, 1], sizes = [4, 16, 16], strides = [1, 1, 1]} : vector<4x18x18xbf16> to vector<4x16x16xbf16>
    %11 = vector.shape_cast %10 : vector<4x16x16xbf16> to vector<4x256xbf16>
    %c4 = arith.constant 4 : index
    %c0_16 = arith.constant 0 : index
    %12 = vector.load %arg6[%c4, %c0_16] : memref<36x512xbf16, #tpu.memory_space<vmem>>, vector<4x256xbf16>
    tpu.vector_store %arg6[%c4, %c0_16], %11 {strides = array<i32>} : memref<36x512xbf16, #tpu.memory_space<vmem>>, vector<4x256xbf16>,
    %13 = vector.extract_strided_slice %6 {offsets = [0, 0, 2], sizes = [4, 16, 16], strides = [1, 1, 1]} : vector<4x18x18xbf16> to vector<4x16x16xbf16>
    %14 = vector.shape_cast %13 : vector<4x16x16xbf16> to vector<4x256xbf16>
    %c8 = arith.constant 8 : index
    %c0_17 = arith.constant 0 : index
    %15 = vector.load %arg6[%c8, %c0_17] : memref<36x512xbf16, #tpu.memory_space<vmem>>, vector<4x256xbf16>
    tpu.vector_store %arg6[%c8, %c0_17], %14 {strides = array<i32>} : memref<36x512xbf16, #tpu.memory_space<vmem>>, vector<4x256xbf16>,
    %16 = vector.extract_strided_slice %6 {offsets = [0, 1, 0], sizes = [4, 16, 16], strides = [1, 1, 1]} : vector<4x18x18xbf16> to vector<4x16x16xbf16>
    %17 = vector.shape_cast %16 : vector<4x16x16xbf16> to vector<4x256xbf16>
    %c12 = arith.constant 12 : index
    %c0_18 = arith.constant 0 : index
    %18 = vector.load %arg6[%c12, %c0_18] : memref<36x512xbf16, #tpu.memory_space<vmem>>, vector<4x256xbf16>
    tpu.vector_store %arg6[%c12, %c0_18], %17 {strides = array<i32>} : memref<36x512xbf16, #tpu.memory_space<vmem>>, vector<4x256xbf16>,
    %19 = vector.extract_strided_slice %6 {offsets = [0, 1, 1], sizes = [4, 16, 16], strides = [1, 1, 1]} : vector<4x18x18xbf16> to vector<4x16x16xbf16>
    %20 = vector.shape_cast %19 : vector<4x16x16xbf16> to vector<4x256xbf16>
    %c16 = arith.constant 16 : index
    %c0_19 = arith.constant 0 : index
    %21 = vector.load %arg6[%c16, %c0_19] : memref<36x512xbf16, #tpu.memory_space<vmem>>, vector<4x256xbf16>
    tpu.vector_store %arg6[%c16, %c0_19], %20 {strides = array<i32>} : memref<36x512xbf16, #tpu.memory_space<vmem>>, vector<4x256xbf16>,
    %22 = vector.extract_strided_slice %6 {offsets = [0, 1, 2], sizes = [4, 16, 16], strides = [1, 1, 1]} : vector<4x18x18xbf16> to vector<4x16x16xbf16>
    %23 = vector.shape_cast %22 : vector<4x16x16xbf16> to vector<4x256xbf16>
    %c20 = arith.constant 20 : index
    %c0_20 = arith.constant 0 : index
    %24 = vector.load %arg6[%c20, %c0_20] : memref<36x512xbf16, #tpu.memory_space<vmem>>, vector<4x256xbf16>
    tpu.vector_store %arg6[%c20, %c0_20], %23 {strides = array<i32>} : memref<36x512xbf16, #tpu.memory_space<vmem>>, vector<4x256xbf16>,
    %25 = vector.extract_strided_slice %6 {offsets = [0, 2, 0], sizes = [4, 16, 16], strides = [1, 1, 1]} : vector<4x18x18xbf16> to vector<4x16x16xbf16>
    %26 = vector.shape_cast %25 : vector<4x16x16xbf16> to vector<4x256xbf16>
    %c24 = arith.constant 24 : index
    %c0_21 = arith.constant 0 : index
    %27 = vector.load %arg6[%c24, %c0_21] : memref<36x512xbf16, #tpu.memory_space<vmem>>, vector<4x256xbf16>
    tpu.vector_store %arg6[%c24, %c0_21], %26 {strides = array<i32>} : memref<36x512xbf16, #tpu.memory_space<vmem>>, vector<4x256xbf16>,
    %28 = vector.extract_strided_slice %6 {offsets = [0, 2, 1], sizes = [4, 16, 16], strides = [1, 1, 1]} : vector<4x18x18xbf16> to vector<4x16x16xbf16>
    %29 = vector.shape_cast %28 : vector<4x16x16xbf16> to vector<4x256xbf16>
    %c28 = arith.constant 28 : index
    %c0_22 = arith.constant 0 : index
    %30 = vector.load %arg6[%c28, %c0_22] : memref<36x512xbf16, #tpu.memory_space<vmem>>, vector<4x256xbf16>
    tpu.vector_store %arg6[%c28, %c0_22], %29 {strides = array<i32>} : memref<36x512xbf16, #tpu.memory_space<vmem>>, vector<4x256xbf16>,
    %31 = vector.extract_strided_slice %6 {offsets = [0, 2, 2], sizes = [4, 16, 16], strides = [1, 1, 1]} : vector<4x18x18xbf16> to vector<4x16x16xbf16>
    %32 = vector.shape_cast %31 : vector<4x16x16xbf16> to vector<4x256xbf16>
    %c32 = arith.constant 32 : index
    %c0_23 = arith.constant 0 : index
    %33 = vector.load %arg6[%c32, %c0_23] : memref<36x512xbf16, #tpu.memory_space<vmem>>, vector<4x256xbf16>
    tpu.vector_store %arg6[%c32, %c0_23], %32 {strides = array<i32>} : memref<36x512xbf16, #tpu.memory_space<vmem>>, vector<4x256xbf16>,
    %c1_24 = arith.constant 1 : index
    %c0_25 = arith.constant 0 : index
    %c0_26 = arith.constant 0 : index
    %c0_27 = arith.constant 0 : index
    %34 = vector.load %arg5[%c1_24, %c0_25, %c0_26, %c0_27] : memref<2x4x18x18xbf16, #tpu.memory_space<vmem>>, vector<1x4x18x18xbf16>
    %35 = vector.shape_cast %34 : vector<1x4x18x18xbf16> to vector<4x18x18xbf16>
    %36 = vector.extract_strided_slice %35 {offsets = [0, 0, 0], sizes = [4, 16, 16], strides = [1, 1, 1]} : vector<4x18x18xbf16> to vector<4x16x16xbf16>
    %37 = vector.shape_cast %36 : vector<4x16x16xbf16> to vector<4x256xbf16>
    %c0_28 = arith.constant 0 : index
    %c256 = arith.constant 256 : index
    %38 = vector.load %arg6[%c0_28, %c256] : memref<36x512xbf16, #tpu.memory_space<vmem>>, vector<4x256xbf16>
    tpu.vector_store %arg6[%c0_28, %c256], %37 {strides = array<i32>} : memref<36x512xbf16, #tpu.memory_space<vmem>>, vector<4x256xbf16>,
    %39 = vector.extract_strided_slice %35 {offsets = [0, 0, 1], sizes = [4, 16, 16], strides = [1, 1, 1]} : vector<4x18x18xbf16> to vector<4x16x16xbf16>
    %40 = vector.shape_cast %39 : vector<4x16x16xbf16> to vector<4x256xbf16>
    %c4_29 = arith.constant 4 : index
    %c256_30 = arith.constant 256 : index
    %41 = vector.load %arg6[%c4_29, %c256_30] : memref<36x512xbf16, #tpu.memory_space<vmem>>, vector<4x256xbf16>
    tpu.vector_store %arg6[%c4_29, %c256_30], %40 {strides = array<i32>} : memref<36x512xbf16, #tpu.memory_space<vmem>>, vector<4x256xbf16>,
    %42 = vector.extract_strided_slice %35 {offsets = [0, 0, 2], sizes = [4, 16, 16], strides = [1, 1, 1]} : vector<4x18x18xbf16> to vector<4x16x16xbf16>
    %43 = vector.shape_cast %42 : vector<4x16x16xbf16> to vector<4x256xbf16>
    %c8_31 = arith.constant 8 : index
    %c256_32 = arith.constant 256 : index
    %44 = vector.load %arg6[%c8_31, %c256_32] : memref<36x512xbf16, #tpu.memory_space<vmem>>, vector<4x256xbf16>
    tpu.vector_store %arg6[%c8_31, %c256_32], %43 {strides = array<i32>} : memref<36x512xbf16, #tpu.memory_space<vmem>>, vector<4x256xbf16>,
    %45 = vector.extract_strided_slice %35 {offsets = [0, 1, 0], sizes = [4, 16, 16], strides = [1, 1, 1]} : vector<4x18x18xbf16> to vector<4x16x16xbf16>
    %46 = vector.shape_cast %45 : vector<4x16x16xbf16> to vector<4x256xbf16>
    %c12_33 = arith.constant 12 : index
    %c256_34 = arith.constant 256 : index
    %47 = vector.load %arg6[%c12_33, %c256_34] : memref<36x512xbf16, #tpu.memory_space<vmem>>, vector<4x256xbf16>
    tpu.vector_store %arg6[%c12_33, %c256_34], %46 {strides = array<i32>} : memref<36x512xbf16, #tpu.memory_space<vmem>>, vector<4x256xbf16>,
    %48 = vector.extract_strided_slice %35 {offsets = [0, 1, 1], sizes = [4, 16, 16], strides = [1, 1, 1]} : vector<4x18x18xbf16> to vector<4x16x16xbf16>
    %49 = vector.shape_cast %48 : vector<4x16x16xbf16> to vector<4x256xbf16>
    %c16_35 = arith.constant 16 : index
    %c256_36 = arith.constant 256 : index
    %50 = vector.load %arg6[%c16_35, %c256_36] : memref<36x512xbf16, #tpu.memory_space<vmem>>, vector<4x256xbf16>
    tpu.vector_store %arg6[%c16_35, %c256_36], %49 {strides = array<i32>} : memref<36x512xbf16, #tpu.memory_space<vmem>>, vector<4x256xbf16>,
    %51 = vector.extract_strided_slice %35 {offsets = [0, 1, 2], sizes = [4, 16, 16], strides = [1, 1, 1]} : vector<4x18x18xbf16> to vector<4x16x16xbf16>
    %52 = vector.shape_cast %51 : vector<4x16x16xbf16> to vector<4x256xbf16>
    %c20_37 = arith.constant 20 : index
    %c256_38 = arith.constant 256 : index
    %53 = vector.load %arg6[%c20_37, %c256_38] : memref<36x512xbf16, #tpu.memory_space<vmem>>, vector<4x256xbf16>
    tpu.vector_store %arg6[%c20_37, %c256_38], %52 {strides = array<i32>} : memref<36x512xbf16, #tpu.memory_space<vmem>>, vector<4x256xbf16>,
    %54 = vector.extract_strided_slice %35 {offsets = [0, 2, 0], sizes = [4, 16, 16], strides = [1, 1, 1]} : vector<4x18x18xbf16> to vector<4x16x16xbf16>
    %55 = vector.shape_cast %54 : vector<4x16x16xbf16> to vector<4x256xbf16>
    %c24_39 = arith.constant 24 : index
    %c256_40 = arith.constant 256 : index
    %56 = vector.load %arg6[%c24_39, %c256_40] : memref<36x512xbf16, #tpu.memory_space<vmem>>, vector<4x256xbf16>
    tpu.vector_store %arg6[%c24_39, %c256_40], %55 {strides = array<i32>} : memref<36x512xbf16, #tpu.memory_space<vmem>>, vector<4x256xbf16>,
    %57 = vector.extract_strided_slice %35 {offsets = [0, 2, 1], sizes = [4, 16, 16], strides = [1, 1, 1]} : vector<4x18x18xbf16> to vector<4x16x16xbf16>
    %58 = vector.shape_cast %57 : vector<4x16x16xbf16> to vector<4x256xbf16>
    %c28_41 = arith.constant 28 : index
    %c256_42 = arith.constant 256 : index
    %59 = vector.load %arg6[%c28_41, %c256_42] : memref<36x512xbf16, #tpu.memory_space<vmem>>, vector<4x256xbf16>
    tpu.vector_store %arg6[%c28_41, %c256_42], %58 {strides = array<i32>} : memref<36x512xbf16, #tpu.memory_space<vmem>>, vector<4x256xbf16>,
    %60 = vector.extract_strided_slice %35 {offsets = [0, 2, 2], sizes = [4, 16, 16], strides = [1, 1, 1]} : vector<4x18x18xbf16> to vector<4x16x16xbf16>
    %61 = vector.shape_cast %60 : vector<4x16x16xbf16> to vector<4x256xbf16>
    %c32_43 = arith.constant 32 : index
    %c256_44 = arith.constant 256 : index
    %62 = vector.load %arg6[%c32_43, %c256_44] : memref<36x512xbf16, #tpu.memory_space<vmem>>, vector<4x256xbf16>
    tpu.vector_store %arg6[%c32_43, %c256_44], %61 {strides = array<i32>} : memref<36x512xbf16, #tpu.memory_space<vmem>>, vector<4x256xbf16>,
    %c0_45 = arith.constant 0 : index
    %c0_46 = arith.constant 0 : index
    %63 = vector.load %arg2[%c0_45, %c0_46] : memref<8x36xbf16, #tpu.memory_space<vmem>>, vector<8x36xbf16>
    %c0_47 = arith.constant 0 : index
    %c0_48 = arith.constant 0 : index
    %64 = vector.load %arg6[%c0_47, %c0_48] : memref<36x512xbf16, #tpu.memory_space<vmem>>, vector<36x512xbf16>
    %cst_49 = arith.constant dense<0.000000e+00> : vector<8x512xf32>
    %65 = tpu.matmul %63, %64, %cst_49 {dimension_numbers = #tpu.dot_dimension_numbers<[1], [0], [0], [1], [0, 0, 1, 1], [], []>} : vector<8x36xbf16>, vector<36x512xbf16>, vector<8x512xf32> -> vector<8x512xf32>
    %c0_50 = arith.constant 0 : index
    %c0_51 = arith.constant 0 : index
    %66 = vector.load %arg3[%c0_50, %c0_51] : memref<8x1xf32, #tpu.memory_space<vmem>>, vector<8x1xf32>
    %67 = vector.broadcast %66 : vector<8x1xf32> to vector<8x512xf32>
    %68 = arith.addf %65, %67 : vector<8x512xf32>
    %69 = vector.extract_strided_slice %68 {offsets = [0, 0], sizes = [8, 256], strides = [1, 1]} : vector<8x512xf32> to vector<8x256xf32>
    %c0_52 = arith.constant 0 : index
    %c0_53 = arith.constant 0 : index
    %c0_54 = arith.constant 0 : index
    %70 = vector.load %arg4[%c0_52, %c0_53, %c0_54] : memref<2x8x256xf32, #tpu.memory_space<vmem>>, vector<1x8x256xf32>
    %71 = vector.shape_cast %70 : vector<1x8x256xf32> to vector<8x256xf32>
    %72 = vector.shape_cast %69 : vector<8x256xf32> to vector<1x8x256xf32>
    tpu.vector_store %arg4[%c0_52, %c0_53, %c0_54], %72 {strides = array<i32>} : memref<2x8x256xf32, #tpu.memory_space<vmem>>, vector<1x8x256xf32>,
    %73 = vector.extract_strided_slice %68 {offsets = [0, 256], sizes = [8, 256], strides = [1, 1]} : vector<8x512xf32> to vector<8x256xf32>
    %c1_55 = arith.constant 1 : index
    %c0_56 = arith.constant 0 : index
    %c0_57 = arith.constant 0 : index
    %74 = vector.load %arg4[%c1_55, %c0_56, %c0_57] : memref<2x8x256xf32, #tpu.memory_space<vmem>>, vector<1x8x256xf32>
    %75 = vector.shape_cast %74 : vector<1x8x256xf32> to vector<8x256xf32>
    %76 = vector.shape_cast %73 : vector<8x256xf32> to vector<1x8x256xf32>
    tpu.vector_store %arg4[%c1_55, %c0_56, %c0_57], %76 {strides = array<i32>} : memref<2x8x256xf32, #tpu.memory_space<vmem>>, vector<1x8x256xf32>,
    return
  }
  func.func @transform_0(%arg0: i32) -> (i32, i32, i32, i32) {
    %c0_i32 = arith.constant 0 : i32
    %c0_i32_0 = arith.constant 0 : i32
    %c0_i32_1 = arith.constant 0 : i32
    %c0_i32_2 = arith.constant 0 : i32
    return %arg0, %c0_i32, %c0_i32_0, %c0_i32_1 : i32, i32, i32, i32
  }
  func.func @transform_1(%arg0: i32) -> (i32, i32) {
    %c0_i32 = arith.constant 0 : i32
    %c0_i32_0 = arith.constant 0 : i32
    %c0_i32_1 = arith.constant 0 : i32
    return %c0_i32, %c0_i32_0 : i32, i32
  }
  func.func @transform_2(%arg0: i32) -> (i32, i32) {
    %c0_i32 = arith.constant 0 : i32
    %c0_i32_0 = arith.constant 0 : i32
    %c0_i32_1 = arith.constant 0 : i32
    return %c0_i32, %c0_i32_0 : i32, i32
  }
  func.func @transform_3(%arg0: i32) -> (i32, i32, i32) {
    %c0_i32 = arith.constant 0 : i32
    %c0_i32_0 = arith.constant 0 : i32
    %c0_i32_1 = arith.constant 0 : i32
    return %arg0, %c0_i32, %c0_i32_0 : i32, i32, i32
  }
}

</mosaic_0001>

<bundles_post_ra>
// kernel: tpu_custom_call.1
= control target key start
LH: loop header
LB: loop body
LE: loop exit
PB: predicated region body
PF: predicated region fallthrough
CT: control target
= control target key end

     0   :  { %8 = vsyncpa [#allocation5], 0  ;;  %s10174_s0 = inlined_call_operand.hbm [shape: f32[4,4,16,16], index: 0, kind: input, shape index: {}]   ;;  %s10175_s1 = inlined_call_operand.hbm [shape: bf16[8,36], index: 1, kind: input, shape index: {}]   ;;  %s10176_s2 = inlined_call_operand.hbm [shape: f32[8,1], index: 2, kind: input, shape index: {}]   ;;  %s10177_s3 = inlined_call_operand.hbm [shape: f32[4,8,256], index: 3, kind: output, shape index: {}]  }
   0x1   :  { %10 = vsyncpa [#allocation5 + $0x1], 0 }
   0x2   :  { %11 = vsyncpa [#allocation8], 0 }
   0x3   :  { %12 = vsyncpa [#allocation6], 0 }
   0x4   :  { %14 = vsyncpa [#allocation6 + $0x1], 0  ;;  %s6949_s12 = smov 0   ;;  %s6951_s13 = smov 0  }
   0x5   :  { %s6953_s14 = smov 0   ;;  %s6955_s15 = smov 0  }
   0x6 LB: > { %s6970_s16 = sadd.s32 4294967295, %s6907_s15   ;;  %s6143_s17 = sadd.s32 4294967294, %s6907_s15   ;;  %s6907_s15 = sphi %s6955_s15, %s10494_s15   ;;  %s6903_s14 = sphi %s6953_s14, %s10493_s14   ;;  %s6899_s13 = sphi %s6951_s13, %s10492_s13   ;;  %s6895_s12 = sphi %s6949_s12, %s10491_s12  }
   0x7   : > { %s6974_s18 = sadd.s32 1, %s6907_s15   ;;  %s27_s19 = sadd.s32 1, %s6903_s14 }
   0x8   : > { %s24_s20 = ssub.s32 %s6907_s15, %s6974_s18  ;;  %p34_p0 = scmp.ne.s32.totalorder %s6903_s14, %s6899_s13 }
   0x9   : > { %p25_p1 = scmp.eq.s32.totalorder %s24_s20, 0  ;;  %p35_p2 = scmp.eq.s32.totalorder %s6907_s15, 0 }
   0xa   : > { %p40_p3 = scmp.ne.s32.totalorder %s6899_s13, %s6895_s12  ;;  %p10178_p4 = scmp.eq.s32.totalorder %s6970_s16, 0 }
   0xb   : > { %s6986_s21 = scalar_select %p25_p1, %s6903_s14, %s27_s19  }
   0xc   : > { %p6988_p5 = por %p35_p2, %p34_p0  ;;  %p6994_p6 = por %p10178_p4, %p40_p3 }
   0xd   : > { %p106_p7 = scmp.eq.s32.totalorder %s6970_s16, 1  ;;  %p112_p8 = scmp.eq.s32.totalorder %s6143_s17, 1 }
   0xe   : > { %s10272_s23 = scalar_select %p6994_p6, 1, 0 }
   0xf   : > { %p6144_p9 = scmp.ge.s32.totalorder %s6907_s15, 1  ;;  %p119_p10 = scmp.lt.s32.totalorder %s6907_s15, 3 }
  0x10   : > { %p7001_p11 = por %p106_p7, %p34_p0  ;;  %p7005_p12 = por %p112_p8, %p40_p3 }
  0x11   : > { %p7009_p13 = pnand %p6144_p9, %p119_p10  ;;  %s6909_s27 = smov [#allocation7]  }
  0x12   : > { %s10273_s24 = scalar_select %p7001_p11, 1, 0 }
  0x13   : > { %s10274_s25 = scalar_select %p7005_p12, 1, 0 }
  0x14   : > { %s10275_s26 = scalar_select %p7009_p13, 1, 0 }
  0x15   : > { %p6651_p2 = pneg %p7009_p13  ;;  %s132_s28 = sshll.u32 %s6909_s27, 4  ;;  %s133_s28 = int_to_ptr.vmem [resolvable:$true] %s132_s28 }
  0x16   : > { %p6668_p4 = scmp.lt.s32.totalorder %s6907_s15, 2  ;;  %p10276_p0 = scmp.eq.s32.totalorder %s6970_s16, 0 }
  0x17   : > { %s6910_s4 = smov [#allocation9]   ;;  %s6751_s8 = scalar_lea.hbm %s10175_s1, 64 }
  0x18   : > { %p7019_p7 = pnand %p6651_p2, %p10276_p0  ;;  %p7025_p3 = pnand %p6668_p4, %p6988_p5 }
  0x19   : > { %s143_s5 = sshll.u32 %s6910_s4, 4  ;;  %p6752_p8 = scmp.ne.s32.totalorder %s10175_s1, %s6751_s8  ;;  %s7029_s5 = int_to_ptr.vmem [resolvable:$true] %s143_s5 }
  0x1a   : > { %s10278_s30 = scalar_select %p7025_p3, 1, 0 }
  0x1b   : > { %p6753_p9 = pneg %p7019_p7  ;;  %p6758_p10 = scmp.lt.u32.totalorder %s6751_s8, %s10175_s1 }
  0x1d   : > { %p6754_p4 = pnand %p6753_p9, %p6752_p8 }
  0x1f   : > { %p6755_p5 = pneg %p6754_p4 }
  0x21   : > { %p6760_p2 = pnand %p6758_p10, %p6755_p5 }
  0x23   : > { %6763 = shalt.err (!%p6760_p2)
}
  0x24   : > { %s6764_s19 = scalar_lea.vmem %s133_s28, 64  ;;  %p6772_p11 = scmp.lt.s32.totalorder %s133_s28, %s133_s28 }
  0x25   : > { %p6765_p0 = scmp.ne.s32.totalorder %s133_s28, %s6764_s19  ;;  %p6773_p6 = scmp.lt.s32.totalorder %s6764_s19, %s6764_s19 }
  0x27   : > { %p6767_p1 = pnand %p6765_p0, %p6753_p9  ;;  %p6774_p13 = por %p6773_p6, %p6772_p11 }
  0x29   : > { %p6768_p12 = pneg %p6767_p1 }
  0x2b   : > { %p6775_p3 = pnand %p6774_p13, %p6768_p12 }
  0x2d   : > { %6778 = shalt.err (!%p6775_p3)
}
  0x2e   : > { %6654 = dma.hbm_to_vmem [thread:$0]  (!%p7019_p7), %s10175_s1, 64, %s133_s28, [#allocation8]  }
  0x2f   : > { %s154_s27 = sand.u32 1, %s6903_s14   ;;  %s6779_s7 = scalar_lea.hbm %s10176_s2, 128 }
  0x30   : > { %p6780_p1 = scmp.ne.s32.totalorder %s10176_s2, %s6779_s7  ;;  %p6786_p12 = scmp.lt.u32.totalorder %s6779_s7, %s10176_s2 }
  0x32   : > { %p6782_p6 = pnand %p6780_p1, %p6753_p9 }
  0x34   : > { %p6783_p11 = pneg %p6782_p6 }
  0x36   : > { %p6788_p13 = pnand %p6786_p12, %p6783_p11 }
  0x38   : > { %6791 = shalt.err (!%p6788_p13)
}
  0x39   : > { %s6792_s28 = scalar_lea.vmem %s7029_s5, 128  ;;  %p6800_p5 = scmp.lt.s32.totalorder %s7029_s5, %s7029_s5 }
  0x3a   : > { %p6793_p3 = scmp.ne.s32.totalorder %s7029_s5, %s6792_s28  ;;  %p6801_p10 = scmp.lt.s32.totalorder %s6792_s28, %s6792_s28 }
  0x3c   : > { %p6795_p8 = pnand %p6793_p3, %p6753_p9  ;;  %p6802_p2 = por %p6801_p10, %p6800_p5 }
  0x3e   : > { %p6796_p4 = pneg %p6795_p8 }
  0x40   : > { %p6803_p0 = pnand %p6802_p2, %p6796_p4 }
  0x42   : > { %6806 = shalt.err (!%p6803_p0)
}
  0x43   : > { %6657 = dma.hbm_to_vmem [thread:$0]  (!%p7019_p7), %s10176_s2, 128, %s7029_s5, [#allocation8]  }
  0x44   : > { %s6148_s20 = sshll.u32 %s154_s27, 7  ;;  %s6476_s22 = sshll.u32 %s6907_s15, 11 }
  0x45   : > { %s7083_s7 = scalar_lea.hbm %s10174_s0, %s6476_s22  ;;  %s158_s29 = scalar_lea.vmem [#allocation4], %s6148_s20 }
  0x46   : > { %s166_s8 = sshll.u32 %s158_s29, 4  ;;  %s7087_s9 = scalar_lea.sflag [#allocation5], %s154_s27  ;;  %s7085_s8 = int_to_ptr.vmem [resolvable:$true] %s166_s8 }
  0x47   : > { %s6807_s10 = scalar_lea.hbm %s7083_s7, 2048  ;;  %p10279_p7 = scmp.ne.s32.totalorder %s10278_s30, 0 }
  0x48   : > { %p6808_p9 = scmp.ne.s32.totalorder %s7083_s7, %s6807_s10  ;;  %s6812_s28 = scalar_lea.hbm %s10174_s0, 4096 }
  0x49   : > { %p6809_p1 = pneg %p10279_p7  ;;  %p6813_p12 = scmp.lt.u32.totalorder %s7083_s7, %s10174_s0 }
  0x4a   : > { %p6814_p13 = scmp.lt.u32.totalorder %s6812_s28, %s6807_s10  ;;  %p6816_p8 = scmp.lt.u32.totalorder %s6807_s10, %s7083_s7 }
  0x4b   : > { %p6810_p6 = pnand %p6809_p1, %p6808_p9 }
  0x4c   : > { %p6815_p3 = por %p6814_p13, %p6813_p12 }
  0x4d   : > { %p6811_p11 = pneg %p6810_p6 }
  0x4e   : > { %p6817_p4 = por %p6816_p8, %p6815_p3 }
  0x50   : > { %p6818_p5 = pnand %p6817_p4, %p6811_p11 }
  0x52   : > { %6821 = shalt.err (!%p6818_p5)
}
  0x53   : > { %s6822_s27 = scalar_lea.vmem %s7085_s8, 2048  ;;  %s6911_s20 = smov [#allocation4]  }
  0x54   : > { %p6823_p10 = scmp.ne.s32.totalorder %s7085_s8, %s6822_s27  ;;  %s6827_s22 = sshll.u32 %s6911_s20, 4  ;;  %s6828_s22 = int_to_ptr.vmem [resolvable:$false] %s6827_s22 }
  0x55   : > { %s6829_s4 = scalar_lea.vmem %s6828_s22, 4096  ;;  %p6830_p9 = scmp.lt.s32.totalorder %s7085_s8, %s6828_s22 }
  0x56   : > { %p6825_p2 = pnand %p6823_p10, %p6809_p1  ;;  %p6831_p6 = scmp.lt.s32.totalorder %s6829_s4, %s6822_s27 }
  0x58   : > { %p6826_p0 = pneg %p6825_p2  ;;  %p6832_p12 = por %p6831_p6, %p6830_p9 }
  0x5a   : > { %p6833_p13 = pnand %p6832_p12, %p6826_p0 }
  0x5c   : > { %6836 = shalt.err (!%p6833_p13)
}
  0x5d   : > { %s6912_s6 = smov 128   ;;  %s6913_s29 = smov 8  }
  0x5e   : > { %6661 = dma.hbm_to_vmem [thread:$0]  (!%p10279_p7), %s7083_s7, 2048, %s7085_s8, %s7087_s9, %s6912_s6, %s6912_s6, %s6913_s29  }
  0x5f   : > { %p10280_p1 = scmp.ne.s32.totalorder %s10275_s26, 0 }
  0x61   : > { %178 = sbr.rel (%p10280_p1) target bundleno = 1653 (0x675), region = 32 }
  0x68   : > { %s7118_s10 = sand.u32 1, %s6899_s13   ;;  %p10281_p11 = scmp.ne.s32.totalorder %s10272_s23, 0 }
  0x69   : > { %s6153_s5 = sshll.u32 %s7118_s10, 7  ;;  %s181_s11 = scalar_lea.sflag [#allocation5], %s7118_s10 }
  0x6a   : > { %s7122_s28 = scalar_lea.vmem [#allocation4], %s6153_s5 }
  0x6b   : > { %6882 = dma.done.wait (%p10281_p11), %s181_s11, 2048  }
  0x6c   : > { %6884 = vsyncadd (%p10281_p11), %s181_s11, 4294965248  ;;  %p10282_p7 = scmp.eq.s32.totalorder %s6970_s16, 0 }
  0x6e   : > { %6886 = dma.done.wait (%p10282_p7), [#allocation8], 192   ;;  %p10283_p3 = pmov %p10282_p7 }
  0x6f   : > { %vm221_vm0 = vcmask 139264   ;;  %vm218_vm1 = vcmask 142336   ;;  %v6914_v0 = vmov 0   ;;  %v245_v1 = vld [vmem:[%s7122_s28 + $0x8] sm:$0xff]  ;;  %v244_v2 = vld [vmem:[%s7122_s28] sm:$0xff]  ;;  %v246_v3 = vld [vmem:[%s7122_s28 + $0x10] sm:$0xff] }
  0x70   : > { %6888 = vsyncadd (%p10283_p3), [#allocation8], 4294967104  ;;  %5981 = vmatprep.mubr.bf16.mxu0 %v6914_v0  ;;  %6022 = vmatprep.mubr.bf16.mxu1 %v6914_v0  ;;  %222 = vst.msk [vmem:[#allocation2 + $0x8] sm:$0x1] %vm221_vm0, %v6914_v0  ;;  %v6478_v4 = vpack.c.bf16 %v245_v1, %v245_v1  ;;  %v6477_v5 = vpack.c.bf16 %v244_v2, %v244_v2  ;;  %v248_v7 = vld [vmem:[%s7122_s28 + $0x20] sm:$0xff]  ;;  %v247_v8 = vld [vmem:[%s7122_s28 + $0x18] sm:$0xff] }
  0x71   : > { %225 = vst.msk [vmem:[#allocation2 + $0x14] sm:$0x1] %vm221_vm0, %v6914_v0  ;;  %228 = vst.msk [vmem:[#allocation2 + $0x20] sm:$0x1] %vm221_vm0, %v6914_v0  ;;  %6722 = vset.pattern.permute.xlu0 %v6914_v0  ;;  %v6479_v6 = vpack.c.bf16 %v246_v3, %v246_v3  ;;  %v249_v9 = vld [vmem:[%s7122_s28 + $0x28] sm:$0xff]  ;;  %v6481_v10 = vpack.c.bf16 %v248_v7, %v248_v7  ;;  %v6480_v11 = vpack.c.bf16 %v247_v8, %v247_v8  ;;  %v250_v16 = vld [vmem:[%s7122_s28 + $0x30] sm:$0xff] }
  0x72   : > { %231 = vst.msk [vmem:[#allocation2 + $0x2c] sm:$0x1] %vm221_vm0, %v6914_v0  ;;  %234 = vst.msk [vmem:[#allocation2 + $0x38] sm:$0x1] %vm221_vm0, %v6914_v0  ;;  %v6482_v12 = vpack.c.bf16 %v249_v9, %v249_v9  ;;  %v320_v13 = vshrl.u32 %v6478_v4, 16  ;;  %v312_v14 = vshrl.u32 %v6477_v5, 16  ;;  %v6483_v27 = vpack.c.bf16 %v250_v16, %v250_v16 }
  0x73   : > { %237 = vst.msk [vmem:[#allocation2 + $0x44] sm:$0x1] %vm221_vm0, %v6914_v0  ;;  %240 = vst.msk [vmem:[#allocation2 + $0x50] sm:$0x1] %vm221_vm0, %v6914_v0  ;;  %v315_v15 = vshll.u32 %v6477_v5, 16  ;;  %v329_v17 = vshrl.u32 %v6479_v6, 16 }
  0x74   : > { %243 = vst.msk [vmem:[#allocation2 + $0x5c] sm:$0x1] %vm221_vm0, %v6914_v0  ;;  %v332_v18 = vshll.u32 %v6479_v6, 16  ;;  %v346_v19 = vshrl.u32 %v6481_v10, 16  ;;  %v349_v20 = vshll.u32 %v6481_v10, 16  ;;  %v322_v21 = vrot.slane %v320_v13, 7 }
  0x75   : > { %219 = vst.msk [vmem:[#allocation2] sm:$0xf] %vm218_vm1, %v6914_v0  ;;  %220 = vst.msk [vmem:[#allocation2 + $0x4] sm:$0xf] %vm218_vm1, %v6914_v0  ;;  %v314_v22 = vrot.slane %v312_v14, 7  ;;  %v337_v23 = vshrl.u32 %v6480_v11, 16 }
  0x76   : > { %223 = vst.msk [vmem:[#allocation2 + $0xc] sm:$0xf] %vm218_vm1, %v6914_v0  ;;  %224 = vst.msk [vmem:[#allocation2 + $0x10] sm:$0xf] %vm218_vm1, %v6914_v0  ;;  %v354_v24 = vshrl.u32 %v6482_v12, 16  ;;  %v331_v25 = vrot.slane %v329_v17, 7 }
  0x77   : > { %226 = vst.msk [vmem:[#allocation2 + $0x18] sm:$0xf] %vm218_vm1, %v6914_v0  ;;  %227 = vst.msk [vmem:[#allocation2 + $0x1c] sm:$0xf] %vm218_vm1, %v6914_v0  ;;  %v348_v26 = vrot.slane %v346_v19, 7  ;;  %v327_v28 = vrot.slane %v322_v21, 4  ;;  %v317_v29 = vor.u32 %v315_v15, %v314_v22 }
  0x78   : > { %229 = vst.msk [vmem:[#allocation2 + $0x24] sm:$0xf] %vm218_vm1, %v6914_v0  ;;  %230 = vst.msk [vmem:[#allocation2 + $0x28] sm:$0xf] %vm218_vm1, %v6914_v0  ;;  %v323_v30 = vshll.u32 %v6478_v4, 16  ;;  %v334_v31 = vor.u32 %v332_v18, %v331_v25  ;;  %v251_v32 = vld [vmem:[%s7122_s28 + $0x38] sm:$0xff] }
  0x79   : > { %232 = vst.msk [vmem:[#allocation2 + $0x30] sm:$0xf] %vm218_vm1, %v6914_v0  ;;  %233 = vst.msk [vmem:[#allocation2 + $0x34] sm:$0xf] %vm218_vm1, %v6914_v0  ;;  %s6915_s23 = smov 1   ;;  %v351_v33 = vor.u32 %v349_v20, %v348_v26  ;;  %v339_v34 = vrot.slane %v337_v23, 7  ;;  %v6484_v38 = vpack.c.bf16 %v251_v32, %v251_v32 }
  0x7a   : > { %235 = vst.msk [vmem:[#allocation2 + $0x3c] sm:$0xf] %vm218_vm1, %v6914_v0  ;;  %236 = vst.msk [vmem:[#allocation2 + $0x40] sm:$0xf] %vm218_vm1, %v6914_v0  ;;  %451 = vrot.lane.b32.xlu1 %v327_v28, %s6915_s23  ;;  %447 = vrot.lane.b32.xlu0 %v317_v29, %s6915_s23  ;;  %v356_v35 = vrot.slane %v354_v24, 7  ;;  %v363_v36 = vshrl.u32 %v6483_v27, 16  ;;  %v325_v40 = vor.u32 %v323_v30, %v322_v21 }
  0x7b   : > { %238 = vst.msk [vmem:[#allocation2 + $0x48] sm:$0xf] %vm218_vm1, %v6914_v0  ;;  %239 = vst.msk [vmem:[#allocation2 + $0x4c] sm:$0xf] %vm218_vm1, %v6914_v0  ;;  %v252_v37 = vld [vmem:[%s7122_s28 + $0x40] sm:$0xff]  ;;  %v253_v39 = vld [vmem:[%s7122_s28 + $0x48] sm:$0xff] }
  0x7c   : > { %241 = vst.msk [vmem:[#allocation2 + $0x54] sm:$0xf] %vm218_vm1, %v6914_v0  ;;  %242 = vst.msk [vmem:[#allocation2 + $0x58] sm:$0xf] %vm218_vm1, %v6914_v0  ;;  %vm308_vm2 = vsmask.f32 256  ;;  %v6485_v47 = vpack.c.bf16 %v252_v37, %v252_v37  ;;  %v6486_v51 = vpack.c.bf16 %v253_v39, %v253_v39 }
  0x7d   : > { %vm309_vm3 = vsmask.f32 4368  ;;  %v318_v41 = vrot.slane %v314_v22, 4  ;;  %v366_v42 = vshll.u32 %v6483_v27, 16  ;;  %v357_v43 = vshll.u32 %v6482_v12, 16  ;;  %v254_v62 = vld [vmem:[%s7122_s28 + $0x50] sm:$0xff] }
  0x7e   : > { %453 = vrot.lane.b32.xlu1 %v334_v31, %s6915_s23  ;;  %459 = vrot.lane.b32.xlu0 %v351_v33, %s6915_s23  ;;  %v344_v44 = vrot.slane %v339_v34, 4  ;;  %v361_v45 = vrot.slane %v356_v35, 4  ;;  %v365_v46 = vrot.slane %v363_v36, 7  ;;  %vm7163_vm4 = vmor %vm308_vm2, %vm309_vm3  ;;  %v340_v49 = vshll.u32 %v6480_v11, 16  ;;  %v255_v63 = vld [vmem:[%s7122_s28 + $0x58] sm:$0xff]  ;;  %v256_v9 = vld [vmem:[%s7122_s28 + $0x60] sm:$0xff] }
  0x7f   : > { %v371_v50 = vshrl.u32 %v6484_v38, 16  ;;  %v352_v52 = vrot.slane %v348_v26, 4  ;;  %v359_v53 = vor.u32 %v357_v43, %v356_v35  ;;  %v326_v55 = vsel %vm7163_vm4, %v318_v41, %v325_v40  ;;  %v257_v10 = vld [vmem:[%s7122_s28 + $0x68] sm:$0xff]  ;;  %v258_v28 = vld [vmem:[%s7122_s28 + $0x70] sm:$0xff]  ;;  %v259_v29 = vld [vmem:[%s7122_s28 + $0x78] sm:$0xff]  ;;  %s6916_s26 = smov 127  }
  0x80   : > { %v368_v54 = vor.u32 %v366_v42, %v365_v46  ;;  %v335_v56 = vrot.slane %v331_v25, 4  ;;  %v380_v57 = vshrl.u32 %v6485_v47, 16  ;;  %v342_v58 = vor.u32 %v340_v49, %v339_v34  ;;  %v522_v48 = vld [vmem:[#allocation2] sm:$0xf]  ;;  %s6917_s30 = smov 126   ;;  %s6920_s7 = smov 32  }
  0x81   : > { %v373_v59 = vrot.slane %v371_v50, 7  ;;  %v374_v60 = vshll.u32 %v6484_v38, 16  ;;  %v388_v61 = vshrl.u32 %v6486_v51, 16  ;;  %v360_v0 = vsel %vm7163_vm4, %v352_v52, %v359_v53  ;;  %s6921_s8 = smov 64   ;;  %s6922_s9 = smov 96  }
  0x82   : > { %457 = vrot.lane.b32.xlu1 %v344_v44, %s6915_s23  ;;  %463 = vrot.lane.b32.xlu0 %v361_v45, %s6915_s23  ;;  %v369_v1 = vrot.slane %v365_v46, 4  ;;  %v382_v2 = vrot.slane %v380_v57, 7  ;;  %v6487_v3 = vpack.c.bf16 %v254_v62, %v254_v62  ;;  %v6488_v4 = vpack.c.bf16 %v255_v63, %v255_v63  ;;  %s6923_s17 = smov 16   ;;  %s6924_s19 = smov 48  }
  0x83   : > { %v343_v5 = vsel %vm7163_vm4, %v335_v56, %v342_v58  ;;  %v376_v6 = vor.u32 %v374_v60, %v373_v59  ;;  %v390_v7 = vrot.slane %v388_v61, 7  ;;  %v391_v8 = vshll.u32 %v6486_v51, 16  ;;  %v529_v60 = vld [vmem:[#allocation2 + $0x8] sm:$0x1]  ;;  %s6925_s27 = smov 80   ;;  %s6926_s20 = smov 112  }
  0x84   : > { %v383_v11 = vshll.u32 %v6485_v47, 16  ;;  %v378_v12 = vrot.slane %v373_v59, 4  ;;  %v386_v13 = vrot.slane %v382_v2, 4  ;;  %v397_v14 = vshrl.u32 %v6487_v3, 16  ;;  %s6156_s22 = sshll.u32 %s7118_s10, 5  ;;  %s6638_s29 = sshll.u32 %s6970_s16, 9 }
  0x85   : > { %v405_v15 = vshrl.u32 %v6488_v4, 16  ;;  %v377_v16 = vsel %vm7163_vm4, %v369_v1, %v376_v6  ;;  %v393_v17 = vor.u32 %v391_v8, %v390_v7  ;;  %v6489_v18 = vpack.c.bf16 %v256_v9, %v256_v9  ;;  %v536_v8 = vld [vmem:[#allocation2 + $0x14] sm:$0x1]  ;;  %v543_v9 = vld [vmem:[#allocation2 + $0x20] sm:$0x1]  ;;  %s214_s4 = scalar_lea.vmem [#allocation10], %s6156_s22  ;;  %s10129_s28 = scalar_lea.hbm %s10177_s3, %s6638_s29 }
  0x86   : > { %465 = vrot.lane.b32.xlu1 %v368_v54, %s6915_s23  ;;  %449 = vrot.lane.b32.xlu0 %v326_v55, %s6915_s23  ;;  %v6490_v19 = vpack.c.bf16 %v257_v10, %v257_v10  ;;  %v400_v20 = vshll.u32 %v6487_v3, 16  ;;  %v385_v21 = vor.u32 %v383_v11, %v382_v2  ;;  %v399_v22 = vrot.slane %v397_v14, 7  ;;  %v532_v2 = vld [vmem:[#allocation2 + $0xc] sm:$0xf]  ;;  %v539_v3 = vld [vmem:[#allocation2 + $0x18] sm:$0xf] }
  0x87   : > { %v407_v23 = vrot.slane %v405_v15, 7  ;;  %v408_v24 = vshll.u32 %v6488_v4, 16  ;;  %v394_v25 = vsel %vm7163_vm4, %v386_v13, %v393_v17  ;;  %v414_v26 = vshrl.u32 %v6489_v18, 16  ;;  %v546_v15 = vld [vmem:[#allocation2 + $0x24] sm:$0xf]  ;;  %s6051_s6 = sshll.u32 %s214_s4, 4  ;;  %s10124_s6 = int_to_ptr.vmem [resolvable:$true] %s6051_s6 }
  0x88   : > { %v422_v27 = vshrl.u32 %v6490_v19, 16  ;;  %v395_v30 = vrot.slane %v390_v7, 4  ;;  %v402_v31 = vor.u32 %v400_v20, %v399_v22  ;;  %v403_v32 = vrot.slane %v399_v22, 4  ;;  %s6037_s16 = scalar_lea.sflag [#allocation6], %s7118_s10  ;;  %p10488_p4 = scmp.ne.s32.totalorder %s10273_s24, 0 }
  0x89   : > { %v410_v33 = vor.u32 %v408_v24, %v407_v23  ;;  %v6491_v34 = vpack.c.bf16 %v258_v28, %v258_v28  ;;  %v416_v35 = vrot.slane %v414_v26, 7  ;;  %v425_v37 = vshll.u32 %v6490_v19, 16 }
  0x8a   : > { %461 = vrot.lane.b32.xlu1 %v360_v0, %s6915_s23  ;;  %455 = vrot.lane.b32.xlu0 %v343_v5, %s6915_s23  ;;  %v424_v36 = vrot.slane %v422_v27, 7  ;;  %v6492_v38 = vpack.c.bf16 %v259_v29, %v259_v29  ;;  %v412_v39 = vrot.slane %v407_v23, 4  ;;  %v417_v40 = vshll.u32 %v6489_v18, 16  ;;  %v550_v23 = vld [vmem:[#allocation2 + $0x2c] sm:$0x1] }
  0x8b   : > { %v431_v41 = vshrl.u32 %v6491_v34, 16  ;;  %v411_v42 = vsel %vm7163_vm4, %v403_v32, %v410_v33  ;;  %v420_v43 = vrot.slane %v416_v35, 4  ;;  %v434_v49 = vshll.u32 %v6491_v34, 16 }
  0x8c   : > { %v427_v44 = vor.u32 %v425_v37, %v424_v36  ;;  %v439_v45 = vshrl.u32 %v6492_v38, 16  ;;  %v419_v46 = vor.u32 %v417_v40, %v416_v35  ;;  %v442_v52 = vshll.u32 %v6492_v38, 16 }
  0x8d   : > { %v433_v47 = vrot.slane %v431_v41, 7  ;;  %v429_v54 = vrot.slane %v424_v36, 4  ;;  %vm527_vm5 = vcmask 131080   ;;  %vm519_vm6 = vcmask 134152  }
  0x8e   : > { %467 = vrot.lane.b32.xlu0 %v377_v16, %s6915_s23  ;;  %469 = vrot.lane.b32.xlu1 %v378_v12, %s6915_s23  ;;  %v428_v50 = vsel %vm7163_vm4, %v420_v43, %v427_v44  ;;  %v441_v51 = vrot.slane %v439_v45, 7  ;;  %vm520_vm7 = vsmask.f32 7938  ;;  %vm7210_vm8 = vmand %vm527_vm5, %vm308_vm2  ;;  %vm2364_vm10 = vcmask 1042432  }
  0x8f   : > { %v436_v53 = vor.u32 %v434_v49, %v433_v47  ;;  %v437_v55 = vrot.slane %v433_v47, 4  ;;  %vm7215_vm9 = vmand %vm519_vm6, %vm520_vm7  ;;  %vm2365_vm11 = vcmask 1046532   ;;  %vm1442_vm13 = vsmask.f32 3328 }
  0x90   : > { %v444_v56 = vor.u32 %v442_v52, %v441_v51  ;;  %v446_v57 = vrot.slane %v441_v51, 4  ;;  %vm7275_vm12 = vmor %vm2364_vm10, %vm2365_vm11  ;;  %vm1443_vm14 = vsmask.f32 7440  ;;  %vm823_vm0 = vcmask 130048  }
  0x91   : > { %vm7354_vm15 = vmor %vm1442_vm13, %vm1443_vm14  ;;  %vm827_vm1 = vcmask 261120   ;;  %vm830_vm2 = vcmask 392192   ;;  %vm833_vm3 = vcmask 523264   ;;  %vm839_vm5 = vcmask 785408  }
  0x92   : > { %473 = vrot.lane.b32.xlu1 %v394_v25, %s6915_s23  ;;  %471 = vrot.lane.b32.xlu0 %v385_v21, %s6915_s23  ;;  %v445_v58 = vsel %vm7163_vm4, %v437_v55, %v444_v56  ;;  %vm836_vm4 = vcmask 654336   ;;  %vm5936_vm7 = vcmask 1041408  }
  0x96   : > { %477 = vrot.lane.b32.xlu1 %v402_v31, %s6915_s23  ;;  %475 = vrot.lane.b32.xlu0 %v395_v30, %s6915_s23 }
  0x9a   : > { %481 = vrot.lane.b32.xlu1 %v412_v39, %s6915_s23  ;;  %479 = vrot.lane.b32.xlu0 %v411_v42, %s6915_s23 }
  0x9e   : > { %485 = vrot.lane.b32.xlu1 %v428_v50, %s6915_s23  ;;  %483 = vrot.lane.b32.xlu0 %v419_v46, %s6915_s23 }
  0xa2   : > { %489 = vrot.lane.b32.xlu1 %v436_v53, %s6915_s23  ;;  %487 = vrot.lane.b32.xlu0 %v429_v54, %s6915_s23 }
  0xa6   : > { %491 = vrot.lane.b32.xlu0 %v445_v58, %s6915_s23  ;;  %493 = vrot.lane.b32.xlu1 %v446_v57, %s6915_s23  ;;  %s6837_s23 = scalar_lea.vmem %s10124_s6, 512 }
  0xa7   : > { %p6838_p8 = scmp.ne.s32.totalorder %s10124_s6, %s6837_s23 }
  0xa9   : > { %p6839_p5 = pnand %p6838_p8, %p10488_p4 }
  0xab   : > { %p6840_p10 = pneg %p6839_p5 }
  0xec   : > { %v452_v62 = vpop.permute.xlu1 %451  ;;  %v448_v63 = vpop.permute.xlu0 %447 }
  0xed   : > { %v530_v0 = vsel %vm7210_vm8, %v452_v62, %v529_v60  ;;  %v523_v1 = vsel %vm7215_vm9, %v448_v63, %v522_v48 }
  0xee   : > { %531 = vst [vmem:[#allocation2 + $0x8] sm:$0x1] %v530_v0  ;;  %524 = vst [vmem:[#allocation2] sm:$0xf] %v523_v1 }
  0xf0   : > { %v454_v4 = vpop.permute.xlu1 %453  ;;  %v460_v5 = vpop.permute.xlu0 %459 }
  0xf1   : > { %v533_v6 = vsel %vm7215_vm9, %v454_v4, %v532_v2  ;;  %v540_v7 = vsel %vm7215_vm9, %v460_v5, %v539_v3 }
  0xf2   : > { %534 = vst [vmem:[#allocation2 + $0xc] sm:$0xf] %v533_v6  ;;  %541 = vst [vmem:[#allocation2 + $0x18] sm:$0xf] %v540_v7 }
  0xf4   : > { %v458_v10 = vpop.permute.xlu1 %457  ;;  %v464_v11 = vpop.permute.xlu0 %463 }
  0xf5   : > { %v537_v12 = vsel %vm7210_vm8, %v458_v10, %v536_v8  ;;  %v544_v13 = vsel %vm7210_vm8, %v464_v11, %v543_v9  ;;  %v7231_v14 = vld [vmem:[#allocation2] sm:$0xf]  ;;  %v7258_v30 = vld [vmem:[#allocation2 + $0x8] sm:$0x1] }
  0xf6   : > { %538 = vst [vmem:[#allocation2 + $0x14] sm:$0x1] %v537_v12  ;;  %545 = vst [vmem:[#allocation2 + $0x20] sm:$0x1] %v544_v13  ;;  %875 = vrot.lane.b32.xlu0 %v7231_v14, %s6916_s26  ;;  %v2372_v34 = vrot.slane %v7258_v30, 5  ;;  %v596_v40 = vshrl.u32 %v7231_v14, 16 }
  0xf7   : > { %v1447_v41 = vshll.u32 %v7231_v14, 16 }
  0xf8   : > { %v466_v16 = vpop.permute.xlu1 %465  ;;  %v450_v17 = vpop.permute.xlu0 %449  ;;  %v1446_v51 = vrot.slane %v596_v40, 4 }
  0xf9   : > { %v547_v18 = vsel %vm7215_vm9, %v466_v16, %v546_v15  ;;  %526 = vst.msk [vmem:[#allocation2 + $0x4] sm:$0xf] %vm519_vm6, %v450_v17  ;;  %v7238_v19 = vld [vmem:[#allocation2 + $0xc] sm:$0xf]  ;;  %v7244_v22 = vld [vmem:[#allocation2 + $0x18] sm:$0xf] }
  0xfa   : > { %548 = vst [vmem:[#allocation2 + $0x24] sm:$0xf] %v547_v18  ;;  %879 = vrot.lane.b32.xlu0 %v7238_v19, %s6916_s26  ;;  %v1449_v52 = vrot.slane %v1447_v41, 5  ;;  %v1467_v55 = vshll.u32 %v7238_v19, 16  ;;  %v597_v57 = vshrl.u32 %v7238_v19, 16  ;;  %v602_v3 = vshrl.u32 %v7244_v22, 16 }
  0xfb   : > { %v1487_v4 = vshll.u32 %v7244_v22, 16  ;;  %v10292_v16 = vmov 0 }
  0xfc   : > { %v462_v20 = vpop.permute.xlu1 %461  ;;  %v456_v21 = vpop.permute.xlu0 %455  ;;  %v1450_v1 = vor.u32 %v1449_v52, %v1446_v51  ;;  %v1466_v2 = vrot.slane %v597_v57, 4  ;;  %v1469_v5 = vrot.slane %v1467_v55, 5  ;;  %v10293_v16 = vsel %vm7354_vm15, 4294967295, %v10292_v16 }
  0xfd   : > { %542 = vst.msk [vmem:[#allocation2 + $0x1c] sm:$0xf] %vm519_vm6, %v462_v20  ;;  %535 = vst.msk [vmem:[#allocation2 + $0x10] sm:$0xf] %vm519_vm6, %v456_v21  ;;  %v7288_v43 = vld [vmem:[#allocation2 + $0x14] sm:$0x1] }
  0xfe   : > { %883 = vrot.lane.b32.xlu0 %v7244_v22, %s6916_s26  ;;  %v7294_v46 = vld [vmem:[#allocation2 + $0x20] sm:$0x1]  ;;  %v2379_v53 = vrot.slane %v7288_v43, 5  ;;  %10294 = vst [vmem:[#allocation14_spill] sm:$0xff] %v10293_v16  ;;  %v1486_v17 = vrot.slane %v602_v3, 4  ;;  %v1489_v18 = vrot.slane %v1487_v4, 5  ;;  %v1470_v21 = vor.u32 %v1469_v5, %v1466_v2 }
  0xff   : > { %v2386_v56 = vrot.slane %v7294_v46, 5  ;;  %v1451_v20 = vrot.slane %v1450_v1, 4  ;;  %v6918_v52 = vmov 1983009808   ;;  %v553_v4 = vld [vmem:[#allocation2 + $0x30] sm:$0xf] }
 0x100   : > { %v468_v24 = vpop.permute.xlu0 %467  ;;  %v470_v25 = vpop.permute.xlu1 %469  ;;  %v7248_v26 = vld [vmem:[#allocation2 + $0x4] sm:$0xf]  ;;  %v1490_v51 = vor.u32 %v1489_v18, %v1486_v17  ;;  %v1471_v55 = vrot.slane %v1470_v21, 4  ;;  %v557_v17 = vld [vmem:[#allocation2 + $0x38] sm:$0x1] }
 0x101   : > { %549 = vst.msk [vmem:[#allocation2 + $0x28] sm:$0xf] %vm519_vm6, %v468_v24  ;;  %v551_v27 = vsel %vm7210_vm8, %v470_v25, %v550_v23  ;;  %877 = vrot.lane.b32.xlu1 %v7248_v26, %s6916_s26  ;;  %v2369_v28 = vrot.slane %v7248_v26, 5  ;;  %v7256_v29 = vld [vmem:[#allocation2 + $0x24] sm:$0xf]  ;;  %v1452_v63 = vshll.u32 %v7248_v26, 16  ;;  %v621_v25 = vlaneseq }
 0x102   : > { %552 = vst [vmem:[#allocation2 + $0x2c] sm:$0x1] %v551_v27  ;;  %887 = vrot.lane.b32.xlu0 %v7256_v29, %s6916_s26  ;;  %v608_v6 = vshrl.u32 %v7248_v26, 16  ;;  %v1507_v13 = vshll.u32 %v7256_v29, 16  ;;  %v603_v24 = vshrl.u32 %v7256_v29, 16 }
 0x103   : > { %v2371_v31 = vrot.slane %v2369_v28, 4  ;;  %v1454_v11 = vrot.slane %v1452_v63, 5  ;;  %v7380_v63 = vshrl.u32 %v621_v25, 7  ;;  %v564_v18 = vld [vmem:[#allocation2 + $0x44] sm:$0x1] }
 0x104   : > { %v7264_v32 = vld [vmem:[#allocation2 + $0x10] sm:$0xf]  ;;  %v7266_v33 = vld [vmem:[#allocation2 + $0x1c] sm:$0xf]  ;;  %v474_v35 = vpop.permute.xlu1 %473  ;;  %v7269_v36 = vpop.permute.xlu0 %471  ;;  %v1457_v23 = vrot.slane %v608_v6, 4 }
 0x105   : > { %v2376_v37 = vrot.slane %v7264_v32, 5  ;;  %881 = vrot.lane.b32.xlu1 %v7264_v32, %s6916_s26  ;;  %v2383_v38 = vrot.slane %v7266_v33, 5  ;;  %556 = vst.msk [vmem:[#allocation2 + $0x34] sm:$0xf] %vm519_vm6, %v474_v35  ;;  %v7286_v42 = vsel %vm7275_vm12, %v2371_v31, %v2372_v34  ;;  %v1472_v12 = vshll.u32 %v7264_v32, 16 }
 0x106   : > { %1159 = vrot.lane.b32.xlu0 %v7231_v14, %s6917_s30  ;;  %v1492_v27 = vshll.u32 %v7266_v33, 16  ;;  %v609_v31 = vshrl.u32 %v7264_v32, 16  ;;  %v7371_v35 = vsel %vm7354_vm15, %v1451_v20, %v1454_v11 }
 0x107   : > { %v2378_v45 = vrot.slane %v2376_v37, 4  ;;  %v2385_v50 = vrot.slane %v2383_v38, 4  ;;  %v1474_v41 = vrot.slane %v1472_v12, 5  ;;  %v1491_v12 = vrot.slane %v1490_v51, 4 }
 0x108   : > { %v7290_v44 = vld [vmem:[#allocation2 + $0x28] sm:$0xf]  ;;  %v7296_v47 = vpop.permute.xlu1 %477  ;;  %v7298_v49 = vpop.permute.xlu0 %475  ;;  %v7382_v1 = vrot.slane %v1492_v27, 5  ;;  %v1477_v2 = vrot.slane %v609_v31, 4  ;;  %v554_v27 = vsel %vm7215_vm9, %v7269_v36, %v553_v4 }
 0x109   : > { %885 = vrot.lane.b32.xlu1 %v7266_v33, %s6916_s26  ;;  %v2390_v54 = vrot.slane %v7290_v44, 5  ;;  %v7315_v58 = vsel %vm7275_vm12, %v2378_v45, %v2379_v53  ;;  %v7317_v60 = vld [vmem:[#allocation2 + $0x2c] sm:$0x1]  ;;  %v7326_v0 = vsel %vm7275_vm12, %v2385_v50, %v2386_v56  ;;  %v1506_v45 = vrot.slane %v603_v24, 4  ;;  %555 = vst [vmem:[#allocation2 + $0x30] sm:$0xf] %v554_v27 }
 0x10a   : > { %1163 = vrot.lane.b32.xlu0 %v7238_v19, %s6917_s30  ;;  %v2393_v8 = vrot.slane %v7317_v60, 5  ;;  %v1509_v50 = vrot.slane %v1507_v13, 5  ;;  %v7377_v53 = vunpack.c.l.s4 %v6918_v52  ;;  %v1458_v56 = vor.u32 %v1457_v23, %v1454_v11  ;;  %v560_v11 = vld [vmem:[#allocation2 + $0x3c] sm:$0xf] }
 0x10b   : > { %v2392_v7 = vrot.slane %v2390_v54, 4  ;;  %v1461_v13 = vshll.u32 %v7258_v30, 16  ;;  %v7406_v51 = vsel %vm7354_vm15, %v1491_v12, %v7382_v1  ;;  %v1478_v30 = vor.u32 %v1477_v2, %v1474_v41 }
 0x10c   : > { %v7319_v48 = vpop.permute.xlu1 %481  ;;  %v480_v62 = vpop.permute.xlu0 %479  ;;  %v620_v21 = vunpack.c.0.s8 %v7377_v53  ;;  %v1459_v23 = vrot.slane %v1458_v56, 4  ;;  %v615_v52 = vshrl.u32 %v7290_v44, 16  ;;  %v561_v53 = vsel %vm7215_vm9, %v7296_v47, %v560_v11 }
 0x10d   : > { %889 = vrot.lane.b32.xlu1 %v7290_v44, %s6916_s26  ;;  %563 = vst.msk [vmem:[#allocation2 + $0x40] sm:$0xf] %vm519_vm6, %v480_v62  ;;  %v7347_v15 = vsel %vm7275_vm12, %v2392_v7, %v2393_v8  ;;  %v614_v62 = vshrl.u32 %v7266_v33, 16  ;;  %v7390_v7 = vsel %vm7354_vm15, %v1471_v55, %v1474_v41  ;;  %v1510_v8 = vor.u32 %v1509_v50, %v1506_v45  ;;  %v567_v45 = vld [vmem:[#allocation2 + $0x48] sm:$0xf] }
 0x10e   : > { %1167 = vrot.lane.b32.xlu0 %v7244_v22, %s6917_s30  ;;  %v574_v50 = vld [vmem:[#allocation2 + $0x54] sm:$0xf]  ;;  %v571_v55 = vld [vmem:[#allocation2 + $0x50] sm:$0x1]  ;;  %562 = vst [vmem:[#allocation2 + $0x3c] sm:$0xf] %v561_v53  ;;  %v558_v4 = vsel %vm7210_vm8, %v7298_v49, %v557_v17  ;;  %v565_v41 = vsel %vm7210_vm8, %v7319_v48, %v564_v18  ;;  %v613_v61 = vpack.i.b16 %v7290_v44, %v7266_v33 }
 0x10f   : > { %v1497_v25 = vrot.slane %v614_v62, 4  ;;  %v1511_v36 = vrot.slane %v1510_v8, 4  ;;  %v1463_v2 = vrot.slane %v1461_v13, 5  ;;  %v1481_v47 = vshll.u32 %v7288_v43, 16  ;;  %559 = vst [vmem:[#allocation2 + $0x38] sm:$0x1] %v558_v4 }
 0x110   : > { %v486_v9 = vpop.permute.xlu1 %485  ;;  %v7339_v10 = vpop.permute.xlu0 %483  ;;  %566 = vst [vmem:[#allocation2 + $0x44] sm:$0x1] %v565_v41  ;;  %v1479_v12 = vrot.slane %v1478_v30, 4  ;;  %v6919_v13 = vmov 1934713408   ;;  %v6263_v27 = vrot.slane %v7231_v14, 9 }
 0x111   : > { %1161 = vrot.lane.b32.xlu1 %v7248_v26, %s6917_s30  ;;  %570 = vst.msk [vmem:[#allocation2 + $0x4c] sm:$0xf] %vm519_vm6, %v486_v9  ;;  %v1512_v9 = vshll.u32 %v7290_v44, 16  ;;  %v1498_v11 = vor.u32 %v1497_v25, %v7382_v1  ;;  %v7434_v43 = vsel %vm7354_vm15, %v1459_v23, %v1463_v2  ;;  %v636_v17 = vunpack.c.l.s4 %v6919_v13 }
 0x112   : > { %1171 = vrot.lane.b32.xlu0 %v7256_v29, %s6917_s30  ;;  %v1483_v23 = vrot.slane %v1481_v47, 5  ;;  %v607_v25 = vpack.i.b16 %v7264_v32, %v7248_v26  ;;  %v6265_v53 = vrot.slane %v7244_v22, 9  ;;  %v6266_v4 = vrot.slane %v7256_v29, 9 }
 0x113   : > { %v1514_v56 = vrot.slane %v1512_v9, 5  ;;  %v578_v9 = vld [vmem:[#allocation2 + $0x5c] sm:$0x1] }
 0x114   : > { %v7365_v34 = vpop.permute.xlu0 %487  ;;  %v490_v20 = vpop.permute.xlu1 %489  ;;  %v7461_v59 = vsel %vm7354_vm15, %v1479_v12, %v1483_v23  ;;  %v598_v12 = vpack.i.b16 %v597_v57, %v596_v40 }
 0x115   : > { %1165 = vrot.lane.b32.xlu1 %v7264_v32, %s6917_s30  ;;  %v575_v8 = vsel %vm7215_vm9, %v490_v20, %v574_v50  ;;  %v572_v48 = vsel %vm7210_vm8, %v7365_v34, %v571_v55  ;;  %v7444_v1 = vsel %vm7354_vm15, %v1511_v36, %v1514_v56  ;;  %v1501_v34 = vshll.u32 %v7294_v46, 16 }
 0x116   : > { %1793 = vrot.lane.b32.xlu0 %v7371_v35, %s6916_s26  ;;  %576 = vst [vmem:[#allocation2 + $0x54] sm:$0xf] %v575_v8  ;;  %573 = vst [vmem:[#allocation2 + $0x50] sm:$0x1] %v572_v48  ;;  %v7450_v20 = vsub.s32 %v620_v21, %v7380_v63  ;;  %v1521_v46 = vshll.u32 %v7317_v60, 16  ;;  %v6264_v50 = vrot.slane %v7238_v19, 9  ;;  %v637_v36 = vunpack.c.0.s8 %v636_v17 }
 0x117   : > { %v1503_v55 = vrot.slane %v1501_v34, 5  ;;  %v604_v48 = vpack.i.b16 %v603_v24, %v602_v3  ;;  %v616_v17 = vpack.i.b16 %v615_v52, %v614_v62 }
 0x118   : > { %v492_v5 = vpop.permute.xlu0 %491  ;;  %v494_v49 = vpop.permute.xlu1 %493  ;;  %v700_v30 = vrot.slane %v613_v61, %v7450_v20  ;;  %v692_v60 = vrot.slane %v607_v25, %v7450_v20  ;;  %v7481_v41 = vsel %vm7275_vm12, %v6264_v50, %v2376_v37  ;;  %v1523_v47 = vrot.slane %v1521_v46, 5  ;;  %v7542_v61 = vld [vmem:[#allocation2 + $0x34] sm:$0xf]  ;;  %v7552_v25 = vld [vmem:[#allocation2 + $0x40] sm:$0xf] }
 0x119   : > { %1169 = vrot.lane.b32.xlu1 %v7266_v33, %s6917_s30  ;;  %577 = vst.msk [vmem:[#allocation2 + $0x58] sm:$0xf] %vm519_vm6, %v492_v5  ;;  %v568_v5 = vsel %vm7215_vm9, %v7339_v10, %v567_v45  ;;  %v1517_v10 = vrot.slane %v615_v52, 4  ;;  %v579_v18 = vsel %vm7210_vm8, %v494_v49, %v578_v9  ;;  %v1499_v45 = vrot.slane %v1498_v11, 4  ;;  %v7562_v46 = vld [vmem:[#allocation2 + $0x3c] sm:$0xf] }
 0x11a   : > { %1797 = vrot.lane.b32.xlu0 %v7390_v7, %s6916_s26  ;;  %569 = vst [vmem:[#allocation2 + $0x48] sm:$0xf] %v568_v5  ;;  %580 = vst [vmem:[#allocation2 + $0x5c] sm:$0x1] %v579_v18  ;;  %v701_v8 = vcombine.low %v692_v60, %v700_v30  ;;  %v7491_v49 = vsel %vm7275_vm12, %v6265_v53, %v2383_v38  ;;  %v7504_v37 = vsub.s32 %v637_v36, %v7380_v63  ;;  %vm842_vm6 = vcmask 916480  }
 0x11b   : > { %v1518_v21 = vor.u32 %v1517_v10, %v1514_v56  ;;  %v7475_v56 = vsel %vm7275_vm12, %v6263_v27, %v2369_v28  ;;  %v7485_v2 = vsel %vm7354_vm15, %v1499_v45, %v1503_v55  ;;  %v7497_v28 = vsel %vm7275_vm12, %v6266_v4, %v2390_v54  ;;  %v7560_v45 = vld [vmem:[#allocation2 + $0x30] sm:$0xf] }
 0x11c   : > { %v601_v9 = vpack.i.b16 %v7256_v29, %v7244_v22  ;;  %v7513_v11 = vrot.slane %v701_v8, %v7504_v37  ;;  %v702_v54 = vcombine.high %v692_v60, %v700_v30  ;;  %v595_v63 = vpack.i.b16 %v7238_v19, %v7231_v14 }
 0x11d   : > { %1173 = vrot.lane.b32.xlu1 %v7290_v44, %s6917_s30  ;;  %v1519_v5 = vrot.slane %v1518_v21, 4  ;;  %v666_v3 = vrot.slane %v604_v48, %v7450_v20  ;;  %v658_v14 = vrot.slane %v598_v12, %v7450_v20  ;;  %v610_v27 = vpack.i.b16 %v609_v31, %v608_v6 }
 0x11e   : > { %1801 = vrot.lane.b32.xlu0 %v7406_v51, %s6916_s26  ;;  %v632_v10 = vrot.slane %v601_v9, %v7450_v20  ;;  %v6497_v22 = vcombine.high %v7513_v11, %v7513_v11  ;;  %v716_v29 = vrot.slane %v702_v54, %v7504_v37  ;;  %v624_v24 = vrot.slane %v595_v63, %v7450_v20 }
 0x11f   : > { %v7510_v38 = vsel %vm7354_vm15, %v1519_v5, %v1523_v47  ;;  %v667_v57 = vcombine.low %v658_v14, %v666_v3  ;;  %v10190_v33 = vshrl.u32 %v7542_v61, 16  ;;  %v734_v32 = vrot.slane %v616_v17, %v7450_v20  ;;  %v7592_v47 = vld [vmem:[#allocation2 + $0x4c] sm:$0xf] }
 0x120   : > { %v633_v19 = vcombine.low %v624_v24, %v632_v10  ;;  %v6183_v40 = vcombine.low %v716_v29, %v716_v29  ;;  %v634_v13 = vcombine.high %v624_v24, %v632_v10  ;;  %v6499_v18 = vcombine.high %v716_v29, %v716_v29  ;;  %v7596_v54 = vld [vmem:[#allocation2 + $0x58] sm:$0xf] }
 0x121   : > { %1795 = vrot.lane.b32.xlu1 %v7434_v43, %s6916_s26  ;;  %v675_v23 = vrot.slane %v667_v57, %v7504_v37  ;;  %v1545_v44 = vpack.i.b16 %v7510_v38, %v7485_v2  ;;  %v10188_v6 = vshrl.u32 %v7552_v25, 16  ;;  %v668_v52 = vcombine.high %v658_v14, %v666_v3  ;;  %10295 = vst [vmem:[#allocation15_spill] sm:$0xff] %v7596_v54 }
 0x122   : > { %1805 = vrot.lane.b32.xlu0 %v7444_v1, %s6916_s26  ;;  %v7545_v34 = vrot.slane %v633_v19, %v7504_v37  ;;  %v648_v26 = vrot.slane %v634_v13, %v7504_v37  ;;  %v10189_v50 = vshrl.u32 %v7560_v45, 16  ;;  %v10187_v21 = vshrl.u32 %v7562_v46, 16 }
 0x123   : > { %v6173_v31 = vcombine.low %v675_v23, %v675_v23  ;;  %v726_v30 = vrot.slane %v610_v27, %v7450_v20  ;;  %v7581_v53 = vpack.i.b16 %v10188_v6, %v10190_v33  ;;  %v1539_v55 = vpack.i.b16 %v7461_v59, %v7434_v43  ;;  %v7618_v27 = vld [vmem:[#allocation2 + $0x54] sm:$0xf] }
 0x124   : > { %v6493_v62 = vcombine.high %v7545_v34, %v7545_v34  ;;  %v7590_v36 = vpack.i.b16 %v10187_v21, %v10189_v50  ;;  %v6176_v4 = vcombine.low %v648_v26, %v648_v26  ;;  %v1632_v5 = vrot.slane %v1545_v44, %v7450_v20  ;;  %10296 = vst [vmem:[#allocation16_spill] sm:$0xff] %v7618_v27 }
 0x125   : > { %1799 = vrot.lane.b32.xlu1 %v7461_v59, %s6916_s26  ;;  %v735_v60 = vcombine.low %v726_v30, %v734_v32  ;;  %v6494_v8 = vcombine.high %v675_v23, %v675_v23  ;;  %v682_v9 = vrot.slane %v668_v52, %v7504_v37  ;;  %v1624_v48 = vrot.slane %v1539_v55, %v7450_v20  ;;  %v7616_v23 = vld [vmem:[#allocation2 + $0x48] sm:$0xf] }
 0x126   : > { %2076 = vrot.lane.b32.xlu0 %v7371_v35, %s6917_s30  ;;  %v10186_v63 = vshrl.u32 %v7592_v47, 16  ;;  %v6495_v12 = vcombine.high %v648_v26, %v648_v26  ;;  %v1535_v29 = vshrl.u32 %v7444_v1, 16  ;;  %v1529_v14 = vshrl.u32 %v7390_v7, 16 }
 0x127   : > { %v743_v10 = vrot.slane %v735_v60, %v7504_v37  ;;  %v6177_v3 = vcombine.low %v682_v9, %v682_v9  ;;  %v1633_v24 = vcombine.low %v1624_v48, %v1632_v5  ;;  %v1534_v19 = vshrl.u32 %v7406_v51, 16 }
 0x128   : > { %v1528_v57 = vshrl.u32 %v7371_v35, 16  ;;  %v1533_v13 = vpack.i.b16 %v7444_v1, %v7406_v51  ;;  %v1527_v52 = vpack.i.b16 %v7390_v7, %v7371_v35  ;;  %vm5932_vm8 = vcmask 293888  }
 0x129   : > { %1803 = vrot.lane.b32.xlu1 %v7485_v2, %s6916_s26  ;;  %v6180_v17 = vcombine.low %v743_v10, %v743_v10  ;;  %v1536_v44 = vpack.i.b16 %v1535_v29, %v1534_v19  ;;  %v7621_v26 = vrot.slane %v1633_v24, %v7504_v37  ;;  %v6498_v60 = vcombine.high %v743_v10, %v743_v10 }
 0x12a   : > { %2080 = vrot.lane.b32.xlu0 %v7390_v7, %s6917_s30  ;;  %v1530_v55 = vpack.i.b16 %v1529_v14, %v1528_v57  ;;  %v1546_v10 = vshrl.u32 %v7485_v2, 16  ;;  %v1540_v14 = vshrl.u32 %v7434_v43, 16 }
 0x12b   : > { %v6521_v35 = vcombine.high %v7621_v26, %v7621_v26 }
 0x12c   : > { %v1590_v29 = vrot.slane %v1530_v55, %v7450_v20 }
 0x12d   : > { %1807 = vrot.lane.b32.xlu1 %v7510_v38, %s6916_s26 }
 0x12e   : > { %2084 = vrot.lane.b32.xlu0 %v7406_v51, %s6917_s30  ;;  %v10185_v51 = vshrl.u32 %v7616_v23, 16 }
 0x131   : > { %2078 = vrot.lane.b32.xlu1 %v7434_v43, %s6917_s30 }
 0x132   : > { %796 = vrot.lane.b32.xlu0 %v6497_v22, %s6920_s7  ;;  %v10184_v22 = vshrl.u32 %v7596_v54, 16 }
 0x135   : > { %2082 = vrot.lane.b32.xlu1 %v7461_v59, %s6917_s30 }
 0x136   : > { %806 = vrot.lane.b32.xlu0 %v6183_v40, %s6921_s8  ;;  %v3265_v40 = vpack.i.b16 %v10184_v22, %v10186_v63 }
 0x139   : > { %2086 = vrot.lane.b32.xlu1 %v7485_v2, %s6917_s30 }
 0x13a   : > { %816 = vrot.lane.b32.xlu0 %v6499_v18, %s6922_s9  ;;  %v736_v18 = vcombine.high %v726_v30, %v734_v32  ;;  %v10183_v32 = vshrl.u32 %v7618_v27, 16  ;;  %v1564_v30 = vrot.slane %v1533_v13, %v7450_v20 }
 0x13d   : > { %761 = vrot.lane.b32.xlu1 %v6493_v62, %s6920_s7  ;;  %v6496_v62 = vcombine.high %v682_v9, %v682_v9  ;;  %v3253_v9 = vpack.i.b16 %v10183_v32, %v10185_v51 }
 0x13e   : > { %756 = vrot.lane.b32.xlu0 %v6173_v31, %s6923_s17  ;;  %v1634_v31 = vcombine.high %v1624_v48, %v1632_v5  ;;  %v750_v5 = vrot.slane %v736_v18, %v7504_v37  ;;  %v1556_v48 = vrot.slane %v1527_v52, %v7450_v20 }
 0x140   : > { %v1648_v7 = vrot.slane %v1634_v31, %v7504_v37  ;;  %v1565_v24 = vcombine.low %v1556_v48, %v1564_v30  ;;  %v6500_v18 = vcombine.high %v750_v5, %v750_v5  ;;  %v1566_v2 = vcombine.high %v1556_v48, %v1564_v30 }
 0x141   : > { %771 = vrot.lane.b32.xlu1 %v6176_v4, %s6921_s8  ;;  %v1547_v4 = vshrl.u32 %v7510_v38, 16 }
 0x142   : > { %766 = vrot.lane.b32.xlu0 %v6494_v8, %s6924_s19  ;;  %v1598_v8 = vrot.slane %v1536_v44, %v7450_v20  ;;  %v6228_v57 = vcombine.low %v1648_v7, %v1648_v7  ;;  %v6523_v44 = vcombine.high %v1648_v7, %v1648_v7  ;;  %v7665_v7 = vrot.slane %v7581_v53, %v7450_v20  ;;  %v3235_v53 = vld [vmem:[#allocation2 + $0x44] sm:$0x1] }
 0x143   : > { %v1548_v19 = vpack.i.b16 %v1547_v4, %v1546_v10  ;;  %v1580_v4 = vrot.slane %v1566_v2, %v7504_v37  ;;  %v5005_v10 = vrot.slane %v7542_v61, 5  ;;  %v3241_v2 = vld [vmem:[#allocation2 + $0x5c] sm:$0x1] }
 0x144   : > { %v1599_v13 = vcombine.low %v1590_v29, %v1598_v8  ;;  %v1600_v43 = vcombine.high %v1590_v29, %v1598_v8  ;;  %10297 = vst [vmem:[#allocation17_spill] sm:$0xff] %v7665_v7  ;;  %v7668_v8 = vrot.slane %v3265_v40, %v7450_v20  ;;  %v5026_v40 = vrot.slane %v7596_v54, 5 }
 0x145   : > { %781 = vrot.lane.b32.xlu1 %v6495_v12, %s6922_s9  ;;  %v1541_v12 = vshrl.u32 %v7461_v59, 16  ;;  %v7650_v59 = vrot.slane %v1565_v24, %v7504_v37  ;;  %v1666_v31 = vrot.slane %v1548_v19, %v7450_v20  ;;  %v6519_v29 = vcombine.high %v1580_v4, %v1580_v4  ;;  %v3232_v19 = vld [vmem:[#allocation2 + $0x38] sm:$0x1] }
 0x146   : > { %776 = vrot.lane.b32.xlu0 %v6177_v3, %s6925_s27  ;;  %v6184_v3 = vcombine.low %v750_v5, %v750_v5  ;;  %v1614_v30 = vrot.slane %v1600_v43, %v7504_v37  ;;  %10298 = vst [vmem:[#allocation18_spill] sm:$0xff] %v7668_v8  ;;  %v5012_v24 = vrot.slane %v7552_v25, 5  ;;  %v7684_v43 = vrot.slane %v3253_v9, %v7450_v20 }
 0x147   : > { %v6517_v55 = vcombine.high %v7650_v59, %v7650_v59 }
 0x148   : > { %10300 = vst [vmem:[#allocation20_spill] sm:$0xff] %v7684_v43  ;;  %v6520_v32 = vcombine.high %v1614_v30, %v1614_v30 }
 0x149   : > { %791 = vrot.lane.b32.xlu1 %v6180_v17, %s6923_s17  ;;  %v1542_v17 = vpack.i.b16 %v1541_v12, %v1540_v14 }
 0x14a   : > { %786 = vrot.lane.b32.xlu0 %v6496_v62, %s6926_s20  ;;  %v1607_v62 = vrot.slane %v1599_v13, %v7504_v37  ;;  %v5028_v13 = vrot.slane %v5026_v40, 4 }
 0x14b   : > { %v1658_v52 = vrot.slane %v1542_v17, %v7450_v20 }
 0x14c   : > { %v6518_v48 = vcombine.high %v1607_v62, %v1607_v62 }
 0x14d   : > { %801 = vrot.lane.b32.xlu1 %v6498_v60, %s6924_s19  ;;  %v6218_v60 = vcombine.low %v1607_v62, %v1607_v62  ;;  %v1667_v5 = vcombine.low %v1658_v52, %v1666_v31  ;;  %v1668_v14 = vcombine.high %v1658_v52, %v1666_v31  ;;  %v7681_v62 = vrot.slane %v7590_v36, %v7450_v20 }
 0x14e   : > { %1728 = vrot.lane.b32.xlu0 %v6521_v35, %s6920_s7  ;;  %v6221_v35 = vcombine.low %v1580_v4, %v1580_v4  ;;  %v6402_v31 = vrot.slane %v7560_v45, 9  ;;  %v6403_v52 = vrot.slane %v7562_v46, 9  ;;  %v6405_v4 = vrot.slane %v7618_v27, 9 }
 0x14f   : > { %v1675_v12 = vrot.slane %v1667_v5, %v7504_v37  ;;  %10299 = vst [vmem:[#allocation19_spill] sm:$0xff] %v7681_v62  ;;  %v5014_v5 = vrot.slane %v5012_v24, 4 }
 0x150   : > { %v7697_v22 = vsel %vm7275_vm12, %v6402_v31, %v5005_v10 }
 0x151   : > { %811 = vrot.lane.b32.xlu1 %v6184_v3, %s6925_s27  ;;  %v6222_v3 = vcombine.low %v1614_v30, %v1614_v30  ;;  %v6225_v17 = vcombine.low %v1675_v12, %v1675_v12  ;;  %10301 = vst [vmem:[#allocation21_spill] sm:$0xff] %v7697_v22  ;;  %v6522_v30 = vcombine.high %v1675_v12, %v1675_v12  ;;  %v5034_v12 = vshrl.u32 %v7697_v22, 16 }
 0x152   : > { %1738 = vrot.lane.b32.xlu0 %v6228_v57, %s6921_s8  ;;  %v5019_v57 = vrot.slane %v7592_v47, 5 }
 0x154   : > { %v5021_v9 = vrot.slane %v5019_v57, 4 }
 0x155   : > { %821 = vrot.lane.b32.xlu1 %v6500_v18, %s6926_s20  ;;  %v3238_v18 = vld [vmem:[#allocation2 + $0x50] sm:$0x1] }
 0x156   : > { %1748 = vrot.lane.b32.xlu0 %v6523_v44, %s6922_s9  ;;  %v5007_v44 = vrot.slane %v5005_v10, 4 }
 0x159   : > { %1693 = vrot.lane.b32.xlu1 %v6517_v55, %s6920_s7  ;;  %v6404_v55 = vrot.slane %v7616_v23, 9 }
 0x15a   : > { %1688 = vrot.lane.b32.xlu0 %v6218_v60, %s6923_s17  ;;  %v5008_v60 = vrot.slane %v3232_v19, 5 }
 0x15b   : > { %v7705_v19 = vsel %vm7275_vm12, %v6404_v55, %v5019_v57 }
 0x15c   : > { %10303 = vst [vmem:[#allocation23_spill] sm:$0xff] %v7705_v19  ;;  %v7715_v10 = vsel %vm7275_vm12, %v5007_v44, %v5008_v60 }
 0x15d   : > { %1703 = vrot.lane.b32.xlu1 %v6221_v35, %s6921_s8  ;;  %v5015_v35 = vrot.slane %v3235_v53, 5  ;;  %v7709_v53 = vsel %vm7275_vm12, %v6405_v4, %v5026_v40  ;;  %10305 = vst [vmem:[#allocation25_spill] sm:$0xff] %v7715_v10  ;;  %v5046_v44 = vshrl.u32 %v7715_v10, 16 }
 0x15e   : > { %1698 = vrot.lane.b32.xlu0 %v6518_v48, %s6924_s19  ;;  %v5022_v48 = vrot.slane %v3238_v18, 5  ;;  %10304 = vst [vmem:[#allocation24_spill] sm:$0xff] %v7709_v53  ;;  %v5040_v18 = vshrl.u32 %v7705_v19, 16 }
 0x160   : > { %v7723_v57 = vsel %vm7275_vm12, %v5021_v9, %v5022_v48 }
 0x161   : > { %1713 = vrot.lane.b32.xlu1 %v6519_v29, %s6922_s9  ;;  %v5029_v29 = vrot.slane %v3241_v2, 5  ;;  %10307 = vst [vmem:[#allocation27_spill] sm:$0xff] %v7723_v57  ;;  %v5041_v2 = vshrl.u32 %v7709_v53, 16 }
 0x162   : > { %1708 = vrot.lane.b32.xlu0 %v6222_v3, %s6925_s27  ;;  %v7701_v3 = vsel %vm7275_vm12, %v6403_v52, %v5012_v24  ;;  %v7719_v24 = vsel %vm7275_vm12, %v5014_v5, %v5015_v35 }
 0x163   : > { %10302 = vst [vmem:[#allocation22_spill] sm:$0xff] %v7701_v3  ;;  %10306 = vst [vmem:[#allocation26_spill] sm:$0xff] %v7719_v24  ;;  %v7727_v40 = vsel %vm7275_vm12, %v5028_v13, %v5029_v29  ;;  %v5047_v39 = vshrl.u32 %v7719_v24, 16  ;;  %v5052_v13 = vshrl.u32 %v7723_v57, 16  ;;  %v5042_v35 = vpack.i.b16 %v5041_v2, %v5040_v18 }
 0x164   : > { %10308 = vst [vmem:[#allocation28_spill] sm:$0xff] %v7727_v40  ;;  %v5053_v31 = vshrl.u32 %v7727_v40, 16 }
 0x165   : > { %1723 = vrot.lane.b32.xlu1 %v6225_v17, %s6923_s17  ;;  %v1682_v17 = vrot.slane %v1668_v14, %v7504_v37  ;;  %v5035_v14 = vshrl.u32 %v7701_v3, 16  ;;  %v7755_v36 = vrot.slane %v5042_v35, %v7450_v20 }
 0x166   : > { %1718 = vrot.lane.b32.xlu0 %v6520_v32, %s6926_s20  ;;  %v5054_v9 = vpack.i.b16 %v5053_v31, %v5052_v13 }
 0x167   : > { %v6229_v52 = vcombine.low %v1682_v17, %v1682_v17  ;;  %v5036_v5 = vpack.i.b16 %v5035_v14, %v5034_v12  ;;  %v6524_v48 = vcombine.high %v1682_v17, %v1682_v17  ;;  %10310 = vst [vmem:[#allocation30_spill] sm:$0xff] %v7755_v36 }
 0x168   : > { %v7729_v32 = vpop.permute.xlu0 %875  ;;  %v7762_v12 = vrot.slane %v5054_v9, %v7450_v20 }
 0x169   : > { %1733 = vrot.lane.b32.xlu1 %v6522_v30, %s6924_s19  ;;  %v7752_v30 = vrot.slane %v5036_v5, %v7450_v20 }
 0x16a   : > { %2088 = vrot.lane.b32.xlu0 %v7444_v1, %s6917_s30  ;;  %v5048_v1 = vpack.i.b16 %v5047_v39, %v5046_v44  ;;  %10312 = vst [vmem:[#allocation32_spill] sm:$0xff] %v7762_v12 }
 0x16b   : > { %10309 = vst [vmem:[#allocation29_spill] sm:$0xff] %v7752_v30 }
 0x16c   : > { %v7746_v60 = vpop.permute.xlu0 %879  ;;  %v7759_v4 = vrot.slane %v5048_v1, %v7450_v20 }
 0x16d   : > { %1743 = vrot.lane.b32.xlu1 %v6229_v52, %s6925_s27  ;;  %v893_v14 = vpack.i.b16 %v7746_v60, %v7729_v32 }
 0x16e   : > { %10311 = vst [vmem:[#allocation31_spill] sm:$0xff] %v7759_v4 }
 0x16f   : > { %v922_v13 = vrot.slane %v893_v14, %v7450_v20 }
 0x170   : > { %v7749_v29 = vpop.permute.xlu0 %883 }
 0x171   : > { %1753 = vrot.lane.b32.xlu1 %v6524_v48, %s6926_s20 }
 0x173   : > { %v878_v17 = vpop.permute.xlu1 %877 }
 0x174   : > { %v7766_v18 = vpop.permute.xlu0 %887 }
 0x175   : > { %v899_v44 = vpack.i.b16 %v7766_v18, %v7749_v29  ;;  %2090 = vrot.lane.b32.xlu1 %v7510_v38, %s6917_s30 }
 0x177   : > { %v930_v31 = vrot.slane %v899_v44, %v7450_v20  ;;  %v882_v52 = vpop.permute.xlu1 %881 }
 0x178   : > { %v7778_v5 = vpop.permute.xlu0 %1159  ;;  %v905_v55 = vpack.i.b16 %v882_v52, %v878_v17 }
 0x179   : > { %v931_v35 = vcombine.low %v922_v13, %v930_v31  ;;  %v932_v1 = vcombine.high %v922_v13, %v930_v31 }
 0x17a   : > { %v990_v13 = vrot.slane %v905_v55, %v7450_v20 }
 0x17b   : > { %v886_v9 = vpop.permute.xlu1 %885  ;;  %v7781_v48 = vrot.slane %v931_v35, %v7504_v37  ;;  %v946_v39 = vrot.slane %v932_v1, %v7504_v37 }
 0x17c   : > { %v7783_v2 = vpop.permute.xlu0 %1163  ;;  %v912_v36 = vshrl.u32 %v886_v9, 16 }
 0x17d   : > { %v6501_v38 = vcombine.high %v7781_v48, %v7781_v48  ;;  %v6191_v63 = vcombine.low %v946_v39, %v946_v39  ;;  %v1177_v35 = vpack.i.b16 %v7783_v2, %v7778_v5  ;;  %v6503_v30 = vcombine.high %v946_v39, %v946_v39 }
 0x17e   : > { %v906_v39 = vshrl.u32 %v878_v17, 16  ;;  %v901_v17 = vshrl.u32 %v7766_v18, 16 }
 0x17f   : > { %v890_v14 = vpop.permute.xlu1 %889  ;;  %1059 = vrot.lane.b32.xlu1 %v6501_v38, %s6920_s7  ;;  %v1206_v4 = vrot.slane %v1177_v35, %v7450_v20 }
 0x180   : > { %v911_v44 = vpack.i.b16 %v890_v14, %v886_v9  ;;  %v7789_v51 = vpop.permute.xlu0 %1167  ;;  %v913_v38 = vshrl.u32 %v890_v14, 16 }
 0x182   : > { %v998_v31 = vrot.slane %v911_v44, %v7450_v20  ;;  %v907_v44 = vshrl.u32 %v882_v52, 16 }
 0x183   : > { %v7795_v21 = vpop.permute.xlu1 %1161  ;;  %1069 = vrot.lane.b32.xlu1 %v6191_v63, %s6921_s8 }
 0x184   : > { %v999_v1 = vcombine.low %v990_v13, %v998_v31  ;;  %v1000_v6 = vcombine.high %v990_v13, %v998_v31  ;;  %v7798_v50 = vpop.permute.xlu0 %1171  ;;  %v914_v31 = vpack.i.b16 %v913_v38, %v912_v36  ;;  %v908_v52 = vpack.i.b16 %v907_v44, %v906_v39 }
 0x185   : > { %v1183_v33 = vpack.i.b16 %v7798_v50, %v7789_v51 }
 0x186   : > { %v7803_v55 = vrot.slane %v999_v1, %v7504_v37  ;;  %v1014_v13 = vrot.slane %v1000_v6, %v7504_v37  ;;  %v1032_v8 = vrot.slane %v914_v31, %v7450_v20 }
 0x187   : > { %v1214_v12 = vrot.slane %v1183_v33, %v7450_v20  ;;  %v1166_v43 = vpop.permute.xlu1 %1165  ;;  %1079 = vrot.lane.b32.xlu1 %v6503_v30, %s6922_s9 }
 0x188   : > { %v7808_v63 = vpop.permute.xlu0 %1793  ;;  %v6505_v14 = vcombine.high %v7803_v55, %v7803_v55  ;;  %v6198_v30 = vcombine.low %v1014_v13, %v1014_v13  ;;  %v1189_v36 = vpack.i.b16 %v1166_v43, %v7795_v21 }
 0x189   : > { %v1215_v1 = vcombine.low %v1206_v4, %v1214_v12  ;;  %v1216_v62 = vcombine.high %v1206_v4, %v1214_v12  ;;  %v1024_v4 = vrot.slane %v908_v52, %v7450_v20 }
 0x18a   : > { %1094 = vrot.lane.b32.xlu0 %v6505_v14, %s6920_s7  ;;  %v6507_v14 = vcombine.high %v1014_v13, %v1014_v13  ;;  %v1274_v53 = vrot.slane %v1189_v36, %v7450_v20 }
 0x18b   : > { %v1170_v9 = vpop.permute.xlu1 %1169  ;;  %v7815_v33 = vrot.slane %v1215_v1, %v7504_v37  ;;  %v1230_v6 = vrot.slane %v1216_v62, %v7504_v37  ;;  %v1033_v31 = vcombine.low %v1024_v4, %v1032_v8  ;;  %v895_v1 = vshrl.u32 %v7746_v60, 16 }
 0x18c   : > { %v7817_v35 = vpop.permute.xlu0 %1797  ;;  %v900_v62 = vshrl.u32 %v7749_v29, 16  ;;  %v1196_v3 = vshrl.u32 %v1170_v9, 16 }
 0x18d   : > { %v6509_v7 = vcombine.high %v7815_v33, %v7815_v33  ;;  %v6206_v39 = vcombine.low %v1230_v6, %v1230_v6  ;;  %v6511_v57 = vcombine.high %v1230_v6, %v1230_v6  ;;  %v1041_v29 = vrot.slane %v1033_v31, %v7504_v37 }
 0x18e   : > { %1104 = vrot.lane.b32.xlu0 %v6198_v30, %s6921_s8  ;;  %v902_v18 = vpack.i.b16 %v901_v17, %v900_v62 }
 0x18f   : > { %v1174_v12 = vpop.permute.xlu1 %1173  ;;  %1343 = vrot.lane.b32.xlu1 %v6509_v7, %s6920_s7  ;;  %v894_v7 = vshrl.u32 %v7729_v32, 16 }
 0x190   : > { %v1195_v38 = vpack.i.b16 %v1174_v12, %v1170_v9  ;;  %v7828_v44 = vpop.permute.xlu0 %1801  ;;  %v1197_v60 = vshrl.u32 %v1174_v12, 16  ;;  %v964_v32 = vrot.slane %v902_v18, %v7450_v20  ;;  %v1034_v12 = vcombine.high %v1024_v4, %v1032_v8 }
 0x191   : > { %v896_v36 = vpack.i.b16 %v895_v1, %v894_v7  ;;  %v6195_v1 = vcombine.low %v1041_v29, %v1041_v29  ;;  %v6506_v8 = vcombine.high %v1041_v29, %v1041_v29  ;;  %v1185_v18 = vshrl.u32 %v7798_v50, 16 }
 0x192   : > { %v1282_v30 = vrot.slane %v1195_v38, %v7450_v20  ;;  %1114 = vrot.lane.b32.xlu0 %v6507_v14, %s6922_s9  ;;  %v1191_v14 = vshrl.u32 %v1166_v43, 16  ;;  %v1198_v31 = vpack.i.b16 %v1197_v60, %v1196_v3  ;;  %v1179_v29 = vshrl.u32 %v7783_v2, 16 }
 0x193   : > { %v7835_v52 = vpop.permute.xlu1 %1795  ;;  %1353 = vrot.lane.b32.xlu1 %v6206_v39, %s6921_s8  ;;  %v1190_v39 = vshrl.u32 %v7795_v21, 16  ;;  %v956_v43 = vrot.slane %v896_v36, %v7450_v20  ;;  %v1048_v21 = vrot.slane %v1034_v12, %v7504_v37  ;;  %v1184_v12 = vshrl.u32 %v7789_v51, 16 }
 0x194   : > { %v1283_v13 = vcombine.low %v1274_v53, %v1282_v30  ;;  %v1284_v40 = vcombine.high %v1274_v53, %v1282_v30  ;;  %v7839_v19 = vpop.permute.xlu0 %1805  ;;  %v1178_v50 = vshrl.u32 %v7778_v5, 16 }
 0x195   : > { %v1192_v9 = vpack.i.b16 %v1191_v14, %v1190_v39  ;;  %v965_v7 = vcombine.low %v956_v43, %v964_v32 }
 0x196   : > { %v7843_v38 = vrot.slane %v1283_v13, %v7504_v37  ;;  %v1298_v6 = vrot.slane %v1284_v40, %v7504_v37  ;;  %v1316_v40 = vrot.slane %v1198_v31, %v7450_v20  ;;  %v966_v31 = vcombine.high %v956_v43, %v964_v32 }
 0x197   : > { %v7845_v24 = vpop.permute.xlu1 %1799  ;;  %1363 = vrot.lane.b32.xlu1 %v6511_v57, %s6922_s9  ;;  %v1308_v3 = vrot.slane %v1192_v9, %v7450_v20  ;;  %v973_v36 = vrot.slane %v965_v7, %v7504_v37 }
 0x198   : > { %v7849_v17 = vpop.permute.xlu0 %2076  ;;  %v6513_v53 = vcombine.high %v7843_v38, %v7843_v38  ;;  %v6213_v30 = vcombine.low %v1298_v6, %v1298_v6  ;;  %v6515_v60 = vcombine.high %v1298_v6, %v1298_v6  ;;  %v980_v5 = vrot.slane %v966_v31, %v7504_v37 }
 0x199   : > { %v1317_v14 = vcombine.low %v1308_v3, %v1316_v40  ;;  %v6188_v6 = vcombine.low %v973_v36, %v973_v36  ;;  %v6502_v32 = vcombine.high %v973_v36, %v973_v36  ;;  %v1318_v43 = vcombine.high %v1308_v3, %v1316_v40 }
 0x19a   : > { %1378 = vrot.lane.b32.xlu0 %v6513_v53, %s6920_s7  ;;  %v6199_v53 = vcombine.low %v1048_v21, %v1048_v21  ;;  %v6192_v31 = vcombine.low %v980_v5, %v980_v5 }
 0x19b   : > { %v7857_v57 = vpop.permute.xlu1 %1803  ;;  %1089 = vrot.lane.b32.xlu1 %v6195_v1, %s6923_s17  ;;  %v1186_v1 = vpack.i.b16 %v1185_v18, %v1184_v12  ;;  %v1325_v7 = vrot.slane %v1317_v14, %v7504_v37 }
 0x19c   : > { %v7860_v62 = vpop.permute.xlu0 %2080 }
 0x19d   : > { %v1248_v2 = vrot.slane %v1186_v1, %v7450_v20  ;;  %v6210_v18 = vcombine.low %v1325_v7, %v1325_v7  ;;  %v6514_v3 = vcombine.high %v1325_v7, %v1325_v7 }
 0x19e   : > { %1388 = vrot.lane.b32.xlu0 %v6213_v30, %s6921_s8  ;;  %v6508_v30 = vcombine.high %v1048_v21, %v1048_v21  ;;  %v1817_v21 = vpack.i.b16 %v7839_v19, %v7828_v44 }
 0x19f   : > { %v7866_v4 = vpop.permute.xlu1 %1807  ;;  %1099 = vrot.lane.b32.xlu1 %v6506_v8, %s6924_s19  ;;  %v1180_v8 = vpack.i.b16 %v1179_v29, %v1178_v50  ;;  %v1332_v50 = vrot.slane %v1318_v43, %v7504_v37 }
 0x1a0   : > { %v7870_v13 = vpop.permute.xlu0 %2084  ;;  %v1848_v40 = vrot.slane %v1817_v21, %v7450_v20  ;;  %v1829_v43 = vpack.i.b16 %v7866_v4, %v7857_v57 }
 0x1a1   : > { %v1240_v14 = vrot.slane %v1180_v8, %v7450_v20  ;;  %v6504_v8 = vcombine.high %v980_v5, %v980_v5  ;;  %v6214_v22 = vcombine.low %v1332_v50, %v1332_v50  ;;  %v1823_v5 = vpack.i.b16 %v7845_v24, %v7835_v52 }
 0x1a2   : > { %1398 = vrot.lane.b32.xlu0 %v6515_v60, %s6922_s9 }
 0x1a3   : > { %v7876_v39 = vpop.permute.xlu1 %2078  ;;  %1109 = vrot.lane.b32.xlu1 %v6199_v53, %s6925_s27  ;;  %v1811_v53 = vpack.i.b16 %v7817_v35, %v7808_v63  ;;  %v1249_v12 = vcombine.low %v1240_v14, %v1248_v2  ;;  %v1250_v21 = vcombine.high %v1240_v14, %v1248_v2  ;;  %v1916_v2 = vrot.slane %v1829_v43, %v7450_v20 }
 0x1a4   : > { %v7880_v9 = vpop.permute.xlu0 %796 }
 0x1a5   : > { %v1840_v1 = vrot.slane %v1811_v53, %v7450_v20 }
 0x1a6   : > { %1054 = vrot.lane.b32.xlu0 %v6188_v6, %s6923_s17 }
 0x1a7   : > { %v7884_v51 = vpop.permute.xlu1 %2082  ;;  %1119 = vrot.lane.b32.xlu1 %v6508_v30, %s6926_s20  ;;  %v1850_v10 = vcombine.high %v1840_v1, %v1848_v40 }
 0x1a8   : > { %v7888_v60 = vpop.permute.xlu0 %806 }
 0x1aa   : > { %1064 = vrot.lane.b32.xlu0 %v6502_v32, %s6924_s19  ;;  %v1257_v32 = vrot.slane %v1249_v12, %v7504_v37 }
 0x1ab   : > { %v7897_v29 = vpop.permute.xlu1 %2086  ;;  %1373 = vrot.lane.b32.xlu1 %v6210_v18, %s6923_s17  ;;  %v1849_v18 = vcombine.low %v1840_v1, %v1848_v40  ;;  %v1908_v1 = vrot.slane %v1823_v5, %v7450_v20 }
 0x1ac   : > { %v7900_v36 = vpop.permute.xlu0 %816  ;;  %v6203_v53 = vcombine.low %v1257_v32, %v1257_v32  ;;  %v6510_v12 = vcombine.high %v1257_v32, %v1257_v32 }
 0x1ad   : > { %v7913_v27 = vrot.slane %v1849_v18, %v7504_v37 }
 0x1ae   : > { %1074 = vrot.lane.b32.xlu0 %v6192_v31, %s6925_s27 }
 0x1af   : > { %1383 = vrot.lane.b32.xlu1 %v6514_v3, %s6924_s19  ;;  %v762_v6 = vpop.permute.xlu1 %761  ;;  %v6516_v3 = vcombine.high %v1332_v50, %v1332_v50  ;;  %v6525_v40 = vcombine.high %v7913_v27, %v7913_v27  ;;  %v1864_v50 = vrot.slane %v1850_v10, %v7504_v37 }
 0x1b0   : > { %v757_v30 = vpop.permute.xlu0 %756 }
 0x1b1   : > { %v826_v32 = vsel %vm823_vm0, %v7545_v34, %v757_v30  ;;  %v6236_v54 = vcombine.low %v1864_v50, %v1864_v50  ;;  %v1918_v34 = vcombine.high %v1908_v1, %v1916_v2 }
 0x1b2   : > { %1084 = vrot.lane.b32.xlu0 %v6504_v8, %s6926_s20  ;;  %v1264_v8 = vrot.slane %v1250_v21, %v7504_v37  ;;  %v829_v10 = vsel %vm827_vm1, %v826_v32, %v762_v6 }
 0x1b3   : > { %1393 = vrot.lane.b32.xlu1 %v6214_v22, %s6925_s27  ;;  %v772_v7 = vpop.permute.xlu1 %771 }
 0x1b4   : > { %v767_v31 = vpop.permute.xlu0 %766 }
 0x1b5   : > { %v832_v30 = vsel %vm830_vm2, %v829_v10, %v767_v31 }
 0x1b6   : > { %1338 = vrot.lane.b32.xlu0 %v6203_v53, %s6923_s17  ;;  %v1917_v53 = vcombine.low %v1908_v1, %v1916_v2 }
 0x1b7   : > { %1403 = vrot.lane.b32.xlu1 %v6516_v3, %s6926_s20  ;;  %v782_v22 = vpop.permute.xlu1 %781  ;;  %v6207_v3 = vcombine.low %v1264_v8, %v1264_v8 }
 0x1b8   : > { %v777_v14 = vpop.permute.xlu0 %776  ;;  %v7939_v16 = vrot.slane %v1917_v53, %v7504_v37 }
 0x1ba   : > { %1348 = vrot.lane.b32.xlu0 %v6510_v12, %s6924_s19  ;;  %v6529_v1 = vcombine.high %v7939_v16, %v7939_v16 }
 0x1bb   : > { %1977 = vrot.lane.b32.xlu1 %v6525_v40, %s6920_s7  ;;  %v792_v18 = vpop.permute.xlu1 %791  ;;  %v6512_v40 = vcombine.high %v1264_v8, %v1264_v8 }
 0x1bc   : > { %v847_v21 = vsel %vm823_vm0, %v7513_v11, %v792_v18  ;;  %v787_v43 = vpop.permute.xlu0 %786 }
 0x1bd   : > { %v849_v5 = vsel %vm827_vm1, %v847_v21, %v7880_v9 }
 0x1be   : > { %1358 = vrot.lane.b32.xlu0 %v6207_v3, %s6925_s27  ;;  %v6527_v3 = vcombine.high %v1864_v50, %v1864_v50  ;;  %v1932_v50 = vrot.slane %v1918_v34, %v7504_v37 }
 0x1bf   : > { %1987 = vrot.lane.b32.xlu1 %v6236_v54, %s6921_s8  ;;  %v802_v12 = vpop.permute.xlu1 %801  ;;  %v835_v54 = vsel %vm833_vm3, %v832_v30, %v772_v7 }
 0x1c0   : > { %v851_v11 = vsel %vm830_vm2, %v849_v5, %v802_v12  ;;  %v1729_v18 = vpop.permute.xlu0 %1728  ;;  %v838_v31 = vsel %vm836_vm4, %v835_v54, %v777_v14  ;;  %v6243_v10 = vcombine.low %v1932_v50, %v1932_v50  ;;  %v6531_v34 = vcombine.high %v1932_v50, %v1932_v50 }
 0x1c1   : > { %v853_v9 = vsel %vm833_vm3, %v851_v11, %v7888_v60  ;;  %v841_v7 = vsel %vm839_vm5, %v838_v31, %v782_v22 }
 0x1c2   : > { %1368 = vrot.lane.b32.xlu0 %v6512_v40, %s6926_s20  ;;  %v844_v32 = vsel %vm842_vm6, %v841_v7, %v787_v43 }
 0x1c3   : > { %1997 = vrot.lane.b32.xlu1 %v6527_v3, %s6922_s9  ;;  %v812_v6 = vpop.permute.xlu1 %811 }
 0x1c4   : > { %v855_v2 = vsel %vm836_vm4, %v853_v9, %v812_v6  ;;  %v1739_v8 = vpop.permute.xlu0 %1738  ;;  %v2094_v6 = vpack.i.b16 %v7860_v62, %v7849_v17 }
 0x1c5   : > { %v857_v53 = vsel %vm839_vm5, %v855_v2, %v7900_v36 }
 0x1c6   : > { %2012 = vrot.lane.b32.xlu0 %v6529_v1, %s6920_s7 }
 0x1c7   : > { %v822_v60 = vpop.permute.xlu1 %821 }
 0x1c8   : > { %v859_v14 = vsel %vm842_vm6, %v857_v53, %v822_v60  ;;  %v1749_v21 = vpop.permute.xlu0 %1748  ;;  %v1825_v60 = vshrl.u32 %v7845_v24, 16 }
 0x1c9   : > { %v6187_v5 = vcombine.low %v844_v32, %v859_v14  ;;  %v1830_v32 = vshrl.u32 %v7857_v57, 16  ;;  %v2123_v14 = vrot.slane %v2094_v6, %v7450_v20 }
 0x1ca   : > { %2022 = vrot.lane.b32.xlu0 %v6243_v10, %s6921_s8 }
 0x1cb   : > { %866 = vst [vmem:[#allocation3] sm:$0x33] %v6187_v5  ;;  %v1694_v12 = vpop.permute.xlu1 %1693 }
 0x1cc   : > { %v1689_v40 = vpop.permute.xlu0 %1688 }
 0x1cd   : > { %v1757_v43 = vsel %vm823_vm0, %v7650_v59, %v1689_v40  ;;  %v1831_v59 = vshrl.u32 %v7866_v4, 16 }
 0x1ce   : > { %2032 = vrot.lane.b32.xlu0 %v6531_v34, %s6922_s9  ;;  %v1759_v31 = vsel %vm827_vm1, %v1757_v43, %v1694_v12  ;;  %v1824_v34 = vshrl.u32 %v7835_v52, 16 }
 0x1cf   : > { %v1704_v22 = vpop.permute.xlu1 %1703 }
 0x1d0   : > { %v1699_v30 = vpop.permute.xlu0 %1698  ;;  %v1826_v43 = vpack.i.b16 %v1825_v60, %v1824_v34 }
 0x1d1   : > { %v1761_v50 = vsel %vm830_vm2, %v1759_v31, %v1699_v30  ;;  %v1832_v30 = vpack.i.b16 %v1831_v59, %v1830_v32  ;;  %v1813_v32 = vshrl.u32 %v7817_v35, 16 }
 0x1d3   : > { %v1714_v11 = vpop.permute.xlu1 %1713  ;;  %v1950_v31 = vrot.slane %v1832_v30, %v7450_v20 }
 0x1d4   : > { %v1709_v36 = vpop.permute.xlu0 %1708 }
 0x1d7   : > { %v1724_v3 = vpop.permute.xlu1 %1723 }
 0x1d8   : > { %v1772_v54 = vsel %vm823_vm0, %v7621_v26, %v1724_v3  ;;  %v1719_v9 = vpop.permute.xlu0 %1718 }
 0x1d9   : > { %v1774_v2 = vsel %vm827_vm1, %v1772_v54, %v1729_v18  ;;  %v1763_v18 = vsel %vm833_vm3, %v1761_v50, %v1704_v22 }
 0x1da   : > { %v1765_v40 = vsel %vm836_vm4, %v1763_v18, %v1709_v36 }
 0x1db   : > { %v1734_v1 = vpop.permute.xlu1 %1733  ;;  %v1767_v57 = vsel %vm839_vm5, %v1765_v40, %v1714_v11  ;;  %v2106_v11 = vpack.i.b16 %v7884_v51, %v7876_v39 }
 0x1dc   : > { %v1776_v7 = vsel %vm830_vm2, %v1774_v2, %v1734_v1  ;;  %v7969_v53 = vpop.permute.xlu0 %2088 }
 0x1dd   : > { %v2100_v26 = vpack.i.b16 %v7969_v53, %v7870_v13  ;;  %v1778_v5 = vsel %vm833_vm3, %v1776_v7, %v1739_v8  ;;  %v1769_v8 = vsel %vm842_vm6, %v1767_v57, %v1719_v9  ;;  %v1819_v9 = vshrl.u32 %v7839_v19, 16 }
 0x1de   : > { %v2191_v18 = vrot.slane %v2106_v11, %v7450_v20 }
 0x1df   : > { %v2131_v10 = vrot.slane %v2100_v26, %v7450_v20  ;;  %v1744_v12 = vpop.permute.xlu1 %1743 }
 0x1e0   : > { %v1780_v4 = vsel %vm836_vm4, %v1778_v5, %v1744_v12  ;;  %v1812_v5 = vshrl.u32 %v7808_v63, 16 }
 0x1e1   : > { %v2132_v3 = vcombine.low %v2123_v14, %v2131_v10  ;;  %v2133_v24 = vcombine.high %v2123_v14, %v2131_v10  ;;  %v1782_v54 = vsel %vm839_vm5, %v1780_v4, %v1749_v21  ;;  %v1942_v21 = vrot.slane %v1826_v43, %v7450_v20 }
 0x1e2   : > { %v1818_v14 = vshrl.u32 %v7828_v44, 16  ;;  %v2108_v44 = vshrl.u32 %v7884_v51, 16 }
 0x1e3   : > { %v1754_v22 = vpop.permute.xlu1 %1753  ;;  %v7986_v6 = vrot.slane %v2132_v3, %v7504_v37  ;;  %v2147_v1 = vrot.slane %v2133_v24, %v7504_v37  ;;  %v1951_v26 = vcombine.low %v1942_v21, %v1950_v31  ;;  %v1814_v3 = vpack.i.b16 %v1813_v32, %v1812_v5 }
 0x1e4   : > { %v1784_v36 = vsel %vm842_vm6, %v1782_v54, %v1754_v22  ;;  %v1820_v12 = vpack.i.b16 %v1819_v9, %v1818_v14  ;;  %v2113_v24 = vshrl.u32 %v7897_v29, 16  ;;  %v1952_v54 = vcombine.high %v1942_v21, %v1950_v31 }
 0x1e5   : > { %v6232_v2 = vcombine.low %v1769_v8, %v1784_v36  ;;  %v6533_v52 = vcombine.high %v7986_v6, %v7986_v6  ;;  %v6251_v60 = vcombine.low %v2147_v1, %v2147_v1  ;;  %v6535_v34 = vcombine.high %v2147_v1, %v2147_v1 }
 0x1e6   : > { %v1959_v30 = vrot.slane %v1951_v26, %v7504_v37  ;;  %v1882_v43 = vrot.slane %v1820_v12, %v7450_v20  ;;  %v2107_v22 = vshrl.u32 %v7876_v39, 16  ;;  %v1874_v51 = vrot.slane %v1814_v3, %v7450_v20 }
 0x1e7   : > { %v1790_v50 = vrot.slane %v6232_v2, 6  ;;  %2260 = vrot.lane.b32.xlu1 %v6533_v52, %s6920_s7  ;;  %v2091_v7 = vpop.permute.xlu1 %2090  ;;  %v1966_v31 = vrot.slane %v1952_v54, %v7504_v37  ;;  %v2096_v32 = vshrl.u32 %v7860_v62, 16  ;;  %v2101_v14 = vshrl.u32 %v7870_v13, 16 }
 0x1e8   : > { %v2112_v59 = vpack.i.b16 %v2091_v7, %v7897_v29  ;;  %v2114_v4 = vshrl.u32 %v2091_v7, 16  ;;  %v6240_v2 = vcombine.low %v1959_v30, %v1959_v30  ;;  %v2109_v29 = vpack.i.b16 %v2108_v44, %v2107_v22 }
 0x1e9   : > { %1792 = vst [vmem:[#allocation3 + $0x10] sm:$0xcc] %v1790_v50  ;;  %v1883_v52 = vcombine.low %v1874_v51, %v1882_v43  ;;  %v6530_v50 = vcombine.high %v1959_v30, %v1959_v30  ;;  %v2102_v7 = vshrl.u32 %v7969_v53, 16 }
 0x1ea   : > { %v2199_v10 = vrot.slane %v2112_v59, %v7450_v20  ;;  %v2115_v8 = vpack.i.b16 %v2114_v4, %v2113_v24  ;;  %v2225_v39 = vrot.slane %v2109_v29, %v7450_v20  ;;  %v2403_v24 = vpack.i.b16 %v7497_v28, %v7491_v49 }
 0x1eb   : > { %2270 = vrot.lane.b32.xlu1 %v6251_v60, %s6921_s8  ;;  %v1891_v59 = vrot.slane %v1883_v52, %v7504_v37  ;;  %v6244_v60 = vcombine.low %v1966_v31, %v1966_v31  ;;  %v2103_v5 = vpack.i.b16 %v2102_v7, %v2101_v14  ;;  %v2411_v14 = vshrl.u32 %v7315_v58, 16 }
 0x1ec   : > { %v2200_v40 = vcombine.low %v2191_v18, %v2199_v10  ;;  %v2201_v19 = vcombine.high %v2191_v18, %v2199_v10  ;;  %v2233_v11 = vrot.slane %v2115_v8, %v7450_v20  ;;  %v1884_v18 = vcombine.high %v1874_v51, %v1882_v43 }
 0x1ed   : > { %v2095_v10 = vshrl.u32 %v7849_v17, 16  ;;  %v6233_v53 = vcombine.low %v1891_v59, %v1891_v59  ;;  %v2165_v62 = vrot.slane %v2103_v5, %v7450_v20  ;;  %v6526_v13 = vcombine.high %v1891_v59, %v1891_v59 }
 0x1ee   : > { %v8008_v35 = vrot.slane %v2200_v40, %v7504_v37  ;;  %v2215_v57 = vrot.slane %v2201_v19, %v7504_v37  ;;  %v2234_v26 = vcombine.low %v2225_v39, %v2233_v11  ;;  %v6532_v19 = vcombine.high %v1966_v31, %v1966_v31 }
 0x1ef   : > { %2280 = vrot.lane.b32.xlu1 %v6535_v34, %s6922_s9  ;;  %v2097_v34 = vpack.i.b16 %v2096_v32, %v2095_v10  ;;  %v1898_v30 = vrot.slane %v1884_v18, %v7504_v37  ;;  %v2235_v17 = vcombine.high %v2225_v39, %v2233_v11  ;;  %v2434_v29 = vrot.slane %v2403_v24, %v7450_v20 }
 0x1f0   : > { %v6537_v63 = vcombine.high %v8008_v35, %v8008_v35  ;;  %v6258_v1 = vcombine.low %v2215_v57, %v2215_v57  ;;  %v6539_v9 = vcombine.high %v2215_v57, %v2215_v57  ;;  %v2242_v4 = vrot.slane %v2234_v26, %v7504_v37 }
 0x1f1   : > { %v8018_v36 = vpop.permute.xlu1 %1059  ;;  %v2157_v43 = vrot.slane %v2097_v34, %v7450_v20  ;;  %v2397_v57 = vpack.i.b16 %v7481_v41, %v7475_v56  ;;  %v6237_v22 = vcombine.low %v1898_v30, %v1898_v30  ;;  %v2249_v51 = vrot.slane %v2235_v17, %v7504_v37 }
 0x1f2   : > { %2295 = vrot.lane.b32.xlu0 %v6537_v63, %s6920_s7  ;;  %v6255_v44 = vcombine.low %v2242_v4, %v2242_v4  ;;  %v6528_v11 = vcombine.high %v1898_v30, %v1898_v30  ;;  %v2405_v31 = vshrl.u32 %v7497_v28, 16  ;;  %v2417_v59 = vshrl.u32 %v7347_v15, 16 }
 0x1f3   : > { %2007 = vrot.lane.b32.xlu1 %v6240_v2, %s6923_s17  ;;  %v2166_v54 = vcombine.low %v2157_v43, %v2165_v62  ;;  %v6538_v2 = vcombine.high %v2242_v4, %v2242_v4  ;;  %v2426_v52 = vrot.slane %v2397_v57, %v7450_v20  ;;  %v6259_v7 = vcombine.low %v2249_v51, %v2249_v51 }
 0x1f4   : > { %v2399_v26 = vshrl.u32 %v7481_v41, 16  ;;  %v2398_v32 = vshrl.u32 %v7475_v56, 16  ;;  %v2416_v18 = vshrl.u32 %v7326_v0, 16  ;;  %v2167_v10 = vcombine.high %v2157_v43, %v2165_v62 }
 0x1f5   : > { %v8027_v21 = vpop.permute.xlu1 %1069  ;;  %v2410_v4 = vshrl.u32 %v7286_v42, 16  ;;  %v2436_v17 = vcombine.high %v2426_v52, %v2434_v29 }
 0x1f6   : > { %2305 = vrot.lane.b32.xlu0 %v6258_v1, %s6921_s8  ;;  %v2400_v24 = vpack.i.b16 %v2399_v26, %v2398_v32 }
 0x1f7   : > { %2017 = vrot.lane.b32.xlu1 %v6530_v50, %s6924_s19  ;;  %v2174_v50 = vrot.slane %v2166_v54, %v7504_v37  ;;  %v2412_v57 = vpack.i.b16 %v2411_v14, %v2410_v4  ;;  %v2181_v54 = vrot.slane %v2167_v10, %v7504_v37 }
 0x1f9   : > { %v8039_v40 = vpop.permute.xlu1 %1079  ;;  %v6534_v43 = vcombine.high %v2174_v50, %v2174_v50  ;;  %v6536_v14 = vcombine.high %v2181_v54, %v2181_v54 }
 0x1fa   : > { %2315 = vrot.lane.b32.xlu0 %v6539_v9, %s6922_s9  ;;  %v2435_v9 = vcombine.low %v2426_v52, %v2434_v29  ;;  %v2450_v29 = vrot.slane %v2436_v17, %v7504_v37  ;;  %v2415_v17 = vpack.i.b16 %v7347_v15, %v7326_v0 }
 0x1fb   : > { %2027 = vrot.lane.b32.xlu1 %v6244_v60, %s6925_s27  ;;  %v2404_v60 = vshrl.u32 %v7491_v49, 16 }
 0x1fc   : > { %v8037_v12 = vpop.permute.xlu0 %1094  ;;  %v8082_v30 = vrot.slane %v2435_v9, %v7504_v37  ;;  %v6270_v26 = vcombine.low %v2450_v29, %v2450_v29 }
 0x1fe   : > { %1972 = vrot.lane.b32.xlu0 %v6233_v53, %s6923_s17  ;;  %v6248_v53 = vcombine.low %v2174_v50, %v2174_v50  ;;  %v2528_v50 = vrot.slane %v2412_v57, %v7450_v20 }
 0x1ff   : > { %2037 = vrot.lane.b32.xlu1 %v6532_v19, %s6926_s20  ;;  %v2406_v19 = vpack.i.b16 %v2405_v31, %v2404_v60 }
 0x200   : > { %v8051_v63 = vpop.permute.xlu0 %1104 }
 0x201   : > { %v8046_v3 = vpop.permute.xlu1 %1343 }
 0x202   : > { %1982 = vrot.lane.b32.xlu0 %v6526_v13, %s6924_s19  ;;  %v6540_v13 = vcombine.high %v2249_v51, %v2249_v51  ;;  %v6541_v51 = vcombine.high %v8082_v30, %v8082_v30 }
 0x203   : > { %2290 = vrot.lane.b32.xlu1 %v6255_v44, %s6923_s17  ;;  %v2418_v44 = vpack.i.b16 %v2417_v59, %v2416_v18 }
 0x204   : > { %v8064_v1 = vpop.permute.xlu0 %1114 }
 0x205   : > { %v8057_v8 = vpop.permute.xlu1 %1353  ;;  %v2536_v52 = vrot.slane %v2418_v44, %v7450_v20 }
 0x206   : > { %1992 = vrot.lane.b32.xlu0 %v6237_v22, %s6925_s27  ;;  %v2468_v22 = vrot.slane %v2406_v19, %v7450_v20  ;;  %v6543_v19 = vcombine.high %v2450_v29, %v2450_v29  ;;  %v2409_v29 = vpack.i.b16 %v7315_v58, %v7286_v42 }
 0x207   : > { %2300 = vrot.lane.b32.xlu1 %v6538_v2, %s6924_s19  ;;  %v2537_v60 = vcombine.low %v2528_v50, %v2536_v52 }
 0x209   : > { %v8068_v39 = vpop.permute.xlu1 %1363  ;;  %v2545_v4 = vrot.slane %v2537_v60, %v7504_v37 }
 0x20a   : > { %2002 = vrot.lane.b32.xlu0 %v6528_v11, %s6926_s20  ;;  %v2460_v11 = vrot.slane %v2400_v24, %v7450_v20 }
 0x20b   : > { %2310 = vrot.lane.b32.xlu1 %v6259_v7, %s6925_s27  ;;  %v6252_v7 = vcombine.low %v2181_v54, %v2181_v54  ;;  %v6274_v54 = vcombine.low %v2545_v4, %v2545_v4 }
 0x20c   : > { %v8078_v5 = vpop.permute.xlu0 %1378  ;;  %v2469_v9 = vcombine.low %v2460_v11, %v2468_v22 }
 0x20d   : > { %v1090_v34 = vpop.permute.xlu1 %1089 }
 0x20e   : > { %2255 = vrot.lane.b32.xlu0 %v6248_v53, %s6923_s17  ;;  %v2477_v18 = vrot.slane %v2469_v9, %v7504_v37  ;;  %v1138_v10 = vsel %vm823_vm0, %v7803_v55, %v1090_v34 }
 0x20f   : > { %2320 = vrot.lane.b32.xlu1 %v6540_v13, %s6926_s20  ;;  %v1140_v44 = vsel %vm827_vm1, %v1138_v10, %v8037_v12  ;;  %v2502_v12 = vrot.slane %v2415_v17, %v7450_v20 }
 0x210   : > { %v8086_v62 = vpop.permute.xlu0 %1388  ;;  %v6267_v34 = vcombine.low %v2477_v18, %v2477_v18 }
 0x211   : > { %v1100_v2 = vpop.permute.xlu1 %1099 }
 0x212   : > { %2265 = vrot.lane.b32.xlu0 %v6534_v43, %s6924_s19  ;;  %v1142_v57 = vsel %vm830_vm2, %v1140_v44, %v1100_v2 }
 0x213   : > { %2563 = vrot.lane.b32.xlu1 %v6541_v51, %s6920_s7  ;;  %v2538_v51 = vcombine.high %v2528_v50, %v2536_v52 }
 0x214   : > { %v8098_v31 = vpop.permute.xlu0 %1398 }
 0x215   : > { %v1110_v59 = vpop.permute.xlu1 %1109  ;;  %v2552_v60 = vrot.slane %v2538_v51, %v7504_v37 }
 0x216   : > { %2275 = vrot.lane.b32.xlu0 %v6252_v7, %s6925_s27 }
 0x217   : > { %2573 = vrot.lane.b32.xlu1 %v6270_v26, %s6921_s8  ;;  %v6546_v26 = vcombine.high %v2545_v4, %v2545_v4 }
 0x218   : > { %v1055_v32 = vpop.permute.xlu0 %1054 }
 0x219   : > { %v1123_v53 = vsel %vm823_vm0, %v7781_v48, %v1055_v32  ;;  %v1120_v13 = vpop.permute.xlu1 %1119  ;;  %v2470_v48 = vcombine.high %v2460_v11, %v2468_v22  ;;  %v6542_v11 = vcombine.high %v2477_v18, %v2477_v18  ;;  %v2494_v32 = vrot.slane %v2409_v29, %v7450_v20 }
 0x21a   : > { %2285 = vrot.lane.b32.xlu0 %v6536_v14, %s6926_s20  ;;  %v1125_v55 = vsel %vm827_vm1, %v1123_v53, %v8018_v36  ;;  %v1144_v36 = vsel %vm833_vm3, %v1142_v57, %v8051_v63 }
 0x21b   : > { %2583 = vrot.lane.b32.xlu1 %v6543_v19, %s6922_s9  ;;  %v2484_v52 = vrot.slane %v2470_v48, %v7504_v37  ;;  %v1146_v50 = vsel %vm836_vm4, %v1144_v36, %v1110_v59  ;;  %v2503_v59 = vcombine.low %v2494_v32, %v2502_v12  ;;  %v6278_v19 = vcombine.low %v2552_v60, %v2552_v60 }
 0x21c   : > { %v1065_v24 = vpop.permute.xlu0 %1064  ;;  %v1148_v63 = vsel %vm839_vm5, %v1146_v50, %v8064_v1  ;;  %v6548_v48 = vcombine.high %v2552_v60, %v2552_v60 }
 0x21d   : > { %v1127_v43 = vsel %vm830_vm2, %v1125_v55, %v1065_v24  ;;  %v1374_v7 = vpop.permute.xlu1 %1373  ;;  %v6271_v18 = vcombine.low %v2484_v52, %v2484_v52  ;;  %v1150_v10 = vsel %vm842_vm6, %v1148_v63, %v1120_v13  ;;  %v6544_v1 = vcombine.high %v2484_v52, %v2484_v52 }
 0x21e   : > { %2558 = vrot.lane.b32.xlu0 %v6267_v34, %s6923_s17  ;;  %v1129_v2 = vsel %vm833_vm3, %v1127_v43, %v8027_v21  ;;  %v8143_v55 = vrot.slane %v2503_v59, %v7504_v37  ;;  %v1422_v34 = vsel %vm823_vm0, %v7843_v38, %v1374_v7 }
 0x21f   : > { %2593 = vrot.lane.b32.xlu1 %v6274_v54, %s6923_s17  ;;  %v1424_v57 = vsel %vm827_vm1, %v1422_v34, %v8078_v5 }
 0x220   : > { %v1075_v22 = vpop.permute.xlu0 %1074  ;;  %v6545_v38 = vcombine.high %v8143_v55, %v8143_v55 }
 0x221   : > { %v1131_v9 = vsel %vm836_vm4, %v1129_v2, %v1075_v22  ;;  %v1384_v4 = vpop.permute.xlu1 %1383 }
 0x222   : > { %2568 = vrot.lane.b32.xlu0 %v6542_v11, %s6924_s19  ;;  %v1133_v14 = vsel %vm839_vm5, %v1131_v9, %v8039_v40  ;;  %v2504_v40 = vcombine.high %v2494_v32, %v2502_v12 }
 0x223   : > { %2603 = vrot.lane.b32.xlu1 %v6546_v26, %s6924_s19 }
 0x224   : > { %v1085_v21 = vpop.permute.xlu0 %1084  ;;  %v2518_v29 = vrot.slane %v2504_v40, %v7504_v37 }
 0x225   : > { %v1135_v53 = vsel %vm842_vm6, %v1133_v14, %v1085_v21  ;;  %v1394_v43 = vpop.permute.xlu1 %1393 }
 0x226   : > { %v6202_v17 = vcombine.low %v1135_v53, %v1150_v10  ;;  %2578 = vrot.lane.b32.xlu0 %v6271_v18, %s6925_s27  ;;  %v6277_v7 = vcombine.low %v2518_v29, %v2518_v29  ;;  %v6547_v9 = vcombine.high %v2518_v29, %v2518_v29 }
 0x227   : > { %2613 = vrot.lane.b32.xlu1 %v6278_v19, %s6925_s27 }
 0x228   : > { %v1156_v44 = vrot.slane %v6202_v17, 6  ;;  %v1339_v24 = vpop.permute.xlu0 %1338 }
 0x229   : > { %v1407_v13 = vsel %vm823_vm0, %v7815_v33, %v1339_v24  ;;  %v1426_v33 = vsel %vm830_vm2, %v1424_v57, %v1384_v4  ;;  %v1404_v11 = vpop.permute.xlu1 %1403 }
 0x22a   : > { %1158 = vst [vmem:[#allocation3] sm:$0xcc] %v1156_v44  ;;  %2588 = vrot.lane.b32.xlu0 %v6544_v1, %s6926_s20  ;;  %v1409_v51 = vsel %vm827_vm1, %v1407_v13, %v8046_v3  ;;  %v1428_v5 = vsel %vm833_vm3, %v1426_v33, %v8086_v62 }
 0x22b   : > { %2623 = vrot.lane.b32.xlu1 %v6548_v48, %s6926_s20  ;;  %v1430_v22 = vsel %vm836_vm4, %v1428_v5, %v1394_v43 }
 0x22c   : > { %v1349_v54 = vpop.permute.xlu0 %1348  ;;  %v1432_v52 = vsel %vm839_vm5, %v1430_v22, %v8098_v31 }
 0x22d   : > { %v1411_v12 = vsel %vm830_vm2, %v1409_v51, %v1349_v54  ;;  %v1978_v32 = vpop.permute.xlu1 %1977 }
 0x22e   : > { %2598 = vrot.lane.b32.xlu0 %v6545_v38, %s6920_s7  ;;  %v1413_v3 = vsel %vm833_vm3, %v1411_v12, %v8057_v8  ;;  %v1434_v8 = vsel %vm842_vm6, %v1432_v52, %v1404_v11 }
 0x22f   : > { %2664 = vrot.lane.b32.xlu1 %v7286_v42, %s6916_s26 }
 0x230   : > { %v1359_v36 = vpop.permute.xlu0 %1358 }
 0x231   : > { %v1415_v2 = vsel %vm836_vm4, %v1413_v3, %v1359_v36  ;;  %v1988_v63 = vpop.permute.xlu1 %1987 }
 0x232   : > { %2608 = vrot.lane.b32.xlu0 %v6277_v7, %s6921_s8  ;;  %v1417_v62 = vsel %vm839_vm5, %v1415_v2, %v8068_v39 }
 0x233   : > { %2668 = vrot.lane.b32.xlu1 %v7315_v58, %s6916_s26 }
 0x234   : > { %v1369_v50 = vpop.permute.xlu0 %1368 }
 0x235   : > { %v1419_v26 = vsel %vm842_vm6, %v1417_v62, %v1369_v50  ;;  %v1998_v14 = vpop.permute.xlu1 %1997 }
 0x236   : > { %v6217_v60 = vcombine.low %v1419_v26, %v1434_v8  ;;  %2618 = vrot.lane.b32.xlu0 %v6547_v9, %s6922_s9 }
 0x237   : > { %2672 = vrot.lane.b32.xlu1 %v7326_v0, %s6916_s26 }
 0x238   : > { %1441 = vst [vmem:[#allocation3 + $0x10] sm:$0x33] %v6217_v60  ;;  %v2013_v21 = vpop.permute.xlu0 %2012 }
 0x23a   : > { %2662 = vrot.lane.b32.xlu0 %v7475_v56, %s6916_s26 }
 0x23b   : > { %2676 = vrot.lane.b32.xlu1 %v7347_v15, %s6916_s26 }
 0x23c   : > { %v2023_v59 = vpop.permute.xlu0 %2022 }
 0x23e   : > { %2666 = vrot.lane.b32.xlu0 %v7481_v41, %s6916_s26 }
 0x23f   : > { %v6723_v39 = vld [vmem:[#allocation3 + $0x4] ss:$16 sps:$4 sm:$0xff]   ;;  %v6725_v31 = vld [vmem:[#allocation3] ss:$16 sps:$4 sm:$0xff]  }
 0x240   : > { %5949 = vmatprep.subr.bf16.mxu0 %v6723_v39  ;;  %v2033_v53 = vpop.permute.xlu0 %2032 }
 0x241   : > { %5950 = vmatpush1.bf16.msra.mxu0 %v6725_v31 }
 0x242   : > { %2670 = vrot.lane.b32.xlu0 %v7491_v49, %s6916_s26 }
 0x246   : > { %2674 = vrot.lane.b32.xlu0 %v7497_v28, %s6916_s26 }
 0x259   : > { %v2261_v18 = vpop.permute.xlu1 %2260 }
 0x25d   : > { %v2271_v10 = vpop.permute.xlu1 %2270 }
 0x261   : > { %v2281_v19 = vpop.permute.xlu1 %2280 }
 0x264   : > { %v2296_v4 = vpop.permute.xlu0 %2295 }
 0x265   : > { %v2008_v17 = vpop.permute.xlu1 %2007 }
 0x266   : > { %v2056_v13 = vsel %vm823_vm0, %v7939_v16, %v2008_v17 }
 0x267   : > { %v2058_v43 = vsel %vm827_vm1, %v2056_v13, %v2013_v21 }
 0x268   : > { %v2306_v44 = vpop.permute.xlu0 %2305 }
 0x269   : > { %v2018_v24 = vpop.permute.xlu1 %2017 }
 0x26a   : > { %v2060_v38 = vsel %vm830_vm2, %v2058_v43, %v2018_v24 }
 0x26b   : > { %v2062_v12 = vsel %vm833_vm3, %v2060_v38, %v2023_v59 }
 0x26c   : > { %v2316_v1 = vpop.permute.xlu0 %2315 }
 0x26d   : > { %v2028_v40 = vpop.permute.xlu1 %2027 }
 0x26e   : > { %v2064_v16 = vsel %vm836_vm4, %v2062_v12, %v2028_v40 }
 0x26f   : > { %v2066_v7 = vsel %vm839_vm5, %v2064_v16, %v2033_v53 }
 0x270   : > { %v1973_v34 = vpop.permute.xlu0 %1972 }
 0x271   : > { %v2041_v48 = vsel %vm823_vm0, %v7913_v27, %v1973_v34  ;;  %v2038_v57 = vpop.permute.xlu1 %2037 }
 0x272   : > { %v2043_v51 = vsel %vm827_vm1, %v2041_v48, %v1978_v32  ;;  %v2068_v11 = vsel %vm842_vm6, %v2066_v7, %v2038_v57 }
 0x274   : > { %v1983_v54 = vpop.permute.xlu0 %1982 }
 0x275   : > { %v2045_v29 = vsel %vm830_vm2, %v2043_v51, %v1983_v54  ;;  %v2291_v33 = vpop.permute.xlu1 %2290 }
 0x276   : > { %v2047_v36 = vsel %vm833_vm3, %v2045_v29, %v1988_v63  ;;  %v2339_v8 = vsel %vm823_vm0, %v8008_v35, %v2291_v33 }
 0x277   : > { %v2341_v39 = vsel %vm827_vm1, %v2339_v8, %v2296_v4 }
 0x278   : > { %v1993_v5 = vpop.permute.xlu0 %1992 }
 0x279   : > { %v2049_v27 = vsel %vm836_vm4, %v2047_v36, %v1993_v5  ;;  %v2301_v3 = vpop.permute.xlu1 %2300 }
 0x27a   : > { %v2051_v2 = vsel %vm839_vm5, %v2049_v27, %v1998_v14  ;;  %v2343_v63 = vsel %vm830_vm2, %v2341_v39, %v2301_v3 }
 0x27b   : > { %v2345_v59 = vsel %vm833_vm3, %v2343_v63, %v2306_v44 }
 0x27c   : > { %v2003_v22 = vpop.permute.xlu0 %2002 }
 0x27d   : > { %v2053_v52 = vsel %vm842_vm6, %v2051_v2, %v2003_v22  ;;  %v2311_v50 = vpop.permute.xlu1 %2310 }
 0x27e   : > { %v6247_v62 = vcombine.low %v2053_v52, %v2068_v11  ;;  %v2347_v35 = vsel %vm836_vm4, %v2345_v59, %v2311_v50 }
 0x27f   : > { %v2349_v4 = vsel %vm839_vm5, %v2347_v35, %v2316_v1 }
 0x280   : > { %2075 = vst [vmem:[#allocation3 + $0x20] sm:$0x33] %v6247_v62  ;;  %v2256_v9 = vpop.permute.xlu0 %2255 }
 0x281   : > { %v2324_v26 = vsel %vm823_vm0, %v7986_v6, %v2256_v9  ;;  %v2321_v60 = vpop.permute.xlu1 %2320 }
 0x282   : > { %v2326_v32 = vsel %vm827_vm1, %v2324_v26, %v2261_v18  ;;  %v2351_v34 = vsel %vm842_vm6, %v2349_v4, %v2321_v60 }
 0x284   : > { %v2266_v31 = vpop.permute.xlu0 %2265 }
 0x285   : > { %v2328_v21 = vsel %vm830_vm2, %v2326_v32, %v2266_v31  ;;  %v2564_v14 = vpop.permute.xlu1 %2563 }
 0x286   : > { %v2330_v17 = vsel %vm833_vm3, %v2328_v21, %v2271_v10 }
 0x288   : > { %v2276_v53 = vpop.permute.xlu0 %2275 }
 0x289   : > { %v2332_v6 = vsel %vm836_vm4, %v2330_v17, %v2276_v53  ;;  %v2574_v24 = vpop.permute.xlu1 %2573 }
 0x28a   : > { %v2334_v18 = vsel %vm839_vm5, %v2332_v6, %v2281_v19 }
 0x28c   : > { %v2286_v40 = vpop.permute.xlu0 %2285 }
 0x28d   : > { %v2336_v13 = vsel %vm842_vm6, %v2334_v18, %v2286_v40  ;;  %v2584_v48 = vpop.permute.xlu1 %2583 }
 0x28e   : > { %v6262_v57 = vcombine.low %v2336_v13, %v2351_v34 }
 0x290   : > { %v2357_v44 = vrot.slane %v6262_v57, 6  ;;  %v2559_v43 = vpop.permute.xlu0 %2558 }
 0x291   : > { %v2594_v54 = vpop.permute.xlu1 %2593  ;;  %v2627_v1 = vsel %vm823_vm0, %v8082_v30, %v2559_v43 }
 0x292   : > { %2359 = vst [vmem:[#allocation3 + $0x20] sm:$0xcc] %v2357_v44  ;;  %v2642_v19 = vsel %vm823_vm0, %v8143_v55, %v2594_v54  ;;  %v2629_v36 = vsel %vm827_vm1, %v2627_v1, %v2564_v14 }
 0x294   : > { %v2569_v10 = vpop.permute.xlu0 %2568 }
 0x295   : > { %v2604_v51 = vpop.permute.xlu1 %2603  ;;  %v2631_v27 = vsel %vm830_vm2, %v2629_v36, %v2569_v10 }
 0x296   : > { %v2633_v2 = vsel %vm833_vm3, %v2631_v27, %v2574_v24 }
 0x298   : > { %v2579_v38 = vpop.permute.xlu0 %2578 }
 0x299   : > { %v2614_v29 = vpop.permute.xlu1 %2613  ;;  %v2635_v30 = vsel %vm836_vm4, %v2633_v2, %v2579_v38 }
 0x29a   : > { %v2637_v50 = vsel %vm839_vm5, %v2635_v30, %v2584_v48 }
 0x29c   : > { %v2589_v33 = vpop.permute.xlu0 %2588 }
 0x29d   : > { %v2624_v12 = vpop.permute.xlu1 %2623  ;;  %v2639_v8 = vsel %vm842_vm6, %v2637_v50, %v2589_v33 }
 0x2a0   : > { %v2599_v5 = vpop.permute.xlu0 %2598 }
 0x2a1   : > { %v2644_v16 = vsel %vm827_vm1, %v2642_v19, %v2599_v5  ;;  %v2665_v3 = vpop.permute.xlu1 %2664 }
 0x2a2   : > { %v2646_v22 = vsel %vm830_vm2, %v2644_v16, %v2604_v51  ;;  %v2693_v44 = vshrl.u32 %v2665_v3, 16 }
 0x2a4   : > { %v2609_v7 = vpop.permute.xlu0 %2608 }
 0x2a5   : > { %v2648_v11 = vsel %vm833_vm3, %v2646_v22, %v2609_v7  ;;  %v2669_v62 = vpop.permute.xlu1 %2668 }
 0x2a6   : > { %v2650_v55 = vsel %vm836_vm4, %v2648_v11, %v2614_v29  ;;  %v2694_v34 = vshrl.u32 %v2669_v62, 16  ;;  %v2692_v2 = vpack.i.b16 %v2669_v62, %v2665_v3 }
 0x2a8   : > { %v2619_v52 = vpop.permute.xlu0 %2618  ;;  %v2695_v29 = vpack.i.b16 %v2694_v34, %v2693_v44 }
 0x2a9   : > { %v2652_v9 = vsel %vm839_vm5, %v2650_v55, %v2619_v52  ;;  %v2673_v31 = vpop.permute.xlu1 %2672 }
 0x2aa   : > { %v2654_v26 = vsel %vm842_vm6, %v2652_v9, %v2624_v12  ;;  %v2699_v18 = vshrl.u32 %v2673_v31, 16  ;;  %v2811_v16 = vrot.slane %v2695_v29, %v7450_v20  ;;  %v2777_v9 = vrot.slane %v2692_v2, %v7450_v20 }
 0x2ab   : > { %v6281_v60 = vcombine.low %v2639_v8, %v2654_v26 }
 0x2ac   : > { %v2663_v39 = vpop.permute.xlu0 %2662 }
 0x2ad   : > { %2661 = vst [vmem:[#allocation3 + $0x30] sm:$0x33] %v6281_v60  ;;  %v2677_v21 = vpop.permute.xlu1 %2676  ;;  %v2681_v59 = vshrl.u32 %v2663_v39, 16 }
 0x2ae   : > { %v2700_v17 = vshrl.u32 %v2677_v21, 16  ;;  %v2698_v27 = vpack.i.b16 %v2677_v21, %v2673_v31 }
 0x2b0   : > { %v2667_v32 = vpop.permute.xlu0 %2666  ;;  %v2701_v43 = vpack.i.b16 %v2700_v17, %v2699_v18  ;;  %v2785_v52 = vrot.slane %v2698_v27, %v7450_v20 }
 0x2b1   : > { %v2682_v14 = vshrl.u32 %v2667_v32, 16  ;;  %v2680_v53 = vpack.i.b16 %v2667_v32, %v2663_v39 }
 0x2b2   : > { %v2819_v1 = vrot.slane %v2701_v43, %v7450_v20  ;;  %v2786_v60 = vcombine.low %v2777_v9, %v2785_v52  ;;  %v2787_v31 = vcombine.high %v2777_v9, %v2785_v52 }
 0x2b3   : > { %v2683_v6 = vpack.i.b16 %v2682_v14, %v2681_v59  ;;  %v2709_v13 = vrot.slane %v2680_v53, %v7450_v20 }
 0x2b4   : > { %v2671_v63 = vpop.permute.xlu0 %2670  ;;  %v2820_v11 = vcombine.low %v2811_v16, %v2819_v1  ;;  %v2821_v62 = vcombine.high %v2811_v16, %v2819_v1  ;;  %v2801_v53 = vrot.slane %v2787_v31, %v7504_v37 }
 0x2b5   : > { %v2687_v24 = vshrl.u32 %v2671_v63, 16  ;;  %v2743_v54 = vrot.slane %v2683_v6, %v7450_v20 }
 0x2b6   : > { %v2828_v26 = vrot.slane %v2820_v11, %v7504_v37  ;;  %v2835_v14 = vrot.slane %v2821_v62, %v7504_v37 }
 0x2b8   : > { %v2675_v35 = vpop.permute.xlu0 %2674  ;;  %v6289_v39 = vcombine.low %v2828_v26, %v2828_v26  ;;  %v6554_v21 = vcombine.high %v2828_v26, %v2828_v26  ;;  %v6293_v17 = vcombine.low %v2835_v14, %v2835_v14  ;;  %v6556_v6 = vcombine.high %v2835_v14, %v2835_v14 }
 0x2b9   : > { %v2686_v4 = vpack.i.b16 %v2675_v35, %v2671_v63  ;;  %v2688_v40 = vshrl.u32 %v2675_v35, 16  ;;  %v2794_v63 = vrot.slane %v2786_v60, %v7504_v37  ;;  %v6292_v35 = vcombine.low %v2801_v53, %v2801_v53 }
 0x2bb   : > { %v2689_v48 = vpack.i.b16 %v2688_v40, %v2687_v24  ;;  %v2717_v57 = vrot.slane %v2686_v4, %v7450_v20  ;;  %v6553_v59 = vcombine.high %v2794_v63, %v2794_v63  ;;  %v6555_v24 = vcombine.high %v2801_v53, %v2801_v53 }
 0x2bd   : > { %v2718_v10 = vcombine.low %v2709_v13, %v2717_v57  ;;  %v2719_v51 = vcombine.high %v2709_v13, %v2717_v57  ;;  %v2751_v38 = vrot.slane %v2689_v48, %v7450_v20 }
 0x2bf   : > { %v2752_v33 = vcombine.low %v2743_v54, %v2751_v38  ;;  %v8244_v12 = vrot.slane %v2718_v10, %v7504_v37  ;;  %v2733_v36 = vrot.slane %v2719_v51, %v7504_v37  ;;  %v2753_v7 = vcombine.high %v2743_v54, %v2751_v38 }
 0x2c1   : > { %v6549_v19 = vcombine.high %v8244_v12, %v8244_v12  ;;  %v2760_v5 = vrot.slane %v2752_v33, %v7504_v37  ;;  %v6285_v30 = vcombine.low %v2733_v36, %v2733_v36  ;;  %v2767_v50 = vrot.slane %v2753_v7, %v7504_v37 }
 0x2c2   : > { %v6551_v8 = vcombine.high %v2733_v36, %v2733_v36 }
 0x2c3   : > { %2846 = vrot.lane.b32.xlu1 %v6549_v19, %s6920_s7  ;;  %v6282_v22 = vcombine.low %v2760_v5, %v2760_v5  ;;  %v6550_v55 = vcombine.high %v2760_v5, %v2760_v5  ;;  %v6286_v3 = vcombine.low %v2767_v50, %v2767_v50  ;;  %v6552_v32 = vcombine.high %v2767_v50, %v2767_v50 }
 0x2c5   : > { %2841 = vrot.lane.b32.xlu0 %v6282_v22, %s6923_s17 }
 0x2c7   : > { %2856 = vrot.lane.b32.xlu1 %v6285_v30, %s6921_s8 }
 0x2c9   : > { %2851 = vrot.lane.b32.xlu0 %v6550_v55, %s6924_s19 }
 0x2cb   : > { %2866 = vrot.lane.b32.xlu1 %v6551_v8, %s6922_s9 }
 0x2cd   : > { %2861 = vrot.lane.b32.xlu0 %v6286_v3, %s6925_s27 }
 0x2cf   : > { %2876 = vrot.lane.b32.xlu1 %v6289_v39, %s6923_s17 }
 0x2d1   : > { %2871 = vrot.lane.b32.xlu0 %v6552_v32, %s6926_s20 }
 0x2d3   : > { %2886 = vrot.lane.b32.xlu1 %v6554_v21, %s6924_s19 }
 0x2d5   : > { %2881 = vrot.lane.b32.xlu0 %v6553_v59, %s6920_s7 }
 0x2d7   : > { %2896 = vrot.lane.b32.xlu1 %v6293_v17, %s6925_s27 }
 0x2d9   : > { %2891 = vrot.lane.b32.xlu0 %v6292_v35, %s6921_s8 }
 0x2db   : > { %2906 = vrot.lane.b32.xlu1 %v6556_v6, %s6926_s20 }
 0x2dd   : > { %2901 = vrot.lane.b32.xlu0 %v6555_v24, %s6922_s9 }
 0x2df   : > { %2948 = vrot.lane.b32.xlu1 %v7286_v42, %s6917_s30 }
 0x2e1   : > { %2946 = vrot.lane.b32.xlu0 %v7475_v56, %s6917_s30 }
 0x2e3   : > { %2952 = vrot.lane.b32.xlu1 %v7315_v58, %s6917_s30 }
 0x2e5   : > { %2950 = vrot.lane.b32.xlu0 %v7481_v41, %s6917_s30 }
 0x2e7   : > { %2956 = vrot.lane.b32.xlu1 %v7326_v0, %s6917_s30 }
 0x2e9   : > { %2954 = vrot.lane.b32.xlu0 %v7491_v49, %s6917_s30 }
 0x2eb   : > { %2960 = vrot.lane.b32.xlu1 %v7347_v15, %s6917_s30 }
 0x2ed   : > { %2958 = vrot.lane.b32.xlu0 %v7497_v28, %s6917_s30 }
 0x335   : > { %v2847_v42 = vpop.permute.xlu1 %2846 }
 0x337   : > { %v2842_v56 = vpop.permute.xlu0 %2841 }
 0x338   : > { %v2910_v0 = vsel %vm823_vm0, %v8244_v12, %v2842_v56  ;;  %v8340_v56 = vld [vmem:[#allocation2 + $0x30] sm:$0xf] }
 0x339   : > { %v2857_v4 = vpop.permute.xlu1 %2856  ;;  %v2912_v15 = vsel %vm827_vm1, %v2910_v0, %v2847_v42  ;;  %v8336_v42 = vld [vmem:[#allocation2 + $0x34] sm:$0xf] }
 0x33a   : > { %v4091_v0 = vshll.u32 %v8336_v42, 16 }
 0x33b   : > { %v2852_v40 = vpop.permute.xlu0 %2851 }
 0x33c   : > { %v2914_v28 = vsel %vm830_vm2, %v2912_v15, %v2852_v40  ;;  %v8348_v40 = vld [vmem:[#allocation2 + $0x3c] sm:$0xf] }
 0x33d   : > { %v2867_v58 = vpop.permute.xlu1 %2866  ;;  %v2916_v10 = vsel %vm833_vm3, %v2914_v28, %v2857_v4  ;;  %v8344_v4 = vld [vmem:[#allocation2 + $0x40] sm:$0xf]  ;;  %v10320_v28 = vshrl.u32 %v7560_v45, 16 }
 0x33f   : > { %v2862_v18 = vpop.permute.xlu0 %2861 }
 0x340   : > { %v2918_v38 = vsel %vm836_vm4, %v2916_v10, %v2862_v18  ;;  %v8356_v18 = vld [vmem:[#allocation2 + $0x48] sm:$0xf] }
 0x341   : > { %v2877_v34 = vpop.permute.xlu1 %2876  ;;  %v2920_v12 = vsel %vm839_vm5, %v2918_v38, %v2867_v58  ;;  %v8352_v58 = vld [vmem:[#allocation2 + $0x4c] sm:$0xf] }
 0x342   : > { %v2925_v49 = vsel %vm823_vm0, %v2794_v63, %v2877_v34  ;;  %v8360_v34 = vld [vmem:[#allocation2 + $0x58] sm:$0xf]  ;;  %v4131_v45 = vshll.u32 %v8352_v58, 16 }
 0x343   : > { %v2872_v41 = vpop.permute.xlu0 %2871 }
 0x344   : > { %v2922_v5 = vsel %vm842_vm6, %v2920_v12, %v2872_v41  ;;  %v8364_v41 = vld [vmem:[#allocation2 + $0x54] sm:$0xf] }
 0x345   : > { %v2887_v13 = vpop.permute.xlu1 %2886 }
 0x347   : > { %v2882_v48 = vpop.permute.xlu0 %2881 }
 0x348   : > { %v2927_v57 = vsel %vm827_vm1, %v2925_v49, %v2882_v48  ;;  %v4093_v49 = vrot.slane %v4091_v0, 5  ;;  %v10319_v48 = vshrl.u32 %v7542_v61, 16  ;;  %v10321_v61 = vshrl.u32 %v7552_v25, 16  ;;  %v6748_v25 = vld [vmem:[#allocation2 + $0x44] sm:$0x1] }
 0x349   : > { %v2897_v44 = vpop.permute.xlu1 %2896  ;;  %v2929_v54 = vsel %vm830_vm2, %v2927_v57, %v2887_v13  ;;  %v4086_v13 = vshll.u32 %v8340_v56, 16  ;;  %v4111_v57 = vshll.u32 %v8344_v4, 16  ;;  %v10326_v0 = vld [vmem:[#allocation15_spill] sm:$0xff] }
 0x34a   : > { %v4096_v15 = vrot.slane %v10319_v48, 4 }
 0x34b   : > { %v2892_v43 = vpop.permute.xlu0 %2891 }
 0x34c   : > { %v2931_v51 = vsel %vm833_vm3, %v2929_v54, %v2892_v43  ;;  %v4088_v43 = vrot.slane %v4086_v13, 5  ;;  %v4106_v54 = vshll.u32 %v8348_v40, 16  ;;  %v4097_v10 = vor.u32 %v4096_v15, %v4093_v49 }
 0x34d   : > { %v2933_v33 = vsel %vm836_vm4, %v2931_v51, %v2897_v44  ;;  %v2907_v1 = vpop.permute.xlu1 %2906  ;;  %v4085_v44 = vrot.slane %v10320_v28, 4  ;;  %v6747_v51 = vld [vmem:[#allocation2 + $0x38] sm:$0x1]  ;;  %v10327_v13 = vshrl.u32 %v10326_v0, 16  ;;  %v10328_v28 = vld [vmem:[#allocation16_spill] sm:$0xff] }
 0x34e   : > { %v4100_v38 = vshll.u32 %v6747_v51, 16 }
 0x34f   : > { %v2902_v29 = vpop.permute.xlu0 %2901  ;;  %v4089_v12 = vor.u32 %v4088_v43, %v4085_v44  ;;  %v4156_v48 = vrot.slane %v10327_v13, 4  ;;  %v10329_v44 = vshrl.u32 %v10328_v28, 16 }
 0x350   : > { %v2935_v19 = vsel %vm839_vm5, %v2933_v33, %v2902_v29  ;;  %v4113_v29 = vrot.slane %v4111_v57, 5  ;;  %v4116_v33 = vrot.slane %v10321_v61, 4  ;;  %v6750_v61 = vld [vmem:[#allocation2 + $0x5c] sm:$0x1] }
 0x351   : > { %v2937_v36 = vsel %vm842_vm6, %v2935_v19, %v2907_v1  ;;  %v10322_v1 = vshrl.u32 %v7562_v46, 16  ;;  %v4145_v43 = vrot.slane %v10329_v44, 4 }
 0x352   : > { %v6296_v16 = vcombine.low %v2922_v5, %v2937_v36  ;;  %v4108_v5 = vrot.slane %v4106_v54, 5  ;;  %v4126_v36 = vshll.u32 %v8356_v18, 16 }
 0x353   : > { %v2947_v27 = vpop.permute.xlu0 %2946  ;;  %v4105_v19 = vrot.slane %v10322_v1, 4 }
 0x354   : > { %v2943_v7 = vrot.slane %v6296_v16, 6  ;;  %v2965_v55 = vshrl.u32 %v2947_v27, 16  ;;  %v4098_v16 = vrot.slane %v4097_v10, 4 }
 0x355   : > { %v4109_v46 = vor.u32 %v4108_v5, %v4105_v19 }
 0x356   : > { %2945 = vst [vmem:[#allocation3 + $0x30] sm:$0xcc] %v2943_v7  ;;  %v4117_v7 = vor.u32 %v4116_v33, %v4113_v29  ;;  %v4160_v33 = vshll.u32 %v6750_v61, 16 }
 0x357   : > { %v2951_v22 = vpop.permute.xlu0 %2950  ;;  %v4110_v15 = vrot.slane %v4109_v46, 4  ;;  %v10337_v46 = vld [vmem:[#allocation24_spill] sm:$0xff] }
 0x358   : > { %v2966_v11 = vshrl.u32 %v2951_v22, 16  ;;  %v2964_v50 = vpack.i.b16 %v2951_v22, %v2947_v27  ;;  %v4102_v27 = vrot.slane %v4100_v38, 5  ;;  %v4120_v22 = vshll.u32 %v6748_v25, 16  ;;  %v10330_v25 = vld [vmem:[#allocation25_spill] sm:$0xff] }
 0x35a   : > { %v2967_v8 = vpack.i.b16 %v2966_v11, %v2965_v55  ;;  %v8305_v39 = vrot.slane %v2964_v50, %v7450_v20  ;;  %v4133_v11 = vrot.slane %v4131_v45, 5  ;;  %v4151_v55 = vshll.u32 %v8360_v34, 16 }
 0x35b   : > { %v2955_v2 = vpop.permute.xlu0 %2954  ;;  %v10324_v50 = vshrl.u32 %v7616_v23, 16 }
 0x35c   : > { %v2971_v26 = vshrl.u32 %v2955_v2, 16  ;;  %10313 = vst [vmem:[#allocation33_spill] sm:$0xff] %v8305_v39  ;;  %v8311_v32 = vrot.slane %v2967_v8, %v7450_v20  ;;  %v4128_v8 = vrot.slane %v4126_v36, 5  ;;  %v4162_v36 = vrot.slane %v4160_v33, 5 }
 0x35d   : > { %v6726_v30 = vld [vmem:[#allocation3 + $0x24] ss:$16 sps:$4 sm:$0xff]   ;;  %v6728_v52 = vld [vmem:[#allocation3 + $0x20] ss:$16 sps:$4 sm:$0xff]  }
 0x35e   : > { %5951 = vmatprep.subr.bf16.mxu0 %v6726_v30  ;;  %10315 = vst [vmem:[#allocation35_spill] sm:$0xff] %v8311_v32  ;;  %v10323_v30 = vshrl.u32 %v7592_v47, 16  ;;  %v4118_v47 = vrot.slane %v4117_v7, 4 }
 0x35f   : > { %v2959_v9 = vpop.permute.xlu0 %2958  ;;  %5952 = vmatpush1.bf16.msra.mxu0 %v6728_v52 }
 0x360   : > { %v2970_v60 = vpack.i.b16 %v2959_v9, %v2955_v2  ;;  %v2972_v3 = vshrl.u32 %v2959_v9, 16  ;;  %v4090_v2 = vrot.slane %v4089_v12, 4  ;;  %v4136_v52 = vrot.slane %v10323_v30, 4  ;;  %v10334_v30 = vld [vmem:[#allocation27_spill] sm:$0xff] }
 0x361   : > { %v4125_v9 = vrot.slane %v10324_v50, 4  ;;  %v8428_v12 = vsel %vm7354_vm15, %v4110_v15, %v4113_v29  ;;  %v8496_v50 = vpop.permute.xlu1 %2948 }
 0x362   : > { %v2973_v62 = vpack.i.b16 %v2972_v3, %v2971_v26  ;;  %v8308_v31 = vrot.slane %v2970_v60, %v7450_v20  ;;  %v4146_v26 = vshll.u32 %v8364_v41, 16  ;;  %v8406_v3 = vsel %vm7354_vm15, %v4098_v16, %v4102_v27  ;;  %10338 = vst [vmem:[#allocation14_spill] sm:$0xff] %v8496_v50 }
 0x363   : > { %v4137_v23 = vor.u32 %v4136_v52, %v4133_v11  ;;  %v4129_v57 = vor.u32 %v4128_v8, %v4125_v9  ;;  %v10335_v52 = vld [vmem:[#allocation23_spill] sm:$0xff] }
 0x364   : > { %10314 = vst [vmem:[#allocation34_spill] sm:$0xff] %v8308_v31  ;;  %v8314_v63 = vrot.slane %v2973_v62, %v7450_v20  ;;  %v3002_v21 = vcombine.low %v8305_v39, %v8308_v31  ;;  %v4122_v62 = vrot.slane %v4120_v22, 5  ;;  %v4148_v54 = vrot.slane %v4146_v26, 5  ;;  %v10331_v22 = vld [vmem:[#allocation21_spill] sm:$0xff] }
 0x365   : > { %v4138_v51 = vrot.slane %v4137_v23, 4  ;;  %v4130_v45 = vrot.slane %v4129_v57, 4  ;;  %v8506_v9 = vpop.permute.xlu1 %2952  ;;  %v4168_v57 = vshrl.u32 %v8428_v12, 16 }
 0x366   : > { %10316 = vst [vmem:[#allocation36_spill] sm:$0xff] %v8314_v63  ;;  %v3036_v59 = vcombine.low %v8311_v32, %v8314_v63  ;;  %v8325_v17 = vrot.slane %v3002_v21, %v7504_v37  ;;  %v6749_v21 = vld [vmem:[#allocation2 + $0x50] sm:$0x1]  ;;  %v4149_v1 = vor.u32 %v4148_v54, %v4145_v43  ;;  %10339 = vst [vmem:[#allocation15_spill] sm:$0xff] %v8506_v9 }
 0x367   : > { %v8440_v16 = vsel %vm7354_vm15, %v4130_v45, %v4133_v11  ;;  %v10333_v11 = vld [vmem:[#allocation22_spill] sm:$0xff] }
 0x368   : > { %10317 = vst [vmem:[#allocation37_spill] sm:$0xff] %v8325_v17  ;;  %v8328_v35 = vrot.slane %v3036_v59, %v7504_v37  ;;  %v6557_v6 = vcombine.high %v8325_v17, %v8325_v17  ;;  %v4140_v59 = vshll.u32 %v6749_v21, 16  ;;  %v4150_v29 = vrot.slane %v4149_v1, 4 }
 0x369   : > { %v8508_v8 = vpop.permute.xlu1 %2956  ;;  %v4173_v28 = vshrl.u32 %v8440_v16, 16 }
 0x36a   : > { %10318 = vst [vmem:[#allocation38_spill] sm:$0xff] %v8328_v35  ;;  %v6297_v24 = vcombine.low %v8328_v35, %v8328_v35  ;;  %3130 = vrot.lane.b32.xlu1 %v6557_v6, %s6920_s7  ;;  %v8410_v6 = vsel %vm7354_vm15, %v4090_v2, %v4093_v49  ;;  %v4142_v10 = vrot.slane %v4140_v59, 5  ;;  %v8422_v49 = vsel %vm7354_vm15, %v4118_v47, %v4122_v62  ;;  %v10332_v2 = vld [vmem:[#allocation26_spill] sm:$0xff] }
 0x36b   : > { %10340 = vst [vmem:[#allocation16_spill] sm:$0xff] %v8508_v8  ;;  %v4180_v0 = vshrl.u32 %v8422_v49, 16  ;;  %v4167_v15 = vshrl.u32 %v8410_v6, 16 }
 0x36c   : > { %3125 = vrot.lane.b32.xlu0 %v6297_v24, %s6923_s17  ;;  %v4153_v24 = vrot.slane %v4151_v55, 5  ;;  %v8434_v19 = vsel %vm7354_vm15, %v4138_v51, %v4142_v10  ;;  %v10336_v55 = vld [vmem:[#allocation28_spill] sm:$0xff] }
 0x36d   : > { %v8510_v26 = vpop.permute.xlu1 %2960  ;;  %v4185_v13 = vshrl.u32 %v8434_v19, 16  ;;  %v4169_v45 = vpack.i.b16 %v4168_v57, %v4167_v15 }
 0x36e   : > { %3519 = vrot.lane.b32.xlu1 %v8336_v42, %s6916_s26  ;;  %v4157_v38 = vor.u32 %v4156_v48, %v4153_v24  ;;  %v8452_v7 = vsel %vm7354_vm15, %v4150_v29, %v4153_v24  ;;  %10341 = vst [vmem:[#allocation39_spill] sm:$0xff] %v8510_v26  ;;  %v4179_v24 = vshrl.u32 %v8406_v3, 16 }
 0x36f   : > { %v4174_v44 = vshrl.u32 %v8452_v7, 16 }
 0x370   : > { %3517 = vrot.lane.b32.xlu0 %v8340_v56, %s6916_s26  ;;  %v4158_v5 = vrot.slane %v4157_v38, 4  ;;  %v4181_v38 = vpack.i.b16 %v4180_v0, %v4179_v24 }
 0x371   : > { %v4175_v1 = vpack.i.b16 %v4174_v44, %v4173_v28  ;;  %v4178_v44 = vpack.i.b16 %v8422_v49, %v8406_v3 }
 0x372   : > { %3523 = vrot.lane.b32.xlu1 %v8344_v4, %s6916_s26  ;;  %v8446_v27 = vsel %vm7354_vm15, %v4158_v5, %v4162_v36  ;;  %v8525_v32 = vrot.slane %v4181_v38, %v7450_v20 }
 0x373   : > { %v4186_v48 = vshrl.u32 %v8446_v27, 16 }
 0x374   : > { %3521 = vrot.lane.b32.xlu0 %v8348_v40, %s6916_s26 }
 0x375   : > { %v4187_v61 = vpack.i.b16 %v4186_v48, %v4185_v13  ;;  %v8531_v13 = vrot.slane %v4169_v45, %v7450_v20  ;;  %v8534_v48 = vrot.slane %v4175_v1, %v7450_v20 }
 0x376   : > { %3527 = vrot.lane.b32.xlu1 %v8352_v58, %s6916_s26 }
 0x377   : > { %v8528_v31 = vrot.slane %v4187_v61, %v7450_v20 }
 0x378   : > { %3525 = vrot.lane.b32.xlu0 %v8356_v18, %s6916_s26 }
 0x37a   : > { %3531 = vrot.lane.b32.xlu1 %v8360_v34, %s6916_s26 }
 0x37c   : > { %3529 = vrot.lane.b32.xlu0 %v8364_v41, %s6916_s26 }
 0x37e   : > { %3803 = vrot.lane.b32.xlu1 %v8336_v42, %s6917_s30 }
 0x380   : > { %3801 = vrot.lane.b32.xlu0 %v8340_v56, %s6917_s30 }
 0x382   : > { %3807 = vrot.lane.b32.xlu1 %v8344_v4, %s6917_s30 }
 0x384   : > { %3805 = vrot.lane.b32.xlu0 %v8348_v40, %s6917_s30 }
 0x386   : > { %3811 = vrot.lane.b32.xlu1 %v8352_v58, %s6917_s30 }
 0x388   : > { %3809 = vrot.lane.b32.xlu0 %v8356_v18, %s6917_s30 }
 0x38a   : > { %3815 = vrot.lane.b32.xlu1 %v8360_v34, %s6917_s30 }
 0x38c   : > { %3813 = vrot.lane.b32.xlu0 %v8364_v41, %s6917_s30 }
 0x38e   : > { %4717 = vrot.lane.b32.xlu1 %v8406_v3, %s6917_s30 }
 0x390   : > { %4715 = vrot.lane.b32.xlu0 %v8410_v6, %s6917_s30 }
 0x392   : > { %4721 = vrot.lane.b32.xlu1 %v8422_v49, %s6917_s30 }
 0x394   : > { %4719 = vrot.lane.b32.xlu0 %v8428_v12, %s6917_s30 }
 0x396   : > { %4725 = vrot.lane.b32.xlu1 %v8434_v19, %s6917_s30 }
 0x398   : > { %4723 = vrot.lane.b32.xlu0 %v8440_v16, %s6917_s30 }
 0x39a   : > { %4729 = vrot.lane.b32.xlu1 %v8446_v27, %s6917_s30 }
 0x39c   : > { %4727 = vrot.lane.b32.xlu0 %v8452_v7, %s6917_s30 }
 0x39e   : > { %5300 = vrot.lane.b32.xlu1 %v10330_v25, %s6916_s26 }
 0x3a0   : > { %5298 = vrot.lane.b32.xlu0 %v10331_v22, %s6916_s26 }
 0x3a2   : > { %5304 = vrot.lane.b32.xlu1 %v10332_v2, %s6916_s26 }
 0x3a4   : > { %5302 = vrot.lane.b32.xlu0 %v10333_v11, %s6916_s26 }
 0x3a6   : > { %5308 = vrot.lane.b32.xlu1 %v10334_v30, %s6916_s26 }
 0x3a8   : > { %5306 = vrot.lane.b32.xlu0 %v10335_v52, %s6916_s26 }
 0x3aa   : > { %5312 = vrot.lane.b32.xlu1 %v10336_v55, %s6916_s26 }
 0x3ac   : > { %5310 = vrot.lane.b32.xlu0 %v10337_v46, %s6916_s26 }
 0x3ae   : > { %4434 = vrot.lane.b32.xlu1 %v8406_v3, %s6916_s26  ;;  %v4184_v3 = vpack.i.b16 %v8446_v27, %v8434_v19 }
 0x3b0   : > { %4432 = vrot.lane.b32.xlu0 %v8410_v6, %s6916_s26 }
 0x3b2   : > { %4438 = vrot.lane.b32.xlu1 %v8422_v49, %s6916_s26 }
 0x3b4   : > { %4436 = vrot.lane.b32.xlu0 %v8428_v12, %s6916_s26 }
 0x3b6   : > { %4442 = vrot.lane.b32.xlu1 %v8434_v19, %s6916_s26  ;;  %v4238_v19 = vcombine.low %v8531_v13, %v8534_v48 }
 0x3b8   : > { %4440 = vrot.lane.b32.xlu0 %v8440_v16, %s6916_s26 }
 0x3ba   : > { %4446 = vrot.lane.b32.xlu1 %v8446_v27, %s6916_s26 }
 0x3bc   : > { %4444 = vrot.lane.b32.xlu0 %v8452_v7, %s6916_s26  ;;  %s6927_s26 = smov [#allocation10]  }
 0x3be   : > { %5584 = vrot.lane.b32.xlu1 %v10330_v25, %s6917_s30 }
 0x3c0   : > { %5582 = vrot.lane.b32.xlu0 %v10331_v22, %s6917_s30 }
 0x3c2   : > { %5588 = vrot.lane.b32.xlu1 %v10332_v2, %s6917_s30 }
 0x3c4   : > { %5586 = vrot.lane.b32.xlu0 %v10333_v11, %s6917_s30 }
 0x3c6   : > { %5592 = vrot.lane.b32.xlu1 %v10334_v30, %s6917_s30 }
 0x3c8   : > { %5590 = vrot.lane.b32.xlu0 %v10335_v52, %s6917_s30 }
 0x3ca   : > { %5596 = vrot.lane.b32.xlu1 %v10336_v55, %s6917_s30 }
 0x3cc   : > { %5594 = vrot.lane.b32.xlu0 %v10337_v46, %s6917_s30  ;;  %s6841_s30 = sshll.u32 %s6927_s26, 4  ;;  %s6842_s30 = int_to_ptr.vmem [resolvable:$false] %s6841_s30 }
 0x3cd   : > { %p6844_p2 = scmp.lt.s32.totalorder %s10124_s6, %s6842_s30 }
 0x3dc   : > { %v8512_v60 = vpop.permute.xlu1 %3130 }
 0x3dd   : > { %10342 = vst [vmem:[#allocation40_spill] sm:$0xff] %v8512_v60 }
 0x3de   : > { %v8514_v47 = vpop.permute.xlu0 %3125 }
 0x3df   : > { %10343 = vst [vmem:[#allocation41_spill] sm:$0xff] %v8514_v47 }
 0x3e0   : > { %v3520_v62 = vpop.permute.xlu1 %3519 }
 0x3e1   : > { %v3548_v33 = vshrl.u32 %v3520_v62, 16 }
 0x3e2   : > { %v3518_v21 = vpop.permute.xlu0 %3517 }
 0x3e3   : > { %v3536_v5 = vshrl.u32 %v3518_v21, 16 }
 0x3e4   : > { %v3524_v59 = vpop.permute.xlu1 %3523 }
 0x3e5   : > { %v3549_v54 = vshrl.u32 %v3524_v59, 16 }
 0x3e6   : > { %v3522_v23 = vpop.permute.xlu0 %3521 }
 0x3e7   : > { %v3537_v51 = vshrl.u32 %v3522_v23, 16  ;;  %v3550_v29 = vpack.i.b16 %v3549_v54, %v3548_v33  ;;  %v3547_v54 = vpack.i.b16 %v3524_v59, %v3520_v62  ;;  %v3535_v38 = vpack.i.b16 %v3522_v23, %v3518_v21 }
 0x3e8   : > { %v3528_v43 = vpop.permute.xlu1 %3527  ;;  %v4306_v62 = vcombine.low %v8525_v32, %v8528_v31  ;;  %v8597_v33 = vrot.slane %v4184_v3, %v7450_v20 }
 0x3e9   : > { %v3554_v53 = vshrl.u32 %v3528_v43, 16  ;;  %v3538_v17 = vpack.i.b16 %v3537_v51, %v3536_v5  ;;  %v8541_v51 = vrot.slane %v3550_v29, %v7450_v20  ;;  %v8577_v27 = vrot.slane %v3547_v54, %v7450_v20 }
 0x3ea   : > { %v3526_v10 = vpop.permute.xlu0 %3525  ;;  %v8604_v5 = vrot.slane %v4306_v62, %v7504_v37 }
 0x3eb   : > { %v3542_v47 = vshrl.u32 %v3526_v10, 16 }
 0x3ec   : > { %v3532_v36 = vpop.permute.xlu1 %3531 }
 0x3ed   : > { %v3555_v14 = vshrl.u32 %v3532_v36, 16  ;;  %v3553_v24 = vpack.i.b16 %v3532_v36, %v3528_v43 }
 0x3ee   : > { %v3530_v60 = vpop.permute.xlu0 %3529 }
 0x3ef   : > { %v3543_v63 = vshrl.u32 %v3530_v60, 16  ;;  %v3556_v0 = vpack.i.b16 %v3555_v14, %v3554_v53  ;;  %v3541_v15 = vpack.i.b16 %v3530_v60, %v3526_v10  ;;  %v4166_v53 = vpack.i.b16 %v8428_v12, %v8410_v6 }
 0x3f0   : > { %v8536_v28 = vpop.permute.xlu1 %3803  ;;  %v8559_v49 = vrot.slane %v3553_v24, %v7450_v20  ;;  %v4172_v6 = vpack.i.b16 %v8452_v7, %v8440_v16  ;;  %v8585_v16 = vrot.slane %v4178_v44, %v7450_v20  ;;  %v8591_v10 = vrot.slane %v3535_v38, %v7450_v20 }
 0x3f1   : > { %v3544_v57 = vpack.i.b16 %v3543_v63, %v3542_v47  ;;  %v8544_v43 = vrot.slane %v3556_v0, %v7450_v20  ;;  %v8551_v63 = vrot.slane %v3538_v17, %v7450_v20  ;;  %v8568_v17 = vrot.slane %v3541_v15, %v7450_v20 }
 0x3f2   : > { %v8546_v14 = vpop.permute.xlu0 %3801  ;;  %v8588_v7 = vrot.slane %v4166_v53, %v7450_v20  ;;  %v3641_v45 = vcombine.low %v8577_v27, %v8559_v49  ;;  %v8607_v36 = vrot.slane %v4172_v6, %v7450_v20  ;;  %v8616_v15 = vrot.slane %v4238_v19, %v7504_v37 }
 0x3f3   : > { %v8554_v60 = vrot.slane %v3544_v57, %v7450_v20  ;;  %v3675_v47 = vcombine.low %v8541_v51, %v8544_v43  ;;  %v3573_v29 = vcombine.low %v8591_v10, %v8568_v17  ;;  %v3832_v53 = vshrl.u32 %v8536_v28, 16 }
 0x3f4   : > { %v8572_v21 = vpop.permute.xlu1 %3807  ;;  %v6364_v38 = vcombine.low %v8604_v5, %v8604_v5  ;;  %v8628_v3 = vrot.slane %v3641_v45, %v7504_v37  ;;  %v3820_v62 = vshrl.u32 %v8546_v14, 16 }
 0x3f5   : > { %v3607_v12 = vcombine.low %v8551_v63, %v8554_v60  ;;  %v8582_v23 = vrot.slane %v3675_v47, %v7504_v37  ;;  %v3833_v57 = vshrl.u32 %v8572_v21, 16  ;;  %v4272_v47 = vcombine.low %v8585_v16, %v8597_v33 }
 0x3f6   : > { %v8579_v59 = vpop.permute.xlu0 %3805  ;;  %10344 = vst [vmem:[#allocation42_spill] sm:$0xff] %v8628_v3  ;;  %v8638_v19 = vrot.slane %v3573_v29, %v7504_v37  ;;  %v6577_v26 = vcombine.high %v8628_v3, %v8628_v3 }
 0x3f7   : > { %v8594_v61 = vrot.slane %v3607_v12, %v7504_v37  ;;  %v6334_v1 = vcombine.low %v8582_v23, %v8582_v23  ;;  %v3821_v54 = vshrl.u32 %v8579_v59, 16  ;;  %v6357_v12 = vcombine.low %v8616_v15, %v8616_v15 }
 0x3f8   : > { %v8611_v24 = vpop.permute.xlu1 %3811  ;;  %10345 = vst [vmem:[#allocation43_spill] sm:$0xff] %v8638_v19 }
 0x3f9   : > { %v6327_v0 = vcombine.low %v8594_v61, %v8594_v61  ;;  %3731 = vrot.lane.b32.xlu1 %v6334_v1, %s6923_s17  ;;  %v4204_v1 = vcombine.low %v8588_v7, %v8607_v36  ;;  %v3838_v45 = vshrl.u32 %v8611_v24, 16  ;;  %v3822_v50 = vpack.i.b16 %v3821_v54, %v3820_v62 }
 0x3fa   : > { %v8620_v44 = vpop.permute.xlu0 %3809 }
 0x3fb   : > { %3696 = vrot.lane.b32.xlu0 %v6327_v0, %s6923_s17  ;;  %v3834_v0 = vpack.i.b16 %v3833_v57, %v3832_v53  ;;  %v3826_v8 = vshrl.u32 %v8620_v44, 16  ;;  %v8653_v57 = vrot.slane %v4272_v47, %v7504_v37  ;;  %v8660_v54 = vrot.slane %v4204_v1, %v7504_v37  ;;  %v10356_v47 = vld [vmem:[#allocation20_spill] sm:$0xff] }
 0x3fc   : > { %v8633_v6 = vpop.permute.xlu1 %3815 }
 0x3fd   : > { %v3839_v39 = vshrl.u32 %v8633_v6, 16  ;;  %4362 = vrot.lane.b32.xlu1 %v6364_v38, %s6923_s17  ;;  %10346 = vst [vmem:[#allocation44_spill] sm:$0xff] %v8653_v57  ;;  %v6573_v38 = vcombine.high %v8638_v19, %v8638_v19  ;;  %10347 = vst [vmem:[#allocation45_spill] sm:$0xff] %v8660_v54  ;;  %v8663_v62 = vrot.slane %v3834_v0, %v7450_v20  ;;  %v10352_v0 = vld [vmem:[#allocation17_spill] sm:$0xff] }
 0x3fe   : > { %v8645_v35 = vpop.permute.xlu0 %3813  ;;  %v6593_v1 = vcombine.high %v8653_v57, %v8653_v57 }
 0x3ff   : > { %v3827_v9 = vshrl.u32 %v8645_v35, 16  ;;  %4327 = vrot.lane.b32.xlu0 %v6357_v12, %s6923_s17  ;;  %v3840_v29 = vpack.i.b16 %v3839_v39, %v3838_v45  ;;  %10348 = vst [vmem:[#allocation46_spill] sm:$0xff] %v8663_v62  ;;  %v10353_v45 = vld [vmem:[#allocation18_spill] sm:$0xff] }
 0x400   : > { %v8655_v46 = vpop.permute.xlu1 %4717 }
 0x401   : > { %v3828_v53 = vpack.i.b16 %v3827_v9, %v3826_v8  ;;  %v8666_v39 = vrot.slane %v3840_v29, %v7450_v20  ;;  %3736 = vrot.lane.b32.xlu1 %v6577_v26, %s6920_s7  ;;  %v8672_v9 = vrot.slane %v3822_v50, %v7450_v20  ;;  %v10354_v26 = vcombine.low %v10352_v0, %v10353_v45 }
 0x402   : > { %v8669_v12 = vpop.permute.xlu0 %4715  ;;  %v3262_v50 = vpack.i.b16 %v8360_v34, %v8352_v58  ;;  %v4746_v11 = vshrl.u32 %v8655_v46, 16 }
 0x403   : > { %10349 = vst [vmem:[#allocation47_spill] sm:$0xff] %v8666_v39  ;;  %10350 = vst [vmem:[#allocation48_spill] sm:$0xff] %v8672_v9  ;;  %v8675_v8 = vrot.slane %v3828_v53, %v7450_v20  ;;  %3701 = vrot.lane.b32.xlu0 %v6573_v38, %s6920_s7  ;;  %v8686_v29 = vrot.slane %v10354_v26, %v7504_v37  ;;  %v6589_v53 = vcombine.high %v8660_v54, %v8660_v54  ;;  %v10355_v38 = vld [vmem:[#allocation19_spill] sm:$0xff] }
 0x404   : > { %v8690_v19 = vpop.permute.xlu1 %4721  ;;  %v10357_v3 = vcombine.low %v10355_v38, %v10356_v47  ;;  %v3256_v26 = vpack.i.b16 %v8344_v4, %v8336_v42  ;;  %v3959_v54 = vcombine.low %v8663_v62, %v8666_v39  ;;  %v3250_v4 = vpack.i.b16 %v8364_v41, %v8356_v18 }
 0x405   : > { %10351 = vst [vmem:[#allocation49_spill] sm:$0xff] %v8675_v8  ;;  %4367 = vrot.lane.b32.xlu1 %v6593_v1, %s6920_s7  ;;  %v6319_v55 = vcombine.low %v8686_v29, %v8686_v29  ;;  %v3891_v1 = vcombine.low %v8672_v9, %v8675_v8  ;;  %v4747_v58 = vshrl.u32 %v8690_v19, 16  ;;  %v6578_v18 = vcombine.high %v8582_v23, %v8582_v23 }
 0x406   : > { %v8698_v52 = vrot.slane %v10357_v3, %v7504_v37  ;;  %v8701_v57 = vpop.permute.xlu0 %4719  ;;  %v3244_v3 = vpack.i.b16 %v8348_v40, %v8340_v56  ;;  %v8729_v56 = vrot.slane %v3256_v26, %v7450_v20  ;;  %v8732_v40 = vrot.slane %v3262_v50, %v7450_v20 }
 0x407   : > { %4332 = vrot.lane.b32.xlu0 %v6589_v53, %s6920_s7  ;;  %v4735_v53 = vshrl.u32 %v8701_v57, 16  ;;  %v8738_v41 = vrot.slane %v3959_v54, %v7504_v37  ;;  %v4734_v22 = vshrl.u32 %v8669_v12, 16  ;;  %v6574_v26 = vcombine.high %v8594_v61, %v8594_v61 }
 0x408   : > { %v8716_v30 = vpop.permute.xlu1 %4725  ;;  %v6312_v42 = vcombine.low %v8698_v52, %v8698_v52  ;;  %v8749_v50 = vrot.slane %v3891_v1, %v7504_v37  ;;  %v8752_v2 = vrot.slane %v3250_v4, %v7450_v20  ;;  %v4748_v23 = vpack.i.b16 %v4747_v58, %v4746_v11 }
 0x409   : > { %3440 = vrot.lane.b32.xlu1 %v6319_v55, %s6923_s17  ;;  %v8741_v55 = vrot.slane %v3244_v3, %v7450_v20  ;;  %v4752_v54 = vshrl.u32 %v8716_v30, 16  ;;  %v4736_v8 = vpack.i.b16 %v4735_v53, %v4734_v22  ;;  %v3837_v1 = vpack.i.b16 %v8633_v6, %v8611_v24 }
 0x40a   : > { %v8724_v34 = vpop.permute.xlu0 %4723  ;;  %v6349_v11 = vcombine.low %v8738_v41, %v8738_v41  ;;  %v3350_v58 = vcombine.low %v8729_v56, %v8732_v40  ;;  %v6342_v39 = vcombine.low %v8749_v50, %v8749_v50  ;;  %v8779_v24 = vrot.slane %v4748_v23, %v7450_v20 }
 0x40b   : > { %3405 = vrot.lane.b32.xlu0 %v6312_v42, %s6923_s17  ;;  %v4740_v9 = vshrl.u32 %v8724_v34, 16  ;;  %v3642_v23 = vcombine.high %v8577_v27, %v8559_v49 }
 0x40c   : > { %v8744_v42 = vpop.permute.xlu1 %4729 }
 0x40d   : > { %v4753_v25 = vshrl.u32 %v8744_v42, 16  ;;  %3741 = vrot.lane.b32.xlu1 %v6578_v18, %s6924_s19  ;;  %v3825_v18 = vpack.i.b16 %v8645_v35, %v8620_v44  ;;  %v6594_v44 = vcombine.high %v8604_v5, %v8604_v5  ;;  %v3574_v5 = vcombine.high %v8591_v10, %v8568_v17 }
 0x40e   : > { %v8757_v3 = vpop.permute.xlu0 %4727 }
 0x40f   : > { %v4741_v61 = vshrl.u32 %v8757_v3, 16  ;;  %3706 = vrot.lane.b32.xlu0 %v6574_v26, %s6924_s19  ;;  %v4754_v4 = vpack.i.b16 %v4753_v25, %v4752_v54  ;;  %v3282_v26 = vcombine.low %v8741_v55, %v8752_v2  ;;  %v3831_v25 = vpack.i.b16 %v8572_v21, %v8536_v28 }
 0x410   : > { %v8770_v53 = vpop.permute.xlu1 %5300  ;;  %v8792_v54 = vrot.slane %v4736_v8, %v7450_v20  ;;  %v6590_v21 = vcombine.high %v8616_v15, %v8616_v15 }
 0x411   : > { %v4742_v22 = vpack.i.b16 %v4741_v61, %v4740_v9  ;;  %v8782_v6 = vrot.slane %v4754_v4, %v7450_v20  ;;  %4015 = vrot.lane.b32.xlu1 %v6349_v11, %s6923_s17  ;;  %v3819_v9 = vpack.i.b16 %v8579_v59, %v8546_v14  ;;  %v8803_v61 = vrot.slane %v3837_v1, %v7450_v20 }
 0x412   : > { %v8785_v35 = vpop.permute.xlu0 %5298  ;;  %v8808_v59 = vrot.slane %v3350_v58, %v7504_v37  ;;  %v8820_v49 = vrot.slane %v3282_v26, %v7504_v37  ;;  %v8823_v27 = vrot.slane %v3831_v25, %v7450_v20  ;;  %v8837_v11 = vrot.slane %v3642_v23, %v7504_v37 }
 0x413   : > { %v8795_v28 = vrot.slane %v4742_v22, %v7450_v20  ;;  %3980 = vrot.lane.b32.xlu0 %v6342_v39, %s6923_s17  ;;  %v8813_v39 = vrot.slane %v3825_v18, %v7450_v20  ;;  %v8829_v17 = vrot.slane %v3819_v9, %v7450_v20  ;;  %v8846_v26 = vrot.slane %v3574_v5, %v7504_v37 }
 0x414   : > { %10358 = vst [vmem:[#allocation17_spill] sm:$0xff] %v8808_v59  ;;  %v8817_v8 = vpop.permute.xlu1 %5304  ;;  %10359 = vst [vmem:[#allocation50_spill] sm:$0xff] %v8820_v49  ;;  %v3925_v10 = vcombine.low %v8823_v27, %v8803_v61  ;;  %v6569_v4 = vcombine.high %v8808_v59, %v8808_v59  ;;  %v6565_v22 = vcombine.high %v8820_v49, %v8820_v49  ;;  %v5317_v14 = vshrl.u32 %v8785_v35, 16 }
 0x415   : > { %4372 = vrot.lane.b32.xlu1 %v6594_v44, %s6924_s19  ;;  %v3857_v58 = vcombine.low %v8829_v17, %v8813_v39  ;;  %v5330_v25 = vshrl.u32 %v8817_v8, 16  ;;  %v6337_v23 = vcombine.low %v8837_v11, %v8837_v11  ;;  %v4273_v5 = vcombine.high %v8585_v16, %v8597_v33 }
 0x416   : > { %v8826_v1 = vpop.permute.xlu0 %5302  ;;  %v8858_v15 = vrot.slane %v3925_v10, %v7504_v37  ;;  %v6330_v49 = vcombine.low %v8846_v26, %v8846_v26  ;;  %v4205_v59 = vcombine.high %v8588_v7, %v8607_v36 }
 0x417   : > { %4337 = vrot.lane.b32.xlu0 %v6590_v21, %s6924_s19  ;;  %v5318_v9 = vshrl.u32 %v8826_v1, 16  ;;  %v5329_v21 = vshrl.u32 %v8770_v53, 16  ;;  %v8883_v36 = vrot.slane %v4273_v5, %v7504_v37 }
 0x418   : > { %v8841_v18 = vpop.permute.xlu1 %5308  ;;  %10360 = vst [vmem:[#allocation51_spill] sm:$0xff] %v8858_v15  ;;  %v6585_v7 = vcombine.high %v8858_v15, %v8858_v15 }
 0x419   : > { %3445 = vrot.lane.b32.xlu1 %v6569_v4, %s6920_s7  ;;  %v5331_v62 = vpack.i.b16 %v5330_v25, %v5329_v21  ;;  %v5335_v10 = vshrl.u32 %v8841_v18, 16  ;;  %v5319_v33 = vpack.i.b16 %v5318_v9, %v5317_v14  ;;  %v8890_v14 = vrot.slane %v4205_v59, %v7504_v37 }
 0x41a   : > { %v8850_v44 = vpop.permute.xlu0 %5306  ;;  %v3676_v59 = vcombine.high %v8541_v51, %v8544_v43  ;;  %v6367_v5 = vcombine.low %v8883_v36, %v8883_v36  ;;  %v6570_v43 = vcombine.high %v8686_v29, %v8686_v29 }
 0x41b   : > { %3410 = vrot.lane.b32.xlu0 %v6565_v22, %s6920_s7  ;;  %v8868_v22 = vrot.slane %v3857_v58, %v7504_v37  ;;  %v5323_v38 = vshrl.u32 %v8850_v44, 16  ;;  %v8893_v9 = vrot.slane %v5331_v62, %v7450_v20 }
 0x41c   : > { %v8863_v4 = vpop.permute.xlu1 %5312 }
 0x41d   : > { %10361 = vst [vmem:[#allocation52_spill] sm:$0xff] %v8868_v22  ;;  %v5336_v47 = vshrl.u32 %v8863_v4, 16  ;;  %3746 = vrot.lane.b32.xlu1 %v6337_v23, %s6921_s8  ;;  %v6581_v23 = vcombine.high %v8868_v22, %v8868_v22  ;;  %v4239_v22 = vcombine.high %v8531_v13, %v8534_v48  ;;  %v6586_v48 = vcombine.high %v8738_v41, %v8738_v41 }
 0x41e   : > { %v8875_v16 = vpop.permute.xlu0 %5310 }
 0x41f   : > { %v5324_v45 = vshrl.u32 %v8875_v16, 16  ;;  %3711 = vrot.lane.b32.xlu0 %v6330_v49, %s6921_s8  ;;  %v5337_v58 = vpack.i.b16 %v5336_v47, %v5335_v10  ;;  %v3608_v10 = vcombine.high %v8551_v63, %v8554_v60  ;;  %v6566_v60 = vcombine.high %v8698_v52, %v8698_v52 }
 0x420   : > { %v8885_v21 = vpop.permute.xlu1 %4434  ;;  %v4307_v52 = vcombine.high %v8525_v32, %v8528_v31 }
 0x421   : > { %v5325_v25 = vpack.i.b16 %v5324_v45, %v5323_v38  ;;  %10362 = vst [vmem:[#allocation53_spill] sm:$0xff] %v8885_v21  ;;  %v8896_v47 = vrot.slane %v5337_v58, %v7450_v20  ;;  %4020 = vrot.lane.b32.xlu1 %v6585_v7, %s6920_s7  ;;  %v8902_v45 = vrot.slane %v5319_v33, %v7450_v20  ;;  %v4463_v29 = vshrl.u32 %v8885_v21, 16 }
 0x422   : > { %v8899_v49 = vpop.permute.xlu0 %4432  ;;  %v6360_v7 = vcombine.low %v8890_v14, %v8890_v14  ;;  %v4873_v21 = vcombine.low %v8779_v24, %v8782_v6 }
 0x423   : > { %10363 = vst [vmem:[#allocation54_spill] sm:$0xff] %v8899_v49  ;;  %v8905_v38 = vrot.slane %v5325_v25, %v7450_v20  ;;  %3985 = vrot.lane.b32.xlu0 %v6581_v23, %s6920_s7  ;;  %v8929_v25 = vrot.slane %v3676_v59, %v7504_v37  ;;  %v8936_v23 = vrot.slane %v3608_v10, %v7504_v37  ;;  %v4451_v10 = vshrl.u32 %v8899_v49, 16 }
 0x424   : > { %v8918_v58 = vpop.permute.xlu1 %4438 }
 0x425   : > { %10364 = vst [vmem:[#allocation55_spill] sm:$0xff] %v8918_v58  ;;  %4377 = vrot.lane.b32.xlu1 %v6367_v5, %s6921_s8  ;;  %v4464_v5 = vshrl.u32 %v8918_v58, 16  ;;  %v6338_v59 = vcombine.low %v8929_v25, %v8929_v25 }
 0x426   : > { %v8923_v51 = vpop.permute.xlu0 %4436 }
 0x427   : > { %10365 = vst [vmem:[#allocation56_spill] sm:$0xff] %v8923_v51  ;;  %4342 = vrot.lane.b32.xlu0 %v6360_v7, %s6921_s8  ;;  %v4452_v7 = vshrl.u32 %v8923_v51, 16  ;;  %v4465_v15 = vpack.i.b16 %v4464_v5, %v4463_v29  ;;  %v8969_v5 = vrot.slane %v4307_v52, %v7504_v37  ;;  %v4805_v29 = vcombine.low %v8792_v54, %v8795_v28 }
 0x428   : > { %v8931_v63 = vpop.permute.xlu1 %4442 }
 0x429   : > { %3450 = vrot.lane.b32.xlu1 %v6570_v43, %s6924_s19  ;;  %v6331_v43 = vcombine.low %v8936_v23, %v8936_v23  ;;  %v4453_v31 = vpack.i.b16 %v4452_v7, %v4451_v10  ;;  %v8976_v10 = vrot.slane %v4239_v22, %v7504_v37  ;;  %v6368_v22 = vcombine.low %v8969_v5, %v8969_v5 }
 0x42a   : > { %v8940_v33 = vpop.permute.xlu0 %4440 }
 0x42b   : > { %3415 = vrot.lane.b32.xlu0 %v6566_v60, %s6924_s19  ;;  %v4469_v60 = vshrl.u32 %v8931_v63, 16  ;;  %v4457_v32 = vshrl.u32 %v8940_v33, 16  ;;  %v8986_v41 = vrot.slane %v4453_v31, %v7450_v20 }
 0x42c   : > { %v8950_v62 = vpop.permute.xlu1 %4446 }
 0x42d   : > { %v4470_v51 = vshrl.u32 %v8950_v62, 16  ;;  %3751 = vrot.lane.b32.xlu1 %v6338_v59, %s6925_s27  ;;  %v6582_v59 = vcombine.high %v8749_v50, %v8749_v50  ;;  %v5456_v50 = vcombine.low %v8893_v9, %v8896_v47 }
 0x42e   : > { %v8959_v58 = vpop.permute.xlu0 %4444 }
 0x42f   : > { %v4458_v49 = vshrl.u32 %v8959_v58, 16  ;;  %3716 = vrot.lane.b32.xlu0 %v6331_v43, %s6925_s27  ;;  %v4471_v13 = vpack.i.b16 %v4470_v51, %v4469_v60  ;;  %v8979_v43 = vrot.slane %v4465_v15, %v7450_v20  ;;  %v5388_v60 = vcombine.low %v8902_v45, %v8905_v38 }
 0x431   : > { %v4459_v7 = vpack.i.b16 %v4458_v49, %v4457_v32  ;;  %v8982_v51 = vrot.slane %v4471_v13, %v7450_v20  ;;  %4025 = vrot.lane.b32.xlu1 %v6586_v48, %s6924_s19  ;;  %v8999_v49 = vrot.slane %v4873_v21, %v7504_v37  ;;  %v6361_v32 = vcombine.low %v8976_v10, %v8976_v10 }
 0x432   : > { %v9008_v13 = vrot.slane %v4805_v29, %v7504_v37  ;;  %v9015_v48 = vrot.slane %v5456_v50, %v7504_v37  ;;  %v9022_v15 = vrot.slane %v5388_v60, %v7504_v37  ;;  %v3283_v29 = vcombine.high %v8741_v55, %v8752_v2 }
 0x433   : > { %v8989_v52 = vrot.slane %v4459_v7, %v7450_v20  ;;  %3990 = vrot.lane.b32.xlu0 %v6582_v59, %s6924_s19  ;;  %v6394_v21 = vcombine.low %v8999_v49, %v8999_v49  ;;  %v3351_v7 = vcombine.high %v8729_v56, %v8732_v40  ;;  %v3926_v2 = vcombine.high %v8823_v27, %v8803_v61 }
 0x434   : > { %v6387_v59 = vcombine.low %v9008_v13, %v9008_v13  ;;  %v6428_v50 = vcombine.low %v9015_v48, %v9015_v48  ;;  %v6421_v56 = vcombine.low %v9022_v15, %v9022_v15  ;;  %v9036_v40 = vrot.slane %v3283_v29, %v7504_v37 }
 0x435   : > { %4382 = vrot.lane.b32.xlu1 %v6368_v22, %s6925_s27  ;;  %v9031_v22 = vrot.slane %v3351_v7, %v7504_v37  ;;  %v4751_v55 = vpack.i.b16 %v8744_v42, %v8716_v30  ;;  %v4733_v30 = vpack.i.b16 %v8701_v57, %v8669_v12  ;;  %v5334_v61 = vpack.i.b16 %v8863_v4, %v8841_v18 }
 0x436   : > { %v6315_v7 = vcombine.low %v9036_v40, %v9036_v40  ;;  %v6575_v57 = vcombine.high %v8846_v26, %v8846_v26  ;;  %v5328_v27 = vpack.i.b16 %v8817_v8, %v8770_v53  ;;  %v6595_v29 = vcombine.high %v8883_v36, %v8883_v36 }
 0x437   : > { %4347 = vrot.lane.b32.xlu0 %v6361_v32, %s6925_s27  ;;  %v6322_v60 = vcombine.low %v9031_v22, %v9031_v22  ;;  %v3858_v32 = vcombine.high %v8829_v17, %v8813_v39  ;;  %v9059_v42 = vrot.slane %v4751_v55, %v7450_v20  ;;  %v9085_v17 = vrot.slane %v4733_v30, %v7450_v20 }
 0x438   : > { %v9093_v26 = vrot.slane %v5334_v61, %v7450_v20 }
 0x439   : > { %4929 = vrot.lane.b32.xlu1 %v6394_v21, %s6923_s17  ;;  %v4739_v21 = vpack.i.b16 %v8757_v3, %v8724_v34  ;;  %v6579_v34 = vcombine.high %v8837_v11, %v8837_v11  ;;  %v9066_v3 = vrot.slane %v3926_v2, %v7504_v37  ;;  %v9076_v12 = vrot.slane %v3858_v32, %v7504_v37 }
 0x43a   : > { %v5316_v11 = vpack.i.b16 %v8826_v1, %v8785_v35  ;;  %v9105_v1 = vrot.slane %v5328_v27, %v7450_v20  ;;  %v6591_v2 = vcombine.high %v8890_v14, %v8890_v14 }
 0x43b   : > { %4894 = vrot.lane.b32.xlu0 %v6387_v59, %s6923_s17  ;;  %v4745_v59 = vpack.i.b16 %v8690_v19, %v8655_v46  ;;  %v9069_v46 = vrot.slane %v4739_v21, %v7450_v20  ;;  %v5322_v19 = vpack.i.b16 %v8875_v16, %v8850_v44  ;;  %v6352_v44 = vcombine.low %v9066_v3, %v9066_v3 }
 0x43c   : > { %v6345_v35 = vcombine.low %v9076_v12, %v9076_v12  ;;  %v9109_v4 = vrot.slane %v5316_v11, %v7450_v20  ;;  %v5422_v16 = vcombine.low %v9105_v1, %v9093_v26  ;;  %v9156_v11 = vpop.permute.xlu1 %5584 }
 0x43d   : > { %5512 = vrot.lane.b32.xlu1 %v6428_v50, %s6923_s17  ;;  %v9079_v39 = vrot.slane %v4745_v59, %v7450_v20  ;;  %v4771_v53 = vcombine.low %v9085_v17, %v9069_v46  ;;  %v9100_v8 = vrot.slane %v5322_v19, %v7450_v20  ;;  %v10373_v19 = vld [vmem:[#allocation20_spill] sm:$0xff] }
 0x43e   : > { %v9131_v36 = vrot.slane %v5422_v16, %v7504_v37  ;;  %v10375_v16 = vld [vmem:[#allocation46_spill] sm:$0xff] }
 0x43f   : > { %5477 = vrot.lane.b32.xlu0 %v6421_v56, %s6923_s17  ;;  %v4839_v18 = vcombine.low %v9079_v39, %v9059_v42  ;;  %v5354_v56 = vcombine.low %v9109_v4, %v9100_v8  ;;  %v9124_v55 = vrot.slane %v4771_v53, %v7504_v37 }
 0x440   : > { %10368 = vst [vmem:[#allocation59_spill] sm:$0xff] %v9131_v36  ;;  %v6625_v14 = vcombine.high %v9131_v36, %v9131_v36  ;;  %v9168_v53 = vpop.permute.xlu1 %5588 }
 0x441   : > { %3455 = vrot.lane.b32.xlu1 %v6322_v60, %s6921_s8  ;;  %v9117_v50 = vrot.slane %v4839_v18, %v7504_v37  ;;  %10367 = vst [vmem:[#allocation58_spill] sm:$0xff] %v9124_v55  ;;  %v6605_v32 = vcombine.high %v9124_v55, %v9124_v55  ;;  %v9136_v21 = vrot.slane %v5354_v56, %v7504_v37  ;;  %v9159_v18 = vpop.permute.xlu0 %5582 }
 0x443   : > { %3420 = vrot.lane.b32.xlu0 %v6315_v7, %s6921_s8  ;;  %10366 = vst [vmem:[#allocation57_spill] sm:$0xff] %v9117_v50  ;;  %v6609_v60 = vcombine.high %v9117_v50, %v9117_v50  ;;  %10369 = vst [vmem:[#allocation60_spill] sm:$0xff] %v9136_v21  ;;  %v10370_v7 = vld [vmem:[#allocation18_spill] sm:$0xff]  ;;  %v6621_v61 = vcombine.high %v9136_v21, %v9136_v21  ;;  %v6606_v21 = vcombine.high %v9008_v13, %v9008_v13 }
 0x444   : > { %v10371_v59 = vcombine.high %v10352_v0, %v10370_v7  ;;  %v10379_v7 = vld [vmem:[#allocation49_spill] sm:$0xff] }
 0x445   : > { %3756 = vrot.lane.b32.xlu1 %v6579_v34, %s6922_s9  ;;  %v10372_v34 = vld [vmem:[#allocation19_spill] sm:$0xff] }
 0x446   : > { %v9146_v30 = vrot.slane %v10371_v59, %v7504_v37 }
 0x447   : > { %3721 = vrot.lane.b32.xlu0 %v6575_v57, %s6922_s9  ;;  %v10374_v57 = vcombine.high %v10372_v34, %v10373_v19  ;;  %v4522_v19 = vcombine.low %v8986_v41, %v8989_v52 }
 0x448   : > { %v6323_v0 = vcombine.low %v9146_v30, %v9146_v30 }
 0x449   : > { %4030 = vrot.lane.b32.xlu1 %v6352_v44, %s6921_s8  ;;  %v9154_v27 = vrot.slane %v10374_v57, %v7504_v37  ;;  %v9198_v57 = vpop.permute.xlu1 %5592 }
 0x44b   : > { %3995 = vrot.lane.b32.xlu0 %v6345_v35, %s6921_s8  ;;  %v6316_v44 = vcombine.low %v9154_v27, %v9154_v27  ;;  %v6580_v35 = vcombine.high %v8929_v25, %v8929_v25  ;;  %v4590_v25 = vcombine.low %v8979_v43, %v8982_v51 }
 0x44d   : > { %4387 = vrot.lane.b32.xlu1 %v6595_v29, %s6922_s9  ;;  %v10376_v29 = vld [vmem:[#allocation47_spill] sm:$0xff] }
 0x44e   : > { %v10377_v56 = vcombine.high %v10375_v16, %v10376_v29  ;;  %v6592_v16 = vcombine.high %v8976_v10, %v8976_v10  ;;  %v9212_v29 = vrot.slane %v4522_v19, %v7504_v37 }
 0x44f   : > { %4352 = vrot.lane.b32.xlu0 %v6591_v2, %s6922_s9 }
 0x450   : > { %v9176_v2 = vrot.slane %v10377_v56, %v7504_v37  ;;  %v9216_v56 = vpop.permute.xlu1 %5596  ;;  %v6372_v10 = vcombine.low %v9212_v29, %v9212_v29 }
 0x451   : > { %4934 = vrot.lane.b32.xlu1 %v6609_v60, %s6920_s7  ;;  %v9178_v60 = vpop.permute.xlu0 %5586 }
 0x452   : > { %v6353_v34 = vcombine.low %v9176_v2, %v9176_v2 }
 0x453   : > { %4899 = vrot.lane.b32.xlu0 %v6605_v32, %s6920_s7  ;;  %v6576_v32 = vcombine.high %v8936_v23, %v8936_v23 }
 0x455   : > { %5517 = vrot.lane.b32.xlu1 %v6625_v14, %s6920_s7  ;;  %v10378_v14 = vld [vmem:[#allocation48_spill] sm:$0xff] }
 0x456   : > { %v10380_v59 = vcombine.high %v10378_v14, %v10379_v7  ;;  %v10381_v14 = vld [vmem:[#allocation32_spill] sm:$0xff] }
 0x457   : > { %5482 = vrot.lane.b32.xlu0 %v6621_v61, %s6920_s7 }
 0x458   : > { %v9186_v61 = vrot.slane %v10380_v59, %v7504_v37 }
 0x459   : > { %3460 = vrot.lane.b32.xlu1 %v6323_v0, %s6925_s27  ;;  %v9201_v0 = vpop.permute.xlu0 %5590 }
 0x45a   : > { %v6346_v23 = vcombine.low %v9186_v61, %v9186_v61 }
 0x45b   : > { %3425 = vrot.lane.b32.xlu0 %v6316_v44, %s6925_s27  ;;  %v6596_v44 = vcombine.high %v8969_v5, %v8969_v5  ;;  %v10382_v5 = vld [vmem:[#allocation31_spill] sm:$0xff] }
 0x45c   : > { %v5173_v7 = vcombine.low %v10382_v5, %v10381_v14 }
 0x45d   : > { %3761 = vrot.lane.b32.xlu1 %v6580_v35, %s6926_s20  ;;  %v9207_v35 = vrot.slane %v4590_v25, %v7504_v37  ;;  %v9222_v59 = vpop.permute.xlu0 %5594  ;;  %v10383_v25 = vld [vmem:[#allocation30_spill] sm:$0xff] }
 0x45f   : > { %3726 = vrot.lane.b32.xlu0 %v6576_v32, %s6926_s20  ;;  %v6379_v32 = vcombine.low %v9207_v35, %v9207_v35 }
 0x461   : > { %4035 = vrot.lane.b32.xlu1 %v6353_v34, %s6925_s27  ;;  %v10384_v34 = vld [vmem:[#allocation29_spill] sm:$0xff] }
 0x462   : > { %v5105_v19 = vcombine.low %v10384_v34, %v10383_v25 }
 0x463   : > { %4000 = vrot.lane.b32.xlu0 %v6346_v23, %s6925_s27 }
 0x464   : > { %v9242_v36 = vrot.slane %v5105_v19, %v7504_v37  ;;  %v10389_v19 = vld [vmem:[#allocation53_spill] sm:$0xff] }
 0x465   : > { %4392 = vrot.lane.b32.xlu1 %v6596_v44, %s6926_s20  ;;  %v6610_v44 = vcombine.high %v8999_v49, %v8999_v49 }
 0x466   : > { %v6406_v13 = vcombine.low %v9242_v36, %v9242_v36 }
 0x467   : > { %4357 = vrot.lane.b32.xlu0 %v6592_v16, %s6926_s20  ;;  %v9235_v16 = vrot.slane %v5173_v7, %v7504_v37  ;;  %v4456_v7 = vpack.i.b16 %v8959_v58, %v8940_v33  ;;  %v6626_v33 = vcombine.high %v9015_v48, %v9015_v48 }
 0x469   : > { %4646 = vrot.lane.b32.xlu1 %v6379_v32, %s6923_s17  ;;  %v4468_v32 = vpack.i.b16 %v8950_v62, %v8931_v63  ;;  %v6413_v49 = vcombine.low %v9235_v16, %v9235_v16  ;;  %v10392_v62 = vld [vmem:[#allocation56_spill] sm:$0xff]  ;;  %v9272_v58 = vrot.slane %v4456_v7, %v7450_v20  ;;  %v10399_v7 = vld [vmem:[#allocation27_spill] sm:$0xff] }
 0x46b   : > { %4611 = vrot.lane.b32.xlu0 %v6372_v10, %s6923_s17  ;;  %v9230_v23 = vpop.permute.xlu1 %3731 }
 0x46c   : > { %10385 = vst [vmem:[#allocation18_spill] sm:$0xff] %v9230_v23 }
 0x46d   : > { %v9237_v31 = vpop.permute.xlu0 %3696  ;;  %4939 = vrot.lane.b32.xlu1 %v6610_v44, %s6924_s19  ;;  %v10390_v44 = vld [vmem:[#allocation55_spill] sm:$0xff] }
 0x46e   : > { %10386 = vst [vmem:[#allocation19_spill] sm:$0xff] %v9237_v31  ;;  %v4462_v50 = vpack.i.b16 %v10390_v44, %v10389_v19 }
 0x46f   : > { %4904 = vrot.lane.b32.xlu0 %v6606_v21, %s6924_s19  ;;  %v9248_v10 = vpop.permute.xlu1 %4362  ;;  %v10391_v21 = vld [vmem:[#allocation54_spill] sm:$0xff] }
 0x470   : > { %10387 = vst [vmem:[#allocation20_spill] sm:$0xff] %v9248_v10  ;;  %v4450_v63 = vpack.i.b16 %v10392_v62, %v10391_v21  ;;  %v9265_v10 = vrot.slane %v4468_v32, %v7450_v20  ;;  %v9279_v19 = vrot.slane %v4462_v50, %v7450_v20  ;;  %v10395_v32 = vld [vmem:[#allocation25_spill] sm:$0xff]  ;;  %v10398_v62 = vld [vmem:[#allocation22_spill] sm:$0xff] }
 0x471   : > { %v9254_v55 = vpop.permute.xlu0 %4327  ;;  %5229 = vrot.lane.b32.xlu1 %v6413_v49, %s6923_s17  ;;  %v6622_v49 = vcombine.high %v9022_v15, %v9022_v15  ;;  %v10397_v21 = vld [vmem:[#allocation21_spill] sm:$0xff] }
 0x472   : > { %10388 = vst [vmem:[#allocation46_spill] sm:$0xff] %v9254_v55  ;;  %v9287_v48 = vrot.slane %v4450_v63, %v7450_v20  ;;  %v4556_v15 = vcombine.low %v9279_v19, %v9265_v10 }
 0x473   : > { %5194 = vrot.lane.b32.xlu0 %v6406_v13, %s6923_s17  ;;  %v9267_v31 = vpop.permute.xlu1 %3736  ;;  %v10396_v13 = vld [vmem:[#allocation26_spill] sm:$0xff] }
 0x474   : > { %10393 = vst [vmem:[#allocation47_spill] sm:$0xff] %v9267_v31  ;;  %v5045_v44 = vpack.i.b16 %v10396_v13, %v10395_v32  ;;  %v5033_v31 = vpack.i.b16 %v10398_v62, %v10397_v21  ;;  %v10401_v32 = vld [vmem:[#allocation23_spill] sm:$0xff]  ;;  %v10402_v13 = vld [vmem:[#allocation24_spill] sm:$0xff]  ;;  %v4488_v63 = vcombine.low %v9287_v48, %v9272_v58 }
 0x475   : > { %v9274_v55 = vpop.permute.xlu0 %3701  ;;  %5522 = vrot.lane.b32.xlu1 %v6626_v33, %s6924_s19  ;;  %v6571_v33 = vcombine.high %v9031_v22, %v9031_v22  ;;  %v5039_v14 = vpack.i.b16 %v10402_v13, %v10401_v32 }
 0x476   : > { %10394 = vst [vmem:[#allocation48_spill] sm:$0xff] %v9274_v55  ;;  %v10400_v55 = vld [vmem:[#allocation28_spill] sm:$0xff]  ;;  %v9311_v62 = vrot.slane %v5033_v31, %v7450_v20  ;;  %v4772_v31 = vcombine.high %v9085_v17, %v9069_v46 }
 0x477   : > { %5487 = vrot.lane.b32.xlu0 %v6622_v49, %s6924_s19  ;;  %v5051_v23 = vpack.i.b16 %v10400_v55, %v10399_v7  ;;  %v9294_v50 = vpop.permute.xlu1 %4367  ;;  %v6567_v49 = vcombine.high %v9036_v40, %v9036_v40  ;;  %v9308_v55 = vrot.slane %v5045_v44, %v7450_v20  ;;  %v4840_v7 = vcombine.high %v9079_v39, %v9059_v42 }
 0x478   : > { %v6587_v40 = vcombine.high %v9066_v3, %v9066_v3  ;;  %v9327_v44 = vrot.slane %v5039_v14, %v7450_v20  ;;  %v9336_v42 = vrot.slane %v4488_v63, %v7504_v37 }
 0x479   : > { %v9302_v21 = vpop.permute.xlu0 %4332  ;;  %3465 = vrot.lane.b32.xlu1 %v6571_v33, %s6922_s9  ;;  %v9315_v22 = vrot.slane %v5051_v23, %v7450_v20  ;;  %v9324_v33 = vrot.slane %v4556_v15, %v7504_v37  ;;  %v6583_v23 = vcombine.high %v9076_v12, %v9076_v12  ;;  %v9345_v14 = vrot.slane %v4840_v7, %v7504_v37 }
 0x47a   : > { %10406 = vst [vmem:[#allocation29_spill] sm:$0xff] %v9336_v42  ;;  %v6597_v12 = vcombine.high %v9336_v42, %v9336_v42  ;;  %v9354_v15 = vrot.slane %v4772_v31, %v7504_v37  ;;  %v5071_v63 = vcombine.low %v9311_v62, %v9327_v44  ;;  %v5355_v31 = vcombine.high %v9109_v4, %v9100_v8 }
 0x47b   : > { %3430 = vrot.lane.b32.xlu0 %v6567_v49, %s6922_s9  ;;  %v9319_v32 = vpop.permute.xlu1 %3440  ;;  %10404 = vst [vmem:[#allocation31_spill] sm:$0xff] %v9324_v33  ;;  %v6601_v39 = vcombine.high %v9324_v33, %v9324_v33  ;;  %v5139_v46 = vcombine.low %v9308_v55, %v9315_v22  ;;  %v5423_v49 = vcombine.high %v9105_v1, %v9093_v26 }
 0x47c   : > { %10403 = vst [vmem:[#allocation49_spill] sm:$0xff] %v9319_v32 }
 0x47d   : > { %v9331_v13 = vpop.permute.xlu0 %3405  ;;  %4040 = vrot.lane.b32.xlu1 %v6587_v40, %s6922_s9  ;;  %v6397_v40 = vcombine.low %v9345_v14, %v9345_v14 }
 0x47e   : > { %10405 = vst [vmem:[#allocation30_spill] sm:$0xff] %v9331_v13 }
 0x47f   : > { %4005 = vrot.lane.b32.xlu0 %v6583_v23, %s6922_s9  ;;  %v9340_v3 = vpop.permute.xlu1 %3741  ;;  %v9367_v23 = vrot.slane %v5139_v46, %v7504_v37  ;;  %v9385_v46 = vrot.slane %v5423_v49, %v7504_v37 }
 0x481   : > { %v9349_v17 = vpop.permute.xlu0 %3706  ;;  %4651 = vrot.lane.b32.xlu1 %v6601_v39, %s6920_s7  ;;  %10408 = vst [vmem:[#allocation55_spill] sm:$0xff] %v9367_v23  ;;  %v6390_v39 = vcombine.low %v9354_v15, %v9354_v15  ;;  %v6617_v1 = vcombine.high %v9367_v23, %v9367_v23 }
 0x483   : > { %4616 = vrot.lane.b32.xlu0 %v6597_v12, %s6920_s7  ;;  %v9362_v7 = vpop.permute.xlu1 %4015  ;;  %v9376_v12 = vrot.slane %v5071_v63, %v7504_v37  ;;  %v9392_v63 = vrot.slane %v5355_v31, %v7504_v37 }
 0x484   : > { %10407 = vst [vmem:[#allocation53_spill] sm:$0xff] %v9362_v7  ;;  %v6568_v7 = vcombine.high %v9154_v27, %v9154_v27  ;;  %v6602_v27 = vcombine.high %v9207_v35, %v9207_v35 }
 0x485   : > { %v9371_v13 = vpop.permute.xlu0 %3980  ;;  %10410 = vst [vmem:[#allocation56_spill] sm:$0xff] %v9376_v12  ;;  %4944 = vrot.lane.b32.xlu1 %v6397_v40, %s6921_s8  ;;  %v6613_v4 = vcombine.high %v9376_v12, %v9376_v12  ;;  %v6424_v49 = vcombine.low %v9392_v63, %v9392_v63  ;;  %v5602_v12 = vshrl.u32 %v9178_v60, 16 }
 0x486   : > { %10409 = vst [vmem:[#allocation54_spill] sm:$0xff] %v9371_v13 }
 0x487   : > { %4909 = vrot.lane.b32.xlu0 %v6390_v39, %s6921_s8  ;;  %v9380_v26 = vpop.permute.xlu1 %4372  ;;  %v6431_v39 = vcombine.low %v9385_v46, %v9385_v46 }
 0x489   : > { %v9387_v8 = vpop.permute.xlu0 %4337  ;;  %5234 = vrot.lane.b32.xlu1 %v6617_v1, %s6920_s7  ;;  %v6572_v1 = vcombine.high %v9146_v30, %v9146_v30 }
 0x48b   : > { %5199 = vrot.lane.b32.xlu0 %v6613_v4, %s6920_s7  ;;  %v9396_v40 = vpop.permute.xlu1 %3445 }
 0x48c   : > { %10411 = vst [vmem:[#allocation25_spill] sm:$0xff] %v9396_v40  ;;  %v6584_v40 = vcombine.high %v9186_v61, %v9186_v61  ;;  %v6598_v61 = vcombine.high %v9212_v29, %v9212_v29 }
 0x48d   : > { %v9400_v13 = vpop.permute.xlu0 %3410  ;;  %5527 = vrot.lane.b32.xlu1 %v6431_v39, %s6921_s8  ;;  %v6588_v39 = vcombine.high %v9176_v2, %v9176_v2 }
 0x48e   : > { %10412 = vst [vmem:[#allocation26_spill] sm:$0xff] %v9400_v13 }
 0x48f   : > { %5492 = vrot.lane.b32.xlu0 %v6424_v49, %s6921_s8  ;;  %v9406_v31 = vpop.permute.xlu1 %3746 }
 0x491   : > { %v9410_v4 = vpop.permute.xlu0 %3711  ;;  %3470 = vrot.lane.b32.xlu1 %v6572_v1, %s6926_s20 }
 0x493   : > { %3435 = vrot.lane.b32.xlu0 %v6568_v7, %s6926_s20  ;;  %v9416_v13 = vpop.permute.xlu1 %4020  ;;  %v10415_v7 = vcombine.high %v8779_v24, %v8782_v6 }
 0x494   : > { %10413 = vst [vmem:[#allocation21_spill] sm:$0xff] %v9416_v13 }
 0x495   : > { %v9420_v49 = vpop.permute.xlu0 %3985  ;;  %4045 = vrot.lane.b32.xlu1 %v6588_v39, %s6926_s20  ;;  %v9434_v1 = vrot.slane %v10415_v7, %v7504_v37  ;;  %v10419_v7 = vcombine.high %v8893_v9, %v8896_v47 }
 0x496   : > { %10414 = vst [vmem:[#allocation22_spill] sm:$0xff] %v9420_v49  ;;  %v10426_v49 = vld [vmem:[#allocation14_spill] sm:$0xff] }
 0x497   : > { %4010 = vrot.lane.b32.xlu0 %v6584_v40, %s6926_s20  ;;  %v9426_v30 = vpop.permute.xlu1 %4377  ;;  %v10416_v40 = vcombine.high %v8792_v54, %v8795_v28  ;;  %v6398_v24 = vcombine.low %v9434_v1, %v9434_v1  ;;  %v4557_v54 = vcombine.high %v9279_v19, %v9265_v10  ;;  %v10420_v10 = vcombine.high %v8902_v45, %v8905_v38 }
 0x498   : > { %v2977_v13 = vshrl.u32 %v10426_v49, 16 }
 0x499   : > { %v9436_v2 = vpop.permute.xlu0 %4342  ;;  %v9444_v39 = vrot.slane %v10416_v40, %v7504_v37  ;;  %4656 = vrot.lane.b32.xlu1 %v6602_v27, %s6924_s19  ;;  %v6618_v27 = vcombine.high %v9235_v16, %v9235_v16  ;;  %v4489_v40 = vcombine.high %v9287_v48, %v9272_v58  ;;  %v9480_v19 = vrot.slane %v10420_v10, %v7504_v37  ;;  %v10422_v58 = vld [vmem:[#allocation39_spill] sm:$0xff] }
 0x49a   : > { %v9489_v16 = vrot.slane %v4557_v54, %v7504_v37 }
 0x49b   : > { %4621 = vrot.lane.b32.xlu0 %v6598_v61, %s6924_s19  ;;  %v9448_v35 = vpop.permute.xlu1 %3450  ;;  %v6391_v29 = vcombine.low %v9444_v39, %v9444_v39  ;;  %v9468_v61 = vrot.slane %v10419_v7, %v7504_v37  ;;  %v6425_v45 = vcombine.low %v9480_v19, %v9480_v19  ;;  %v9497_v38 = vrot.slane %v4489_v40, %v7504_v37 }
 0x49c   : > { %10417 = vst [vmem:[#allocation27_spill] sm:$0xff] %v9448_v35  ;;  %v5072_v35 = vcombine.high %v9311_v62, %v9327_v44  ;;  %v6607_v62 = vcombine.high %v9354_v15, %v9354_v15 }
 0x49d   : > { %v9452_v6 = vpop.permute.xlu0 %3415  ;;  %4949 = vrot.lane.b32.xlu1 %v6398_v24, %s6925_s27  ;;  %v6432_v47 = vcombine.low %v9468_v61, %v9468_v61 }
 0x49e   : > { %10418 = vst [vmem:[#allocation28_spill] sm:$0xff] %v9452_v6  ;;  %v9533_v44 = vrot.slane %v5072_v35, %v7504_v37  ;;  %v5608_v35 = vshrl.u32 %v9222_v59, 16 }
 0x49f   : > { %4914 = vrot.lane.b32.xlu0 %v6391_v29, %s6925_s27  ;;  %v9460_v28 = vpop.permute.xlu1 %3751  ;;  %v6614_v29 = vcombine.high %v9242_v36, %v9242_v36  ;;  %v2984_v36 = vshrl.u32 %v10422_v58, 16 }
 0x4a0   : > { %v6409_v15 = vcombine.low %v9533_v44, %v9533_v44 }
 0x4a1   : > { %v9472_v24 = vpop.permute.xlu0 %3716  ;;  %5239 = vrot.lane.b32.xlu1 %v6618_v27, %s6924_s19  ;;  %v10424_v27 = vld [vmem:[#allocation15_spill] sm:$0xff] }
 0x4a2   : > { %v2978_v7 = vshrl.u32 %v10424_v27, 16 }
 0x4a3   : > { %5204 = vrot.lane.b32.xlu0 %v6614_v29, %s6924_s19  ;;  %v9484_v9 = vpop.permute.xlu1 %4025  ;;  %v10425_v29 = vld [vmem:[#allocation16_spill] sm:$0xff] }
 0x4a4   : > { %10421 = vst [vmem:[#allocation23_spill] sm:$0xff] %v9484_v9  ;;  %v2983_v10 = vshrl.u32 %v10425_v29, 16  ;;  %v6382_v9 = vcombine.low %v9489_v16, %v9489_v16  ;;  %v2982_v42 = vpack.i.b16 %v10422_v58, %v10425_v29  ;;  %v2976_v29 = vpack.i.b16 %v10424_v27, %v10426_v49 }
 0x4a5   : > { %v9492_v48 = vpop.permute.xlu0 %3990  ;;  %5532 = vrot.lane.b32.xlu1 %v6432_v47, %s6925_s27  ;;  %v6375_v47 = vcombine.low %v9497_v38, %v9497_v38  ;;  %v6612_v27 = vcombine.high %v9434_v1, %v9434_v1 }
 0x4a6   : > { %10423 = vst [vmem:[#allocation24_spill] sm:$0xff] %v9492_v48  ;;  %v5140_v48 = vcombine.high %v9308_v55, %v9315_v22  ;;  %v2985_v40 = vpack.i.b16 %v2984_v36, %v2983_v10  ;;  %v6611_v55 = vcombine.high %v9345_v14, %v9345_v14 }
 0x4a7   : > { %5497 = vrot.lane.b32.xlu0 %v6425_v45, %s6925_s27  ;;  %v9503_v54 = vpop.permute.xlu1 %4382  ;;  %v2979_v45 = vpack.i.b16 %v2978_v7, %v2977_v13 }
 0x4a8   : > { %v9523_v22 = vrot.slane %v5140_v48, %v7504_v37  ;;  %v9526_v36 = vrot.slane %v2985_v40, %v7450_v20 }
 0x4a9   : > { %v9510_v6 = vpop.permute.xlu0 %4347  ;;  %4661 = vrot.lane.b32.xlu1 %v6382_v9, %s6921_s8  ;;  %v9537_v13 = vrot.slane %v2979_v45, %v7450_v20  ;;  %v10429_v45 = vcombine.high %v8986_v41, %v8989_v52  ;;  %v5601_v41 = vshrl.u32 %v9159_v18, 16 }
 0x4aa   : > { %v6416_v9 = vcombine.low %v9523_v22, %v9523_v22 }
 0x4ab   : > { %4626 = vrot.lane.b32.xlu0 %v6375_v47, %s6921_s8  ;;  %v9518_v32 = vpop.permute.xlu1 %4929  ;;  %10427 = vst [vmem:[#allocation39_spill] sm:$0xff] %v9537_v13  ;;  %v3104_v48 = vcombine.low %v9537_v13, %v9526_v36  ;;  %v6627_v47 = vcombine.high %v9385_v46, %v9385_v46  ;;  %v5603_v23 = vpack.i.b16 %v5602_v12, %v5601_v41  ;;  %v5613_v41 = vshrl.u32 %v9156_v11, 16 }
 0x4ad   : > { %v9528_v10 = vpop.permute.xlu0 %4894  ;;  %4954 = vrot.lane.b32.xlu1 %v6611_v55, %s6922_s9  ;;  %v9561_v55 = vrot.slane %v10429_v45, %v7504_v37 }
 0x4af   : > { %4919 = vrot.lane.b32.xlu0 %v6607_v62, %s6922_s9  ;;  %v9540_v14 = vpop.permute.xlu1 %5512  ;;  %v6376_v45 = vcombine.low %v9561_v55, %v9561_v55 }
 0x4b1   : > { %v9546_v7 = vpop.permute.xlu0 %5477  ;;  %5244 = vrot.lane.b32.xlu1 %v6416_v9, %s6921_s8  ;;  %v6623_v9 = vcombine.high %v9392_v63, %v9392_v63  ;;  %v5620_v63 = vshrl.u32 %v9216_v56, 16 }
 0x4b3   : > { %5209 = vrot.lane.b32.xlu0 %v6409_v15, %s6921_s8  ;;  %v9553_v40 = vpop.permute.xlu1 %3455  ;;  %v9568_v15 = vrot.slane %v3104_v48, %v7504_v37 }
 0x4b4   : > { %10428 = vst [vmem:[#allocation15_spill] sm:$0xff] %v9553_v40  ;;  %v5607_v40 = vshrl.u32 %v9201_v0, 16 }
 0x4b5   : > { %v9563_v62 = vpop.permute.xlu0 %3420  ;;  %5537 = vrot.lane.b32.xlu1 %v6627_v47, %s6922_s9  ;;  %v10431_v47 = vcombine.high %v8979_v43, %v8982_v51  ;;  %v6608_v43 = vcombine.high %v9444_v39, %v9444_v39  ;;  %v10433_v51 = vcombine.high %v10384_v34, %v10383_v25  ;;  %v9622_v25 = vrot.slane %v2982_v42, %v7450_v20  ;;  %v10436_v42 = vld [vmem:[#allocation32_spill] sm:$0xff] }
 0x4b6   : > { %10430 = vst [vmem:[#allocation16_spill] sm:$0xff] %v9563_v62  ;;  %v5609_v52 = vpack.i.b16 %v5608_v35, %v5607_v40  ;;  %v6304_v62 = vcombine.low %v9568_v15, %v9568_v15  ;;  %v5614_v35 = vshrl.u32 %v9168_v53, 16  ;;  %v5619_v40 = vshrl.u32 %v9198_v57, 16 }
 0x4b7   : > { %5502 = vrot.lane.b32.xlu0 %v6623_v9, %s6922_s9  ;;  %v9575_v46 = vpop.permute.xlu1 %3756  ;;  %v9588_v9 = vrot.slane %v10431_v47, %v7504_v37  ;;  %v9607_v12 = vrot.slane %v10433_v51, %v7504_v37 }
 0x4b8   : > { %v9597_v33 = vrot.slane %v5609_v52, %v7450_v20  ;;  %v9617_v52 = vrot.slane %v5603_v23, %v7450_v20  ;;  %v5615_v39 = vpack.i.b16 %v5614_v35, %v5613_v41  ;;  %v10437_v35 = vcombine.high %v10382_v5, %v10436_v42 }
 0x4b9   : > { %v9580_v48 = vpop.permute.xlu0 %3721  ;;  %4631 = vrot.lane.b32.xlu1 %v6376_v45, %s6925_s27  ;;  %v6383_v58 = vcombine.low %v9588_v9, %v9588_v9  ;;  %v6410_v47 = vcombine.low %v9607_v12, %v9607_v12  ;;  %v6624_v5 = vcombine.high %v9480_v19, %v9480_v19  ;;  %v5606_v42 = vpack.i.b16 %v9222_v59, %v9201_v0  ;;  %v10438_v59 = vld [vmem:[#allocation18_spill] sm:$0xff] }
 0x4ba   : > { %10435 = vst [vmem:[#allocation62_spill] sm:$0xff] %v9617_v52  ;;  %v5672_v34 = vcombine.low %v9617_v52, %v9597_v33  ;;  %v9648_v51 = vrot.slane %v5615_v39, %v7450_v20 }
 0x4bb   : > { %3160 = vrot.lane.b32.xlu0 %v6304_v62, %s6923_s17  ;;  %v9599_v13 = vpop.permute.xlu1 %4030  ;;  %v5621_v62 = vpack.i.b16 %v5620_v63, %v5619_v40  ;;  %v9641_v40 = vrot.slane %v10437_v35, %v7504_v37 }
 0x4bc   : > { %10432 = vst [vmem:[#allocation14_spill] sm:$0xff] %v9599_v13 }
 0x4bd   : > { %v9610_v45 = vpop.permute.xlu0 %3995  ;;  %4924 = vrot.lane.b32.xlu1 %v6608_v43, %s6926_s20  ;;  %v9631_v49 = vrot.slane %v5621_v62, %v7450_v20  ;;  %v9644_v43 = vrot.slane %v2976_v29, %v7450_v20  ;;  %v9658_v62 = vrot.slane %v5672_v34, %v7504_v37  ;;  %v6417_v39 = vcombine.low %v9641_v40, %v9641_v40 }
 0x4be   : > { %10434 = vst [vmem:[#allocation61_spill] sm:$0xff] %v9610_v45  ;;  %v10440_v45 = vld [vmem:[#allocation19_spill] sm:$0xff] }
 0x4bf   : > { %4666 = vrot.lane.b32.xlu0 %v6383_v58, %s6925_s27  ;;  %v9626_v63 = vpop.permute.xlu1 %4387  ;;  %v3070_v41 = vcombine.low %v9644_v43, %v9622_v25  ;;  %v5740_v58 = vcombine.low %v9648_v51, %v9631_v49  ;;  %v6436_v19 = vcombine.low %v9658_v62, %v9658_v62 }
 0x4c1   : > { %v9633_v23 = vpop.permute.xlu0 %4352  ;;  %5214 = vrot.lane.b32.xlu1 %v6410_v47, %s6925_s27  ;;  %v5618_v47 = vpack.i.b16 %v9216_v56, %v9198_v57  ;;  %v9675_v34 = vrot.slane %v3070_v41, %v7504_v37  ;;  %v5612_v57 = vpack.i.b16 %v9168_v53, %v9156_v11  ;;  %v5600_v56 = vpack.i.b16 %v9178_v60, %v9159_v18  ;;  %v10439_v41 = vld [vmem:[#allocation42_spill] sm:$0xff]  ;;  %v10442_v53 = vld [vmem:[#allocation47_spill] sm:$0xff] }
 0x4c2   : > { %v9706_v18 = vrot.slane %v5606_v42, %v7450_v20 }
 0x4c3   : > { %4959 = vrot.lane.b32.xlu0 %v6612_v27, %s6926_s20  ;;  %v9653_v1 = vpop.permute.xlu1 %4934  ;;  %v9693_v0 = vrot.slane %v5618_v47, %v7450_v20  ;;  %v6561_v11 = vcombine.high %v9675_v34, %v9675_v34  ;;  %v10443_v47 = vld [vmem:[#allocation48_spill] sm:$0xff] }
 0x4c5   : > { %v9662_v29 = vpop.permute.xlu0 %4899  ;;  %5507 = vrot.lane.b32.xlu1 %v6624_v5, %s6926_s20  ;;  %v6628_v5 = vcombine.high %v9468_v61, %v9468_v61  ;;  %v3780_v61 = vsel %vm823_vm0, %v10439_v41, %v10438_v59 }
 0x4c6   : > { %v3782_v60 = vsel %vm827_vm1, %v3780_v61, %v10442_v53  ;;  %v9725_v61 = vrot.slane %v5600_v56, %v7450_v20 }
 0x4c7   : > { %5249 = vrot.lane.b32.xlu0 %v6417_v39, %s6925_s27  ;;  %v9670_v27 = vpop.permute.xlu1 %5517  ;;  %v9684_v39 = vrot.slane %v5740_v58, %v7504_v37  ;;  %v10441_v58 = vld [vmem:[#allocation43_spill] sm:$0xff]  ;;  %v3784_v41 = vsel %vm830_vm2, %v3782_v60, %v9340_v3 }
 0x4c8   : > { %v3765_v13 = vsel %vm823_vm0, %v10441_v58, %v10440_v45  ;;  %v9717_v45 = vrot.slane %v5612_v57, %v7450_v20  ;;  %v6603_v20 = vcombine.high %v9489_v16, %v9489_v16 }
 0x4c9   : > { %v9679_v35 = vpop.permute.xlu0 %5482  ;;  %5761 = vrot.lane.b32.xlu1 %v6436_v19, %s6923_s17  ;;  %v3767_v19 = vsel %vm827_vm1, %v3765_v13, %v10443_v47  ;;  %v6443_v59 = vcombine.low %v9684_v39, %v9684_v39  ;;  %v3786_v13 = vsel %vm833_vm3, %v3784_v41, %v9406_v31  ;;  %v5638_v31 = vcombine.low %v9725_v61, %v9706_v18  ;;  %v10447_v41 = vld [vmem:[#allocation45_spill] sm:$0xff] }
 0x4ca   : > { %v3769_v42 = vsel %vm830_vm2, %v3767_v19, %v9349_v17  ;;  %v5706_v57 = vcombine.low %v9717_v45, %v9693_v0  ;;  %v3788_v3 = vsel %vm836_vm4, %v3786_v13, %v9460_v28  ;;  %v6599_v28 = vcombine.high %v9497_v38, %v9497_v38  ;;  %v10445_v19 = vld [vmem:[#allocation44_spill] sm:$0xff] }
 0x4cb   : > { %5542 = vrot.lane.b32.xlu0 %v6628_v5, %s6926_s20  ;;  %v9701_v52 = vpop.permute.xlu1 %3460  ;;  %v3771_v58 = vsel %vm833_vm3, %v3769_v42, %v9410_v4  ;;  %v3790_v4 = vsel %vm839_vm5, %v3788_v3, %v9575_v46  ;;  %v6619_v47 = vcombine.high %v9523_v22, %v9523_v22  ;;  %v10444_v46 = vld [vmem:[#allocation20_spill] sm:$0xff]  ;;  %v6615_v13 = vcombine.high %v9533_v44, %v9533_v44 }
 0x4cc   : > { %v3773_v17 = vsel %vm836_vm4, %v3771_v58, %v9472_v24  ;;  %v9765_v58 = vrot.slane %v5706_v57, %v7504_v37 }
 0x4cd   : > { %v9712_v5 = vpop.permute.xlu0 %3425  ;;  %3165 = vrot.lane.b32.xlu1 %v6561_v11, %s6920_s7  ;;  %v3775_v56 = vsel %vm839_vm5, %v3773_v17, %v9580_v48  ;;  %v4411_v48 = vsel %vm823_vm0, %v10445_v19, %v10444_v46  ;;  %v10449_v46 = vld [vmem:[#allocation57_spill] sm:$0xff] }
 0x4ce   : > { %v4413_v3 = vsel %vm827_vm1, %v4411_v48, %v9294_v50  ;;  %v4978_v19 = vsel %vm823_vm0, %v10449_v46, %v9518_v32  ;;  %v10450_v48 = vld [vmem:[#allocation58_spill] sm:$0xff] }
 0x4cf   : > { %5796 = vrot.lane.b32.xlu0 %v6443_v59, %s6923_s17  ;;  %v3762_v11 = vpop.permute.xlu1 %3761  ;;  %v10446_v59 = vld [vmem:[#allocation46_spill] sm:$0xff] }
 0x4d0   : > { %v3792_v60 = vsel %vm842_vm6, %v3790_v4, %v3762_v11  ;;  %v4396_v38 = vsel %vm823_vm0, %v10447_v41, %v10446_v59  ;;  %v4415_v4 = vsel %vm830_vm2, %v4413_v3, %v9380_v26  ;;  %v4963_v59 = vsel %vm823_vm0, %v10450_v48, %v9528_v10  ;;  %v10459_v48 = vld [vmem:[#allocation36_spill] sm:$0xff] }
 0x4d1   : > { %v3727_v53 = vpop.permute.xlu0 %3726  ;;  %4671 = vrot.lane.b32.xlu1 %v6603_v20, %s6922_s9  ;;  %v4398_v22 = vsel %vm827_vm1, %v4396_v38, %v9302_v21  ;;  %v9774_v20 = vrot.slane %v5638_v31, %v7504_v37  ;;  %v4417_v50 = vsel %vm833_vm3, %v4415_v4, %v9426_v30  ;;  %v6604_v38 = vcombine.high %v9588_v9, %v9588_v9 }
 0x4d2   : > { %v3777_v24 = vsel %vm842_vm6, %v3775_v56, %v3727_v53  ;;  %v4400_v44 = vsel %vm830_vm2, %v4398_v22, %v9387_v8  ;;  %v4419_v57 = vsel %vm836_vm4, %v4417_v50, %v9503_v54  ;;  %v6633_v8 = vcombine.high %v9765_v58, %v9765_v58  ;;  %v10453_v50 = vld [vmem:[#allocation34_spill] sm:$0xff] }
 0x4d3   : > { %v6341_v16 = vcombine.low %v3777_v24, %v3792_v60  ;;  %4636 = vrot.lane.b32.xlu0 %v6599_v28, %s6922_s9  ;;  %v9760_v42 = vpop.permute.xlu1 %4035  ;;  %v4402_v21 = vsel %vm833_vm3, %v4400_v44, %v9436_v2  ;;  %v4421_v56 = vsel %vm839_vm5, %v4419_v57, %v9626_v63  ;;  %v6629_v53 = vcombine.high %v9774_v20, %v9774_v20 }
 0x4d4   : > { %v4404_v26 = vsel %vm836_vm4, %v4402_v21, %v9510_v6  ;;  %v6562_v63 = vcombine.high %v9568_v15, %v9568_v15  ;;  %v4980_v15 = vsel %vm827_vm1, %v4978_v19, %v9653_v1  ;;  %v6600_v22 = vcombine.high %v9561_v55, %v9561_v55  ;;  %v10451_v55 = vld [vmem:[#allocation59_spill] sm:$0xff] }
 0x4d5   : > { %v3798_v17 = vrot.slane %v6341_v16, 6  ;;  %v9771_v11 = vpop.permute.xlu0 %4000  ;;  %5254 = vrot.lane.b32.xlu1 %v6619_v47, %s6922_s9  ;;  %v4406_v30 = vsel %vm839_vm5, %v4404_v26, %v9633_v23  ;;  %v10448_v16 = vld [vmem:[#allocation38_spill] sm:$0xff]  ;;  %v3071_v10 = vcombine.high %v9644_v43, %v9622_v25  ;;  %v6620_v1 = vcombine.high %v9641_v40, %v9641_v40  ;;  %v10452_v43 = vld [vmem:[#allocation33_spill] sm:$0xff]  ;;  %v10458_v19 = vld [vmem:[#allocation35_spill] sm:$0xff] }
 0x4d6   : > { %v6558_v47 = vcombine.high %v10448_v16, %v10448_v16  ;;  %v6616_v4 = vcombine.high %v9607_v12, %v9607_v12  ;;  %v5561_v44 = vsel %vm823_vm0, %v10451_v55, %v9540_v14  ;;  %v10454_v21 = vcombine.high %v10452_v43, %v10453_v50  ;;  %v10455_v12 = vld [vmem:[#allocation60_spill] sm:$0xff] }
 0x4d7   : > { %3800 = vst [vmem:[#allocation3 + $0x8] sm:$0xcc] %v3798_v17  ;;  %5219 = vrot.lane.b32.xlu0 %v6615_v13, %s6922_s9  ;;  %v4393_v31 = vpop.permute.xlu1 %4392  ;;  %v4965_v13 = vsel %vm827_vm1, %v4963_v59, %v9662_v29  ;;  %v3085_v25 = vrot.slane %v3071_v10, %v7504_v37  ;;  %v5707_v40 = vcombine.high %v9717_v45, %v9693_v0 }
 0x4d8   : > { %v4423_v28 = vsel %vm842_vm6, %v4421_v56, %v4393_v31  ;;  %v3017_v57 = vrot.slane %v10454_v21, %v7504_v37  ;;  %v5546_v26 = vsel %vm823_vm0, %v10455_v12, %v9546_v7  ;;  %v5563_v31 = vsel %vm827_vm1, %v5561_v44, %v9670_v27  ;;  %v10456_v27 = vld [vmem:[#allocation39_spill] sm:$0xff]  ;;  %v10464_v12 = vld [vmem:[#allocation56_spill] sm:$0xff] }
 0x4d9   : > { %v4358_v2 = vpop.permute.xlu0 %4357  ;;  %5801 = vrot.lane.b32.xlu1 %v6633_v8, %s6920_s7  ;;  %v6634_v8 = vcombine.high %v9684_v39, %v9684_v39  ;;  %v5639_v56 = vcombine.high %v9725_v61, %v9706_v18  ;;  %v6630_v7 = vcombine.high %v9658_v62, %v9658_v62  ;;  %v3105_v39 = vcombine.high %v10456_v27, %v9526_v36 }
 0x4da   : > { %v4408_v54 = vsel %vm842_vm6, %v4406_v30, %v4358_v2  ;;  %v5548_v30 = vsel %vm827_vm1, %v5546_v26, %v9679_v35  ;;  %v6307_v35 = vcombine.low %v3085_v25, %v3085_v25  ;;  %v5721_v61 = vrot.slane %v5707_v40, %v7504_v37 }
 0x4db   : > { %v6371_v6 = vcombine.low %v4408_v54, %v4423_v28  ;;  %5766 = vrot.lane.b32.xlu0 %v6629_v53, %s6920_s7  ;;  %v9802_v60 = vpop.permute.xlu1 %4646  ;;  %v6300_v28 = vcombine.low %v3017_v57, %v3017_v57  ;;  %v5653_v62 = vrot.slane %v5639_v56, %v7504_v37  ;;  %v5741_v54 = vcombine.high %v9648_v51, %v9631_v49  ;;  %v10461_v49 = vld [vmem:[#allocation31_spill] sm:$0xff]  ;;  %s6843_s7 = scalar_lea.vmem %s6842_s30, 1024 }
 0x4dc   : > { %v6446_v36 = vcombine.low %v5721_v61, %v5721_v61  ;;  %v10460_v59 = vcombine.high %v10458_v19, %v10459_v48  ;;  %v4695_v51 = vsel %vm823_vm0, %v10461_v49, %v9802_v60  ;;  %v6563_v40 = vcombine.high %v3085_v25, %v3085_v25  ;;  %v10467_v25 = vld [vmem:[#allocation30_spill] sm:$0xff]  ;;  %v10472_v19 = vld [vmem:[#allocation28_spill] sm:$0xff]  ;;  %p6845_p0 = scmp.lt.s32.totalorder %s6843_s7, %s6837_s23 }
 0x4dd   : > { %v4429_v24 = vrot.slane %v6371_v6, 6  ;;  %v9806_v23 = vpop.permute.xlu0 %4611  ;;  %3170 = vrot.lane.b32.xlu1 %v6562_v63, %s6924_s19  ;;  %v9888_v63 = vrot.slane %v3105_v39, %v7504_v37  ;;  %v6439_v46 = vcombine.low %v5653_v62, %v5653_v62  ;;  %v6635_v39 = vcombine.high %v5721_v61, %v5721_v61  ;;  %v10474_v49 = vld [vmem:[#allocation16_spill] sm:$0xff] }
 0x4de   : > { %p6846_p9 = por %p6845_p0, %p6844_p2 }
 0x4df   : > { %4431 = vst [vmem:[#allocation3 + $0x18] sm:$0xcc] %v4429_v24  ;;  %3135 = vrot.lane.b32.xlu0 %v6558_v47, %s6924_s19  ;;  %v4940_v41 = vpop.permute.xlu1 %4939  ;;  %v10457_v24 = vld [vmem:[#allocation62_spill] sm:$0xff] }
 0x4e0   : > { %v9825_v3 = vsel %vm830_vm2, %v4980_v15, %v4940_v41  ;;  %v5673_v16 = vcombine.high %v10457_v24, %v9597_v33  ;;  %v9898_v15 = vrot.slane %v10460_v59, %v7504_v37  ;;  %v6308_v33 = vcombine.low %v9888_v63, %v9888_v63  ;;  %v10473_v59 = vld [vmem:[#allocation15_spill] sm:$0xff]  ;;  %p6847_p6 = pnand %p6846_p9, %p6840_p10 }
 0x4e1   : > { %v4905_v32 = vpop.permute.xlu0 %4904  ;;  %4676 = vrot.lane.b32.xlu1 %v6604_v38, %s6926_s20  ;;  %v9908_v38 = vrot.slane %v5741_v54, %v7504_v37  ;;  %v6631_v24 = vcombine.high %v5653_v62, %v5653_v62 }
 0x4e2   : > { %v9830_v17 = vsel %vm830_vm2, %v4965_v13, %v4905_v32  ;;  %v10462_v13 = vld [vmem:[#allocation29_spill] sm:$0xff]  ;;  %v9919_v60 = vrot.slane %v5673_v16, %v7504_v37  ;;  %v10463_v37 = vld [vmem:[#allocation55_spill] sm:$0xff]  ;;  %v6560_v62 = vcombine.high %v9898_v15, %v9898_v15 }
 0x4e3   : > { %4641 = vrot.lane.b32.xlu0 %v6600_v22, %s6926_s20  ;;  %v5230_v9 = vpop.permute.xlu1 %5229  ;;  %v4680_v32 = vsel %vm823_vm0, %v10462_v13, %v9806_v23  ;;  %v6447_v23 = vcombine.low %v9908_v38, %v9908_v38  ;;  %v10471_v16 = vld [vmem:[#allocation27_spill] sm:$0xff] }
 0x4e4   : > { %v6440_v43 = vcombine.low %v9919_v60, %v9919_v60  ;;  %v5278_v50 = vsel %vm823_vm0, %v10463_v37, %v5230_v9  ;;  %v10476_v13 = vld [vmem:[#allocation51_spill] sm:$0xff] }
 0x4e5   : > { %v5195_v29 = vpop.permute.xlu0 %5194  ;;  %5259 = vrot.lane.b32.xlu1 %v6620_v1, %s6926_s20  ;;  %v6301_v1 = vcombine.low %v9898_v15, %v9898_v15 }
 0x4e6   : > { %v5263_v26 = vsel %vm823_vm0, %v10464_v12, %v5195_v29 }
 0x4e7   : > { %5224 = vrot.lane.b32.xlu0 %v6616_v4, %s6926_s20  ;;  %v5523_v14 = vpop.permute.xlu1 %5522 }
 0x4e8   : > { %v9864_v2 = vsel %vm830_vm2, %v5563_v31, %v5523_v14 }
 0x4e9   : > { %v5488_v0 = vpop.permute.xlu0 %5487  ;;  %5806 = vrot.lane.b32.xlu1 %v6634_v8, %s6924_s19  ;;  %v6559_v8 = vcombine.high %v3017_v57, %v3017_v57 }
 0x4ea   : > { %v9869_v45 = vsel %vm830_vm2, %v5548_v30, %v5488_v0  ;;  %v10465_v30 = vld [vmem:[#allocation49_spill] sm:$0xff] }
 0x4eb   : > { %5771 = vrot.lane.b32.xlu0 %v6630_v7, %s6924_s19  ;;  %v9875_v18 = vpop.permute.xlu1 %3465  ;;  %v10466_v0 = vld [vmem:[#allocation17_spill] sm:$0xff]  ;;  %v10468_v7 = vld [vmem:[#allocation50_spill] sm:$0xff] }
 0x4ec   : > { %v3489_v9 = vsel %vm823_vm0, %v10466_v0, %v10465_v30  ;;  %v3474_v29 = vsel %vm823_vm0, %v10468_v7, %v10467_v25  ;;  %v10482_v30 = vld [vmem:[#allocation24_spill] sm:$0xff]  ;;  %v10483_v25 = vld [vmem:[#allocation14_spill] sm:$0xff] }
 0x4ed   : > { %v9878_v53 = vpop.permute.xlu0 %3430  ;;  %3175 = vrot.lane.b32.xlu1 %v6307_v35, %s6921_s8  ;;  %v10469_v35 = vld [vmem:[#allocation25_spill] sm:$0xff] }
 0x4ee   : > { %v3491_v57 = vsel %vm827_vm1, %v3489_v9, %v10469_v35 }
 0x4ef   : > { %3140 = vrot.lane.b32.xlu0 %v6300_v28, %s6921_s8  ;;  %v9885_v6 = vpop.permute.xlu1 %4040  ;;  %v10470_v28 = vld [vmem:[#allocation26_spill] sm:$0xff] }
 0x4f0   : > { %v3476_v54 = vsel %vm827_vm1, %v3474_v29, %v10470_v28  ;;  %v6636_v28 = vcombine.high %v9908_v38, %v9908_v38 }
 0x4f1   : > { %v9892_v47 = vpop.permute.xlu0 %4005  ;;  %5811 = vrot.lane.b32.xlu1 %v6446_v36, %s6921_s8  ;;  %v3478_v48 = vsel %vm830_vm2, %v3476_v54, %v10472_v19 }
 0x4f3   : > { %5776 = vrot.lane.b32.xlu0 %v6439_v46, %s6921_s8  ;;  %v4652_v41 = vpop.permute.xlu1 %4651  ;;  %v3493_v46 = vsel %vm830_vm2, %v3491_v57, %v10471_v16 }
 0x4f4   : > { %v9914_v22 = vsel %vm827_vm1, %v4695_v51, %v4652_v41  ;;  %v3495_v61 = vsel %vm833_vm3, %v3493_v46, %v10473_v59  ;;  %v3480_v51 = vsel %vm833_vm3, %v3478_v48, %v10474_v49  ;;  %v6564_v41 = vcombine.high %v9888_v63, %v9888_v63 }
 0x4f5   : > { %v4617_v10 = vpop.permute.xlu0 %4616  ;;  %3180 = vrot.lane.b32.xlu1 %v6308_v33, %s6925_s27  ;;  %v10475_v33 = vld [vmem:[#allocation53_spill] sm:$0xff]  ;;  %v3482_v37 = vsel %vm836_vm4, %v3480_v51, %v9712_v5  ;;  %v6632_v46 = vcombine.high %v9919_v60, %v9919_v60 }
 0x4f6   : > { %v9922_v4 = vsel %vm827_vm1, %v4680_v32, %v4617_v10  ;;  %v4064_v32 = vsel %vm823_vm0, %v10476_v13, %v10475_v33  ;;  %v10477_v10 = vld [vmem:[#allocation54_spill] sm:$0xff]  ;;  %v5876_v60 = vld [vmem:[#allocation9] sm:$0xff] }
 0x4f7   : > { %3145 = vrot.lane.b32.xlu0 %v6301_v1, %s6925_s27  ;;  %v9926_v55 = vpop.permute.xlu1 %4944  ;;  %v10478_v1 = vld [vmem:[#allocation52_spill] sm:$0xff] }
 0x4f9   : > { %v9930_v44 = vpop.permute.xlu0 %4909  ;;  %5816 = vrot.lane.b32.xlu1 %v6447_v23, %s6925_s27  ;;  %v4049_v23 = vsel %vm823_vm0, %v10478_v1, %v10477_v10 }
 0x4fb   : > { %5781 = vrot.lane.b32.xlu0 %v6440_v43, %s6925_s27  ;;  %v5235_v21 = vpop.permute.xlu1 %5234  ;;  %v3497_v43 = vsel %vm836_vm4, %v3495_v61, %v9701_v52 }
 0x4fc   : > { %v9941_v31 = vsel %vm827_vm1, %v5278_v50, %v5235_v21  ;;  %v10479_v21 = vld [vmem:[#allocation21_spill] sm:$0xff]  ;;  %v3499_v12 = vsel %vm839_vm5, %v3497_v43, %v9875_v18 }
 0x4fd   : > { %v5200_v14 = vpop.permute.xlu0 %5199  ;;  %3185 = vrot.lane.b32.xlu1 %v6563_v40, %s6922_s9  ;;  %v4066_v63 = vsel %vm827_vm1, %v4064_v32, %v10479_v21  ;;  %v10480_v40 = vld [vmem:[#allocation22_spill] sm:$0xff]  ;;  %v10484_v18 = vld [vmem:[#allocation61_spill] sm:$0xff] }
 0x4fe   : > { %v9944_v56 = vsel %vm827_vm1, %v5263_v26, %v5200_v14  ;;  %v4051_v15 = vsel %vm827_vm1, %v4049_v23, %v10480_v40  ;;  %v3484_v26 = vsel %vm839_vm5, %v3482_v37, %v9878_v53 }
 0x4ff   : > { %3150 = vrot.lane.b32.xlu0 %v6559_v8, %s6922_s9  ;;  %v9954_v27 = vpop.permute.xlu1 %5527  ;;  %v10481_v8 = vld [vmem:[#allocation23_spill] sm:$0xff]  ;;  %v4053_v5 = vsel %vm830_vm2, %v4051_v15, %v10482_v30 }
 0x500   : > { %v4068_v52 = vsel %vm830_vm2, %v4066_v63, %v10481_v8  ;;  %v4055_v29 = vsel %vm833_vm3, %v4053_v5, %v10484_v18 }
 0x501   : > { %v9960_v36 = vpop.permute.xlu0 %5492  ;;  %5821 = vrot.lane.b32.xlu1 %v6635_v39, %s6922_s9  ;;  %v4070_v7 = vsel %vm833_vm3, %v4068_v52, %v10483_v25  ;;  %v4057_v35 = vsel %vm836_vm4, %v4055_v29, %v9771_v11 }
 0x502   : > { %v4072_v39 = vsel %vm836_vm4, %v4070_v7, %v9760_v42 }
 0x503   : > { %5786 = vrot.lane.b32.xlu0 %v6631_v24, %s6922_s9  ;;  %v3471_v50 = vpop.permute.xlu1 %3470  ;;  %v4074_v54 = vsel %vm839_vm5, %v4072_v39, %v9885_v6  ;;  %v4059_v24 = vsel %vm839_vm5, %v4057_v35, %v9892_v47 }
 0x504   : > { %v3501_v0 = vsel %vm842_vm6, %v3499_v12, %v3471_v50  ;;  %v4969_v12 = vsel %vm833_vm3, %v9830_v17, %v9930_v44  ;;  %v5567_v17 = vsel %vm833_vm3, %v9864_v2, %v9954_v27  ;;  %v5552_v44 = vsel %vm833_vm3, %v9869_v45, %v9960_v36 }
 0x505   : > { %v3436_v14 = vpop.permute.xlu0 %3435  ;;  %3190 = vrot.lane.b32.xlu1 %v6564_v41, %s6926_s20 }
 0x506   : > { %v3486_v9 = vsel %vm842_vm6, %v3484_v26, %v3436_v14 }
 0x507   : > { %v6326_v53 = vcombine.low %v3486_v9, %v3501_v0  ;;  %3155 = vrot.lane.b32.xlu0 %v6560_v62, %s6926_s20  ;;  %v4046_v57 = vpop.permute.xlu1 %4045 }
 0x508   : > { %v4076_v42 = vsel %vm842_vm6, %v4074_v54, %v4046_v57 }
 0x509   : > { %3508 = vst [vmem:[#allocation3 + $0x8] sm:$0x33] %v6326_v53  ;;  %v4011_v16 = vpop.permute.xlu0 %4010  ;;  %5826 = vrot.lane.b32.xlu1 %v6636_v28, %s6926_s20 }
 0x50a   : > { %v4061_v19 = vsel %vm842_vm6, %v4059_v24, %v4011_v16 }
 0x50b   : > { %v6356_v11 = vcombine.low %v4061_v19, %v4076_v42  ;;  %5791 = vrot.lane.b32.xlu0 %v6632_v46, %s6926_s20  ;;  %v4657_v38 = vpop.permute.xlu1 %4656 }
 0x50c   : > { %v10024_v6 = vsel %vm830_vm2, %v9914_v22, %v4657_v38 }
 0x50d   : > { %4083 = vst [vmem:[#allocation3 + $0x18] sm:$0x33] %v6356_v11  ;;  %v4622_v47 = vpop.permute.xlu0 %4621 }
 0x50e   : > { %v10028_v48 = vsel %vm830_vm2, %v9922_v4, %v4622_v47 }
 0x50f   : > { %v4950_v59 = vpop.permute.xlu1 %4949  ;;  %5879 = vperm.xlu0 %6722, %v5876_v60  }
 0x511   : > { %v4915_v61 = vpop.permute.xlu0 %4914 }
 0x512   : > { %v4971_v14 = vsel %vm836_vm4, %v4969_v12, %v4915_v61 }
 0x513   : > { %v5240_v49 = vpop.permute.xlu1 %5239 }
 0x514   : > { %v6729_v51 = vld [vmem:[#allocation3 + $0xc] ss:$16 sps:$4 sm:$0xff]   ;;  %v6731_v41 = vld [vmem:[#allocation3 + $0x8] ss:$16 sps:$4 sm:$0xff]   ;;  %v10032_v62 = vsel %vm830_vm2, %v9941_v31, %v5240_v49 }
 0x515   : > { %v5205_v33 = vpop.permute.xlu0 %5204  ;;  %5990 = vmatprep.subr.bf16.mxu1 %v6729_v51 }
 0x516   : > { %v10036_v22 = vsel %vm830_vm2, %v9944_v56, %v5205_v33  ;;  %5991 = vmatpush1.bf16.msra.mxu1 %v6731_v41  ;;  %v4984_v56 = vsel %vm833_vm3, %v9825_v3, %v9926_v55 }
 0x517   : > { %v5533_v4 = vpop.permute.xlu1 %5532  ;;  %v4986_v26 = vsel %vm836_vm4, %v4984_v56, %v4950_v59 }
 0x518   : > { %v5569_v18 = vsel %vm836_vm4, %v5567_v17, %v5533_v4 }
 0x519   : > { %v5498_v13 = vpop.permute.xlu0 %5497 }
 0x51a   : > { %v5554_v29 = vsel %vm836_vm4, %v5552_v44, %v5498_v13 }
 0x51b   : > { %v4662_v32 = vpop.permute.xlu1 %4661 }
 0x51c   : > { %v4701_v60 = vsel %vm833_vm3, %v10024_v6, %v4662_v32 }
 0x51d   : > { %v4627_v10 = vpop.permute.xlu0 %4626 }
 0x51e   : > { %v4686_v59 = vsel %vm833_vm3, %v10028_v48, %v4627_v10 }
 0x51f   : > { %v4955_v1 = vpop.permute.xlu1 %4954 }
 0x520   : > { %v4988_v52 = vsel %vm839_vm5, %v4986_v26, %v4955_v1 }
 0x521   : > { %v4920_v23 = vpop.permute.xlu0 %4919 }
 0x522   : > { %v4973_v30 = vsel %vm839_vm5, %v4971_v14, %v4920_v23 }
 0x523   : > { %v5245_v43 = vpop.permute.xlu1 %5244 }
 0x524   : > { %v5284_v6 = vsel %vm833_vm3, %v10032_v62, %v5245_v43 }
 0x525   : > { %v5210_v37 = vpop.permute.xlu0 %5209 }
 0x526   : > { %v5269_v48 = vsel %vm833_vm3, %v10036_v22, %v5210_v37 }
 0x527   : > { %v5538_v50 = vpop.permute.xlu1 %5537 }
 0x528   : > { %v5571_v39 = vsel %vm839_vm5, %v5569_v18, %v5538_v50 }
 0x529   : > { %v5503_v21 = vpop.permute.xlu0 %5502 }
 0x52a   : > { %v5556_v35 = vsel %vm839_vm5, %v5554_v29, %v5503_v21 }
 0x52b   : > { %v4632_v63 = vpop.permute.xlu1 %4631 }
 0x52c   : > { %v4688_v61 = vsel %vm836_vm4, %v4686_v59, %v4632_v63 }
 0x52d   : > { %v10038_v31 = vpop.permute.xlu0 %3160 }
 0x52e   : > { %v3209_v44 = vsel %vm823_vm0, %v9675_v34, %v10038_v31 }
 0x52f   : > { %v4925_v40 = vpop.permute.xlu1 %4924 }
 0x530   : > { %v4975_v0 = vsel %vm842_vm6, %v4973_v30, %v4925_v40 }
 0x531   : > { %v4667_v15 = vpop.permute.xlu0 %4666 }
 0x532   : > { %v4703_v49 = vsel %vm836_vm4, %v4701_v60, %v4667_v15 }
 0x533   : > { %v5215_v8 = vpop.permute.xlu1 %5214 }
 0x534   : > { %v5271_v10 = vsel %vm836_vm4, %v5269_v48, %v5215_v8 }
 0x535   : > { %v4960_v5 = vpop.permute.xlu0 %4959 }
 0x536   : > { %v4990_v9 = vsel %vm842_vm6, %v4988_v52, %v4960_v5 }
 0x537   : > { %v6401_v25 = vcombine.low %v4975_v0, %v4990_v9  ;;  %v5508_v3 = vpop.permute.xlu1 %5507 }
 0x538   : > { %v5558_v28 = vsel %vm842_vm6, %v5556_v35, %v5508_v3 }
 0x539   : > { %v4996_v55 = vrot.slane %v6401_v25, 6  ;;  %v5250_v7 = vpop.permute.xlu0 %5249 }
 0x53a   : > { %v5286_v23 = vsel %vm836_vm4, %v5284_v6, %v5250_v7  ;;  %v10486_v7 = vld [vmem:[#allocation37_spill] sm:$0xff] }
 0x53b   : > { %4998 = vst [vmem:[#allocation3 + $0x28] sm:$0xcc] %v4996_v55  ;;  %v10060_v53 = vpop.permute.xlu1 %5761  ;;  %v10485_v55 = vld [vmem:[#allocation41_spill] sm:$0xff] }
 0x53c   : > { %v3194_v17 = vsel %vm823_vm0, %v10486_v7, %v10485_v55 }
 0x53d   : > { %v5543_v57 = vpop.permute.xlu0 %5542 }
 0x53e   : > { %v5573_v2 = vsel %vm842_vm6, %v5571_v39, %v5543_v57  ;;  %v10487_v39 = vld [vmem:[#allocation40_spill] sm:$0xff] }
 0x53f   : > { %v6435_v27 = vcombine.low %v5558_v28, %v5573_v2  ;;  %v3166_v54 = vpop.permute.xlu1 %3165  ;;  %v3196_v35 = vsel %vm827_vm1, %v3194_v17, %v10487_v39 }
 0x540   : > { %v3211_v29 = vsel %vm827_vm1, %v3209_v44, %v3166_v54 }
 0x541   : > { %v5579_v24 = vrot.slane %v6435_v27, 6  ;;  %v5797_v45 = vpop.permute.xlu0 %5796 }
 0x542   : > { %v5845_v34 = vsel %vm823_vm0, %v9765_v58, %v5797_v45 }
 0x543   : > { %5581 = vst [vmem:[#allocation3 + $0x38] sm:$0xcc] %v5579_v24  ;;  %v4672_v36 = vpop.permute.xlu1 %4671 }
 0x544   : > { %v4705_v41 = vsel %vm839_vm5, %v4703_v49, %v4672_v36  ;;  %v5830_v36 = vsel %vm823_vm0, %v9774_v20, %v10060_v53 }
 0x545   : > { %v4637_v16 = vpop.permute.xlu0 %4636 }
 0x546   : > { %v4690_v33 = vsel %vm839_vm5, %v4688_v61, %v4637_v16 }
 0x547   : > { %v5255_v46 = vpop.permute.xlu1 %5254 }
 0x548   : > { %v5288_v21 = vsel %vm839_vm5, %v5286_v23, %v5255_v46 }
 0x549   : > { %v5220_v42 = vpop.permute.xlu0 %5219 }
 0x54a   : > { %v5273_v63 = vsel %vm839_vm5, %v5271_v10, %v5220_v42 }
 0x54b   : > { %v5802_v19 = vpop.permute.xlu1 %5801 }
 0x54c   : > { %v5847_v46 = vsel %vm827_vm1, %v5845_v34, %v5802_v19 }
 0x54d   : > { %v5767_v11 = vpop.permute.xlu0 %5766 }
 0x54e   : > { %v5832_v42 = vsel %vm827_vm1, %v5830_v36, %v5767_v11 }
 0x54f   : > { %v3171_v38 = vpop.permute.xlu1 %3170 }
 0x550   : > { %v3213_v28 = vsel %vm830_vm2, %v3211_v29, %v3171_v38 }
 0x551   : > { %v3136_v47 = vpop.permute.xlu0 %3135 }
 0x552   : > { %v3198_v2 = vsel %vm830_vm2, %v3196_v35, %v3136_v47 }
 0x553   : > { %v4677_v51 = vpop.permute.xlu1 %4676 }
 0x554   : > { %v4707_v13 = vsel %vm842_vm6, %v4705_v41, %v4677_v51 }
 0x555   : > { %v4642_v4 = vpop.permute.xlu0 %4641 }
 0x556   : > { %v4692_v1 = vsel %vm842_vm6, %v4690_v33, %v4642_v4 }
 0x557   : > { %v6386_v32 = vcombine.low %v4692_v1, %v4707_v13  ;;  %v5260_v50 = vpop.permute.xlu1 %5259 }
 0x558   : > { %v5290_v15 = vsel %vm842_vm6, %v5288_v21, %v5260_v50  ;;  %v5865_v21 = vld [vmem:[#allocation7] sm:$0xf] }
 0x559   : > { %4714 = vst [vmem:[#allocation3 + $0x28] sm:$0x33] %v6386_v32  ;;  %v5225_v40 = vpop.permute.xlu0 %5224 }
 0x55a   : > { %v5275_v56 = vsel %vm842_vm6, %v5273_v63, %v5225_v40 }
 0x55b   : > { %v6420_v62 = vcombine.low %v5275_v56, %v5290_v15  ;;  %v5807_v43 = vpop.permute.xlu1 %5806 }
 0x55c   : > { %v5849_v59 = vsel %vm830_vm2, %v5847_v46, %v5807_v43 }
 0x55d   : > { %5297 = vst [vmem:[#allocation3 + $0x38] sm:$0x33] %v6420_v62  ;;  %v5772_v22 = vpop.permute.xlu0 %5771 }
 0x55e   : > { %v5834_v20 = vsel %vm830_vm2, %v5832_v42, %v5772_v22 }
 0x55f   : > { %v3176_v37 = vpop.permute.xlu1 %3175 }
 0x560   : > { %v3215_v27 = vsel %vm833_vm3, %v3213_v28, %v3176_v37 }
 0x561   : > { %v3141_v12 = vpop.permute.xlu0 %3140 }
 0x562   : > { %v3200_v24 = vsel %vm833_vm3, %v3198_v2, %v3141_v12 }
 0x563   : > { %v5812_v26 = vpop.permute.xlu1 %5811 }
 0x564   : > { %v6732_v14 = vld [vmem:[#allocation3 + $0x2c] ss:$16 sps:$4 sm:$0xff]   ;;  %v6734_v8 = vld [vmem:[#allocation3 + $0x28] ss:$16 sps:$4 sm:$0xff]   ;;  %v5851_v45 = vsel %vm833_vm3, %v5849_v59, %v5812_v26 }
 0x565   : > { %v5777_v52 = vpop.permute.xlu0 %5776  ;;  %5992 = vmatprep.subr.bf16.mxu1 %v6732_v14 }
 0x566   : > { %5993 = vmatpush1.bf16.msra.mxu1 %v6734_v8  ;;  %v5836_v61 = vsel %vm833_vm3, %v5834_v20, %v5777_v52 }
 0x567   : > { %v3181_v30 = vpop.permute.xlu1 %3180 }
 0x568   : > { %v3217_v31 = vsel %vm836_vm4, %v3215_v27, %v3181_v30 }
 0x569   : > { %v3146_v5 = vpop.permute.xlu0 %3145 }
 0x56a   : > { %v3202_v54 = vsel %vm836_vm4, %v3200_v24, %v3146_v5 }
 0x56b   : > { %v5817_v0 = vpop.permute.xlu1 %5816 }
 0x56c   : > { %v5853_v11 = vsel %vm836_vm4, %v5851_v45, %v5817_v0 }
 0x56d   : > { %v5782_v9 = vpop.permute.xlu0 %5781 }
 0x56e   : > { %v5838_v49 = vsel %vm836_vm4, %v5836_v61, %v5782_v9 }
 0x56f   : > { %v3186_v25 = vpop.permute.xlu1 %3185 }
 0x570   : > { %v3219_v38 = vsel %vm839_vm5, %v3217_v31, %v3186_v25 }
 0x571   : > { %v3151_v3 = vpop.permute.xlu0 %3150 }
 0x572   : > { %v3204_v47 = vsel %vm839_vm5, %v3202_v54, %v3151_v3 }
 0x573   : > { %v5822_v18 = vpop.permute.xlu1 %5821 }
 0x574   : > { %v5855_v41 = vsel %vm839_vm5, %v5853_v11, %v5822_v18 }
 0x575   : > { %v5787_v57 = vpop.permute.xlu0 %5786 }
 0x576   : > { %v5840_v33 = vsel %vm839_vm5, %v5838_v49, %v5787_v57 }
 0x577   : > { %v3191_v16 = vpop.permute.xlu1 %3190 }
 0x578   : > { %v3221_v58 = vsel %vm842_vm6, %v3219_v38, %v3191_v16 }
 0x579   : > { %v3156_v60 = vpop.permute.xlu0 %3155 }
 0x57a   : > { %v3206_v53 = vsel %vm842_vm6, %v3204_v47, %v3156_v60 }
 0x57b   : > { %v6311_v19 = vcombine.low %v3206_v53, %v3221_v58  ;;  %v5827_v51 = vpop.permute.xlu1 %5826 }
 0x57c   : > { %v5857_v13 = vsel %vm842_vm6, %v5855_v41, %v5827_v51 }
 0x57d   : > { %3228 = vst [vmem:[#allocation3 + $0x40] sm:$0x33] %v6311_v19  ;;  %v5792_v4 = vpop.permute.xlu0 %5791 }
 0x57e   : > { %v5842_v1 = vsel %vm842_vm6, %v5840_v33, %v5792_v4 }
 0x57f   : > { %v6450_v6 = vcombine.low %v5842_v1, %v5857_v13 }
 0x581   : > { %5864 = vst [vmem:[#allocation3 + $0x48] sm:$0x33] %v6450_v6 }
 0x584   : > { %v5874_v48 = vld [vmem:[#allocation3 + $0x40] sm:$0x33] }
 0x585   : > { %v6460_v32 = vcombine.high %v5874_v48, %v5874_v48  ;;  %v6459_v10 = vcombine.low %v5874_v48, %v5874_v48 }
 0x587   : > { %6463 = vmatprep.subr.msk.bf16.mxu0 %vm5936_vm7, %v6460_v32  ;;  %v5938_v23 = vsel %vm5936_vm7, %v6459_v10, 0 }
 0x588   : > { %5954 = vmatpush1.bf16.msra.mxu0 %v5938_v23  ;;  %v5875_v50 = vld [vmem:[#allocation3 + $0x48] sm:$0x33] }
 0x589   : > { %v6462_v63 = vcombine.high %v5875_v50, %v5875_v50  ;;  %v6461_v40 = vcombine.low %v5875_v50, %v5875_v50 }
 0x58b   : > { %6465 = vmatprep.subr.msk.bf16.mxu1 %vm5936_vm7, %v6462_v63  ;;  %6464 = vmatmul.mubr.msk.bf16.vlgmr.msra.gmra.mrb[0].mxu0 %vm5932_vm8, %v5865_v21  ;;  %v5944_v15 = vsel %vm5936_vm7, %v6461_v40, 0 }
 0x58c   : > { %5995 = vmatpush1.bf16.msra.mxu1 %v5944_v15 }
 0x58e   : > { %v5880_v56 = vpop.permute.xlu0 %5879 }
 0x58f   : > { %6466 = vmatmul.mubr.msk.bf16.vlgmr.msra.gmra.mrb[0].mxu1 %vm5932_vm8, %v5865_v21 }
 0x65e   : > { %v5983_v62 = vpop.f32.mrb[0].mxu0 }
 0x65f   : > { %v5985_v43 = vpop.f32.mrb[1].mxu0  ;;  %v5984_v22 = vadd.f32 %v5983_v62, %v5880_v56 }
 0x660   : > { %v5987_v37 = vpop.f32.mrb[2].mxu0  ;;  %v5986_v12 = vadd.f32 %v5985_v43, %v5880_v56 }
 0x661   : > { %6031 = vst [vmem:[%s214_s4] sm:$0xff] %v5984_v22  ;;  %v5988_v26 = vpop.f32.mrb[3].mxu0 }
 0x662   : > { %6032 = vst [vmem:[%s214_s4 + $0x8] sm:$0xff] %v5986_v12  ;;  %v6024_v14 = vpop.f32.mrb[0].mxu1 }
 0x663   : > { %v6025_v8 = vadd.f32 %v6024_v14, %v5880_v56  ;;  %v6026_v52 = vpop.f32.mrb[1].mxu1 }
 0x664   : > { %v6027_v30 = vadd.f32 %v6026_v52, %v5880_v56  ;;  %v6028_v5 = vpop.f32.mrb[2].mxu1 }
 0x665   : > { %6467 = vst [vmem:[%s214_s4 + $0x10] sm:$0xff] %v6025_v8  ;;  %v6029_v0 = vpop.f32.mrb[3].mxu1 }
 0x666   : > { %6468 = vst [vmem:[%s214_s4 + $0x18] sm:$0xff] %v6027_v30 }
 0x667   : > { %6850 = shalt.err (!%p6847_p6)
}
 0x668   : > { %s6851_s8 = scalar_lea.hbm %s10129_s28, 512  ;;  %s6855_s27 = scalar_lea.hbm %s10177_s3, 1024 }
 0x669   : > { %p6852_p12 = scmp.ne.s32.totalorder %s10129_s28, %s6851_s8  ;;  %p6856_p11 = scmp.lt.u32.totalorder %s10129_s28, %s10177_s3 }
 0x66a   : > { %p6857_p7 = scmp.lt.u32.totalorder %s6855_s27, %s6851_s8  ;;  %p6859_p8 = scmp.lt.u32.totalorder %s6851_s8, %s10129_s28 }
 0x66b   : > { %p6853_p13 = pnand %p6852_p12, %p10488_p4 }
 0x66c   : > { %p6858_p3 = por %p6857_p7, %p6856_p11 }
 0x66d   : > { %p6854_p1 = pneg %p6853_p13 }
 0x66e   : > { %p6860_p5 = por %p6859_p8, %p6858_p3 }
 0x670   : > { %p6861_p10 = pnand %p6860_p5, %p6854_p1 }
 0x672   : > { %6864 = shalt.err (!%p6861_p10)
}
 0x673   : > { %s6928_s4 = smov 256  }
 0x674   : > { %6649 = dma.vmem_to_hbm [thread:$0]  (%p10488_p4), %s10124_s6, 512, %s10129_s28, %s6037_s16, %s6928_s4, %s6928_s4, %s6923_s17  }
 0x675 PF: > { %s6066_s29 = sand.u32 1, %s6895_s12   ;;  %p10489_p2 = scmp.ne.s32.totalorder %s10274_s25, 0 }
 0x676   : > { %p10490_p0 = scmp.ge.s32.totalorder %s6907_s15, 2  ;;  %s6067_s5 = scalar_lea.sflag [#allocation6], %s6066_s29 }
 0x678   : > { %p6663_p9 = pnand %p10490_p0, %p10489_p2 }
 0x67a   : > { %6890 = dma.done.wait (!%p6663_p9), %s6067_s5, 512  }
 0x67b   : > { %6892 = vsyncadd (!%p6663_p9), %s6067_s5, 4294966784  ;;  %p17_p6 = scmp.ge.s32.totalorder %s6974_s18, 4   ;;  %s10491_s12 = smov %s6899_s13 }
 0x67c   : > { %s10492_s13 = smov %s6903_s14  ;;  %s10493_s14 = smov %s6986_s21 }
 0x67d   : > { %s10494_s15 = smov %s6974_s18  ;;  %19 = sbr.rel (!%p17_p6) target bundleno = 6 (0x6), region = 87 }
 0x684   :  { %6072 = vsyncpa [#allocation5], 1 }
 0x685   :  { %6074 = vsyncpa [#allocation5 + $0x1], 1 }
 0x686   :  { %6075 = vsyncpa [#allocation8], 1 }
 0x687   :  { %6076 = vsyncpa [#allocation6], 1 }
 0x688   :  { %6078 = vsyncpa [#allocation6 + $0x1], 1 }

</bundles_post_ra>
